<compile_context>
chip_gen: v7x
topology: tpu7x:2x2x1
jax: 0.10.0
libtpu: 0.0.40
codegen_flags: <defaults>
</compile_context>

<pallas_src>
import jax
import jax.numpy as jnp
from jax.experimental import pallas as pl
from jax.experimental.pallas import tpu as pltpu

H, W = 14, 14
HP, WP = H + 2, W + 2            # zero-padded spatial dims (16, 16)
MW = H * WP                      # "wide" output rows: 14 * 16 = 224 (multiple of 8)
C_IN, C_OUT = 256, 256
KH, KW = 3, 3
NTAP = KH * KW
KDIM = NTAP * C_IN               # folded matmul K dimension: 9 * 256 = 2304
TC = 128                         # Cout block size (2 blocks -> dual-core on v7x)
NC = C_OUT // TC
EPS = 1e-5


def conv_bn_relu_kernel(x_ref, w_ref, g_ref, b_ref, o_ref):
    # x_ref: (MW, KDIM)  bf16  tap-major im2row activation slab (shared by all Cout blocks)
    # w_ref: (KDIM, TC)  bf16  weight slab for this Cout block
    # g_ref: (1, TC)     f32   gamma
    # b_ref: (1, TC)     f32   beta
    # o_ref: (MW, TC)    bf16  output slab for this Cout block
    acc = jnp.dot(x_ref[...], w_ref[...], preferred_element_type=jnp.float32)

    # BN batch statistics over the 196 valid output positions (exclude the 2 halo
    # columns of every wide row), single pass: sum and sum-of-squares.
    row = jax.lax.broadcasted_iota(jnp.int32, (MW, 1), 0)
    valid = (row % WP) < W                                       # (MW, 1)
    n = float(H * W)
    acc_m = jnp.where(valid, acc, 0.0)
    s1 = jnp.sum(acc_m, axis=0, keepdims=True)                   # (1, TC)
    s2 = jnp.sum(acc_m * acc_m, axis=0, keepdims=True)           # (1, TC)
    mean = s1 / n
    var = s2 / n - mean * mean                                   # biased (training-mode BN)

    scale = g_ref[...] * jax.lax.rsqrt(var + EPS)                # fold BN into one MAD
    bias = b_ref[...] - mean * scale
    o_ref[...] = jnp.maximum(acc * scale + bias, 0.0).astype(o_ref.dtype)


@jax.jit
def conv_bn_relu(x_nchw, w_oihw, gamma, beta):
    n, c, h, w = x_nchw.shape
    assert (n, c, h, w) == (1, C_IN, H, W)

    # ---- layout glue: channels-last, padded, tap-folded (im2row), bf16 ----
    x_hwc = jnp.transpose(x_nchw[0].astype(jnp.bfloat16), (1, 2, 0))  # (H, W, Cin) bf16
    x_pad = jnp.pad(x_hwc, ((1, 1), (1, 1), (0, 0)))                  # (HP, WP, Cin)
    x_flat = x_pad.reshape(HP * WP, C_IN)                             # (256, Cin)
    x_flat = jnp.pad(x_flat, ((0, 8), (0, 0)))                        # (264, Cin): room for last tap
    offs = [kh * WP + kw for kh in range(KH) for kw in range(KW)]     # tap offsets, kh-major
    x_wide = jnp.concatenate([x_flat[o:o + MW] for o in offs], axis=1)  # (MW, 9*Cin)

    # weights: OIHW -> [(kh*KW + kw)*Cin + cin, cout], matching x_wide's tap-major columns
    w2d = jnp.transpose(w_oihw.astype(jnp.bfloat16), (2, 3, 1, 0)).reshape(KDIM, C_OUT)
    gamma2 = gamma.reshape(1, C_OUT).astype(jnp.float32)
    beta2 = beta.reshape(1, C_OUT).astype(jnp.float32)

    out = pl.pallas_call(
        conv_bn_relu_kernel,
        out_shape=jax.ShapeDtypeStruct((MW, C_OUT), jnp.bfloat16),
        grid=(NC,),
        in_specs=[
            pl.BlockSpec((MW, KDIM), lambda c: (0, 0)),   # shared activation slab
            pl.BlockSpec((KDIM, TC), lambda c: (0, c)),   # per-Cout-block weights
            pl.BlockSpec((1, TC), lambda c: (0, c)),      # gamma
            pl.BlockSpec((1, TC), lambda c: (0, c)),      # beta
        ],
        out_specs=pl.BlockSpec((MW, TC), lambda c: (0, c)),
        compiler_params=pltpu.CompilerParams(
            dimension_semantics=("parallel",)),
    )(x_wide, w2d, gamma2, beta2)

    # (MW, Cout) -> drop halo columns -> NCHW, f32 (module output dtype)
    out = out.reshape(H, WP, C_OUT)[:, :W, :].astype(jnp.float32)
    return jnp.transpose(out, (2, 0, 1))[None]


@jax.jit
def reference(x_nchw, w_oihw, gamma, beta):
    # Same operand precision as the kernel (bf16 conv operands, f32 accumulation),
    # so the check validates kernel math independent of bf16 quantization.
    conv = jax.lax.conv_general_dilated(
        x_nchw.astype(jnp.bfloat16), w_oihw.astype(jnp.bfloat16),
        window_strides=(1, 1), padding=((1, 1), (1, 1)),
        dimension_numbers=("NCHW", "OIHW", "NCHW"),
        preferred_element_type=jnp.float32)
    mean = conv.mean(axis=(0, 2, 3), keepdims=True)
    var = conv.var(axis=(0, 2, 3), keepdims=True)                # biased (training-mode BN)
    y = (conv - mean) * jax.lax.rsqrt(var + EPS)
    y = y * gamma.reshape(1, -1, 1, 1) + beta.reshape(1, -1, 1, 1)
    return jnp.maximum(y, 0.0)


if __name__ == "__main__":
    key = jax.random.PRNGKey(0)
    kx, kw, kg, kb = jax.random.split(key, 4)

    # deterministic synthetic parameters (module-consistent shapes)
    x = jax.random.normal(kx, (1, C_IN, H, W), dtype=jnp.float32)
    w = jax.random.normal(kw, (C_OUT, C_IN, KH, KW), dtype=jnp.float32) * 0.05
    gamma = 1.0 + 0.1 * jax.random.normal(kg, (C_OUT,), dtype=jnp.float32)
    beta = 0.1 * jax.random.normal(kb, (C_OUT,), dtype=jnp.float32)

    out = jax.block_until_ready(conv_bn_relu(x, w, gamma, beta))
    ref = jax.block_until_ready(reference(x, w, gamma, beta))

    assert out.shape == (1, C_OUT, H, W)
    assert jnp.allclose(out, ref, atol=2e-2, rtol=2e-2), \
        f"max abs err {jnp.max(jnp.abs(out - ref))}"
    print("KERNEL_OK")
</pallas_src>

<mosaic_0001>
module attributes {stable_mosaic.version = 11 : i64} {
  func.func @conv_bn_relu_kernel(%arg0: i32, %arg1: memref<224x2304xbf16, #tpu.memory_space<vmem>>, %arg2: memref<2304x128xbf16, #tpu.memory_space<vmem>>, %arg3: memref<1x128xf32, #tpu.memory_space<vmem>>, %arg4: memref<1x128xf32, #tpu.memory_space<vmem>>, %arg5: memref<224x128xbf16, #tpu.memory_space<vmem>>) attributes {dimension_semantics = [#tpu.dimension_semantics<parallel>], iteration_bounds = array<i64: 2>, scalar_prefetch = 0 : i64, scratch_operands = 0 : i64, tpu.core_type = #tpu.core_type<tc>, window_params = [{pipeline_mode = #tpu.pipeline_mode<synchronous>, transform_indices = @transform_0, window_bounds = array<i64: 224, 2304>}, {transform_indices = @transform_1, window_bounds = array<i64: 2304, 128>}, {transform_indices = @transform_2, window_bounds = array<i64: 1, 128>}, {transform_indices = @transform_3, window_bounds = array<i64: 1, 128>}, {transform_indices = @transform_4, window_bounds = array<i64: 224, 128>}]} {
    %c0 = arith.constant 0 : index
    %c0_0 = arith.constant 0 : index
    %0 = vector.load %arg1[%c0, %c0_0] : memref<224x2304xbf16, #tpu.memory_space<vmem>>, vector<224x2304xbf16>
    %c0_1 = arith.constant 0 : index
    %c0_2 = arith.constant 0 : index
    %1 = vector.load %arg2[%c0_1, %c0_2] : memref<2304x128xbf16, #tpu.memory_space<vmem>>, vector<2304x128xbf16>
    %cst = arith.constant dense<0.000000e+00> : vector<224x128xf32>
    %2 = tpu.matmul %0, %1, %cst {dimension_numbers = #tpu.dot_dimension_numbers<[1], [0], [0], [1], [0, 0, 1, 1], [], []>} : vector<224x2304xbf16>, vector<2304x128xbf16>, vector<224x128xf32> -> vector<224x128xf32>
    %3 = tpu.iota {dimensions = array<i32: 0>} : vector<224x1xi32>
    %c16_i32 = arith.constant 16 : i32
    %c0_i32 = arith.constant 0 : i32
    %4 = arith.cmpi eq, %c16_i32, %c0_i32 : i32
    %c1_i32 = arith.constant 1 : i32
    %5 = arith.select %4, %c1_i32, %c16_i32 : i32
    %6 = vector.broadcast %5 : i32 to vector<224x1xi32>
    %7 = arith.remsi %3, %6 : vector<224x1xi32>
    %c0_i32_3 = arith.constant 0 : i32
    %8 = vector.broadcast %c0_i32_3 : i32 to vector<224x1xi32>
    %9 = arith.cmpi ne, %7, %8 : vector<224x1xi32>
    %c0_i32_4 = arith.constant 0 : i32
    %10 = vector.broadcast %c0_i32_4 : i32 to vector<224x1xi32>
    %11 = arith.cmpi slt, %7, %10 : vector<224x1xi32>
    %c0_i32_5 = arith.constant 0 : i32
    %12 = arith.cmpi slt, %5, %c0_i32_5 : i32
    %13 = vector.broadcast %12 : i1 to vector<224x1xi1>
    %14 = vector.broadcast %13 : vector<224x1xi1> to vector<224x1xi1>
    %15 = arith.xori %11, %14 : vector<224x1xi1>
    %16 = arith.andi %15, %9 : vector<224x1xi1>
    %17 = vector.broadcast %5 : i32 to vector<224x1xi32>
    %18 = arith.addi %7, %17 : vector<224x1xi32>
    %19 = arith.select %16, %18, %7 : vector<224x1xi1>, vector<224x1xi32>
    %c14_i32 = arith.constant 14 : i32
    %20 = vector.broadcast %c14_i32 : i32 to vector<224x1xi32>
    %21 = arith.cmpi slt, %19, %20 : vector<224x1xi32>
    %cst_6 = arith.constant 0.000000e+00 : f32
    %22 = vector.shape_cast %21 : vector<224x1xi1> to vector<224x1xi1>
    %23 = vector.broadcast %22 : vector<224x1xi1> to vector<224x128xi1>
    %24 = vector.broadcast %cst_6 : f32 to vector<224x128xf32>
    %25 = arith.select %23, %2, %24 : vector<224x128xi1>, vector<224x128xf32>
    %cst_7 = arith.constant dense<0.000000e+00> : vector<128xf32>
    %26 = vector.multi_reduction <add>, %25, %cst_7 [0] : vector<224x128xf32> to vector<128xf32>
    %27 = vector.shape_cast %26 : vector<128xf32> to vector<1x128xf32>
    %28 = arith.mulf %25, %25 : vector<224x128xf32>
    %cst_8 = arith.constant dense<0.000000e+00> : vector<128xf32>
    %29 = vector.multi_reduction <add>, %28, %cst_8 [0] : vector<224x128xf32> to vector<128xf32>
    %30 = vector.shape_cast %29 : vector<128xf32> to vector<1x128xf32>
    %cst_9 = arith.constant 1.960000e+02 : f32
    %31 = vector.broadcast %cst_9 : f32 to vector<1x128xf32>
    %32 = arith.divf %27, %31 : vector<1x128xf32>
    %cst_10 = arith.constant 1.960000e+02 : f32
    %33 = vector.broadcast %cst_10 : f32 to vector<1x128xf32>
    %34 = arith.divf %30, %33 : vector<1x128xf32>
    %35 = arith.mulf %32, %32 : vector<1x128xf32>
    %36 = arith.subf %34, %35 : vector<1x128xf32>
    %c0_11 = arith.constant 0 : index
    %c0_12 = arith.constant 0 : index
    %37 = vector.load %arg3[%c0_11, %c0_12] : memref<1x128xf32, #tpu.memory_space<vmem>>, vector<1x128xf32>
    %cst_13 = arith.constant 9.99999974E-6 : f32
    %38 = vector.broadcast %cst_13 : f32 to vector<1x128xf32>
    %39 = arith.addf %36, %38 : vector<1x128xf32>
    %40 = math.rsqrt %39 : vector<1x128xf32>
    %41 = arith.mulf %37, %40 : vector<1x128xf32>
    %c0_14 = arith.constant 0 : index
    %c0_15 = arith.constant 0 : index
    %42 = vector.load %arg4[%c0_14, %c0_15] : memref<1x128xf32, #tpu.memory_space<vmem>>, vector<1x128xf32>
    %43 = arith.mulf %32, %41 : vector<1x128xf32>
    %44 = arith.subf %42, %43 : vector<1x128xf32>
    %45 = vector.broadcast %41 : vector<1x128xf32> to vector<224x128xf32>
    %46 = arith.mulf %2, %45 : vector<224x128xf32>
    %47 = vector.broadcast %44 : vector<1x128xf32> to vector<224x128xf32>
    %48 = arith.addf %46, %47 : vector<224x128xf32>
    %cst_16 = arith.constant 0.000000e+00 : f32
    %49 = vector.broadcast %cst_16 : f32 to vector<224x128xf32>
    %50 = arith.maximumf %48, %49 : vector<224x128xf32>
    %51 = arith.truncf %50 : vector<224x128xf32> to vector<224x128xbf16>
    %c0_17 = arith.constant 0 : index
    %c0_18 = arith.constant 0 : index
    %52 = vector.load %arg5[%c0_17, %c0_18] : memref<224x128xbf16, #tpu.memory_space<vmem>>, vector<224x128xbf16>
    tpu.vector_store %arg5[%c0_17, %c0_18], %51 {strides = array<i32>} : memref<224x128xbf16, #tpu.memory_space<vmem>>, vector<224x128xbf16>,
    return
  }
  func.func @transform_0(%arg0: i32) -> (i32, i32) {
    %c0_i32 = arith.constant 0 : i32
    %c0_i32_0 = arith.constant 0 : i32
    %c0_i32_1 = arith.constant 0 : i32
    return %c0_i32, %c0_i32_0 : i32, i32
  }
  func.func @transform_1(%arg0: i32) -> (i32, i32) {
    %c0_i32 = arith.constant 0 : i32
    %c0_i32_0 = arith.constant 0 : i32
    return %c0_i32, %arg0 : i32, i32
  }
  func.func @transform_2(%arg0: i32) -> (i32, i32) {
    %c0_i32 = arith.constant 0 : i32
    %c0_i32_0 = arith.constant 0 : i32
    return %c0_i32, %arg0 : i32, i32
  }
  func.func @transform_3(%arg0: i32) -> (i32, i32) {
    %c0_i32 = arith.constant 0 : i32
    %c0_i32_0 = arith.constant 0 : i32
    return %c0_i32, %arg0 : i32, i32
  }
  func.func @transform_4(%arg0: i32) -> (i32, i32) {
    %c0_i32 = arith.constant 0 : i32
    %c0_i32_0 = arith.constant 0 : i32
    return %c0_i32, %arg0 : i32, i32
  }
}

</mosaic_0001>

<bundles_post_ra>
// kernel: conv_bn_relu.1
= control target key start
LH: loop header
LB: loop body
LE: loop exit
PB: predicated region body
PF: predicated region fallthrough
CT: control target
= control target key end

     0   :  { %s8488_s15 = smov 0   ;;  %s8490_s16 = smov 0   ;;  %s10599_s0 = inlined_call_operand.vmem [shape: bf16[224,2304], index: 0, kind: input, shape index: {}]   ;;  %s10600_s1 = inlined_call_operand.vmem [shape: bf16[2304,256], index: 1, kind: input, shape index: {}]   ;;  %s10601_s2 = inlined_call_operand.vmem [shape: f32[1,256], index: 2, kind: input, shape index: {}]   ;;  %s10602_s3 = inlined_call_operand.vmem [shape: f32[1,256], index: 3, kind: input, shape index: {}]   ;;  %s10603_s4 = inlined_call_operand.vmem [shape: bf16[224,256], index: 4, kind: output, shape index: {}]  }
   0x1   :  { %s8492_s17 = smov 0  }
   0x2 LB: > { %s8504_s18 = sadd.s32 4294967295, %s8461_s17   ;;  %s8507_s19 = sadd.s32 1, %s8461_s17   ;;  %s8461_s17 = sphi %s8492_s17, %s10607_s17   ;;  %s8457_s16 = sphi %s8490_s16, %s10606_s16   ;;  %s8453_s15 = sphi %s8488_s15, %s10605_s15  }
   0x3   : > { %s39_s20 = ssub.s32 %s8461_s17, %s8507_s19  ;;  %s42_s21 = sadd.s32 1, %s8457_s16 }
   0x4   : > { %p40_p0 = scmp.eq.s32.totalorder %s39_s20, 0  ;;  %p49_p1 = scmp.ne.s32.totalorder %s8457_s16, %s8453_s15 }
   0x5   : > { %p50_p2 = scmp.eq.s32.totalorder %s8461_s17, 0  ;;  %p131_p3 = scmp.eq.s32.totalorder %s8504_s18, 1 }
   0x6   : > { %s8517_s22 = scalar_select %p40_p0, %s8457_s16, %s42_s21  }
   0x7   : > { %p51_p4 = por %p50_p2, %p49_p1  ;;  %p8519_p5 = por %p131_p3, %p49_p1 }
   0x8   : > { %p6431_p6 = scmp.ge.s32.totalorder %s8461_s17, 2 }
   0xa   : > { %156 = sbr.rel (%p6431_p6) target bundleno = 213 (0xd5), region = 20 }
  0x11   : > { %159 = sbr.rel (!%p51_p4) target bundleno = 213 (0xd5), region = 24  ;;  %s161_s24 = sand.u32 (%p51_p4), 1, %s8457_s16  }
  0x12   : > { %s6432_s25 = sshll.u32 (%p51_p4), %s8461_s17, 2  ;;  %s7888_s26 = smul.u32 (%p51_p4), 1152, %s161_s24 }
  0x13   : > { %s8529_s29 = scalar_lea.vmem (%p51_p4), %s10600_s1, %s6432_s25 }
  0x14   : > { %v181_v0 = vld [vmem:[%s8529_s29] sm:$0xf] (%p51_p4)  ;;  %v183_v1 = vld [vmem:[%s8529_s29 + $0x8] sm:$0xf] (%p51_p4)  ;;  %v185_v2 = vld [vmem:[%s8529_s29 + $0x10] sm:$0xf] (%p51_p4) }
  0x15   : > { %v187_v3 = vld [vmem:[%s8529_s29 + $0x18] sm:$0xf] (%p51_p4)  ;;  %v189_v4 = vld [vmem:[%s8529_s29 + $0x20] sm:$0xf] (%p51_p4)  ;;  %s8536_s30 = scalar_lea.vmem (%p51_p4), [#allocation2], %s7888_s26 }
  0x16   : > { %182 = vst [vmem:[%s8536_s30] sm:$0xf] (%p51_p4), %v181_v0  ;;  %184 = vst [vmem:[%s8536_s30 + $0x4] sm:$0xf] (%p51_p4), %v183_v1  ;;  %v191_v5 = vld [vmem:[%s8529_s29 + $0x28] sm:$0xf] (%p51_p4) }
  0x17   : > { %186 = vst [vmem:[%s8536_s30 + $0x8] sm:$0xf] (%p51_p4), %v185_v2  ;;  %188 = vst [vmem:[%s8536_s30 + $0xc] sm:$0xf] (%p51_p4), %v187_v3  ;;  %v193_v6 = vld [vmem:[%s8529_s29 + $0x30] sm:$0xf] (%p51_p4) }
  0x18   : > { %190 = vst [vmem:[%s8536_s30 + $0x10] sm:$0xf] %v189_v4  ;;  %v195_v7 = vld [vmem:[%s8529_s29 + $0x38] sm:$0xf]  ;;  %192 = vst [vmem:[%s8536_s30 + $0x14] sm:$0xf] %v191_v5 }
  0x19   : > { %194 = vst [vmem:[%s8536_s30 + $0x18] sm:$0xf] %v193_v6  ;;  %196 = vst [vmem:[%s8536_s30 + $0x1c] sm:$0xf] %v195_v7  ;;  %v197_v8 = vld [vmem:[%s8529_s29 + $0x40] sm:$0xf] }
  0x1a   : > { %v199_v9 = vld [vmem:[%s8529_s29 + $0x48] sm:$0xf]  ;;  %v201_v10 = vld [vmem:[%s8529_s29 + $0x50] sm:$0xf]  ;;  %198 = vst [vmem:[%s8536_s30 + $0x20] sm:$0xf] %v197_v8 }
  0x1b   : > { %200 = vst [vmem:[%s8536_s30 + $0x24] sm:$0xf] %v199_v9  ;;  %202 = vst [vmem:[%s8536_s30 + $0x28] sm:$0xf] %v201_v10  ;;  %v203_v11 = vld [vmem:[%s8529_s29 + $0x58] sm:$0xf] }
  0x1c   : > { %v205_v12 = vld [vmem:[%s8529_s29 + $0x60] sm:$0xf]  ;;  %v207_v13 = vld [vmem:[%s8529_s29 + $0x68] sm:$0xf]  ;;  %204 = vst [vmem:[%s8536_s30 + $0x2c] sm:$0xf] %v203_v11 }
  0x1d   : > { %206 = vst [vmem:[%s8536_s30 + $0x30] sm:$0xf] %v205_v12  ;;  %208 = vst [vmem:[%s8536_s30 + $0x34] sm:$0xf] %v207_v13  ;;  %v209_v14 = vld [vmem:[%s8529_s29 + $0x70] sm:$0xf] }
  0x1e   : > { %v211_v15 = vld [vmem:[%s8529_s29 + $0x78] sm:$0xf]  ;;  %v213_v16 = vld [vmem:[%s8529_s29 + $0x80] sm:$0xf]  ;;  %210 = vst [vmem:[%s8536_s30 + $0x38] sm:$0xf] %v209_v14 }
  0x1f   : > { %212 = vst [vmem:[%s8536_s30 + $0x3c] sm:$0xf] %v211_v15  ;;  %214 = vst [vmem:[%s8536_s30 + $0x40] sm:$0xf] %v213_v16  ;;  %v215_v17 = vld [vmem:[%s8529_s29 + $0x88] sm:$0xf] }
  0x20   : > { %v217_v18 = vld [vmem:[%s8529_s29 + $0x90] sm:$0xf]  ;;  %v219_v19 = vld [vmem:[%s8529_s29 + $0x98] sm:$0xf]  ;;  %216 = vst [vmem:[%s8536_s30 + $0x44] sm:$0xf] %v215_v17 }
  0x21   : > { %218 = vst [vmem:[%s8536_s30 + $0x48] sm:$0xf] %v217_v18  ;;  %220 = vst [vmem:[%s8536_s30 + $0x4c] sm:$0xf] %v219_v19  ;;  %v221_v20 = vld [vmem:[%s8529_s29 + $0xa0] sm:$0xf] }
  0x22   : > { %v223_v21 = vld [vmem:[%s8529_s29 + $0xa8] sm:$0xf]  ;;  %v225_v22 = vld [vmem:[%s8529_s29 + $0xb0] sm:$0xf]  ;;  %222 = vst [vmem:[%s8536_s30 + $0x50] sm:$0xf] %v221_v20 }
  0x23   : > { %224 = vst [vmem:[%s8536_s30 + $0x54] sm:$0xf] %v223_v21  ;;  %226 = vst [vmem:[%s8536_s30 + $0x58] sm:$0xf] %v225_v22  ;;  %v227_v23 = vld [vmem:[%s8529_s29 + $0xb8] sm:$0xf] }
  0x24   : > { %v229_v24 = vld [vmem:[%s8529_s29 + $0xc0] sm:$0xf]  ;;  %v231_v25 = vld [vmem:[%s8529_s29 + $0xc8] sm:$0xf]  ;;  %228 = vst [vmem:[%s8536_s30 + $0x5c] sm:$0xf] %v227_v23 }
  0x25   : > { %230 = vst [vmem:[%s8536_s30 + $0x60] sm:$0xf] %v229_v24  ;;  %232 = vst [vmem:[%s8536_s30 + $0x64] sm:$0xf] %v231_v25  ;;  %v233_v26 = vld [vmem:[%s8529_s29 + $0xd0] sm:$0xf] }
  0x26   : > { %v235_v27 = vld [vmem:[%s8529_s29 + $0xd8] sm:$0xf]  ;;  %v237_v28 = vld [vmem:[%s8529_s29 + $0xe0] sm:$0xf]  ;;  %234 = vst [vmem:[%s8536_s30 + $0x68] sm:$0xf] %v233_v26 }
  0x27   : > { %236 = vst [vmem:[%s8536_s30 + $0x6c] sm:$0xf] %v235_v27  ;;  %238 = vst [vmem:[%s8536_s30 + $0x70] sm:$0xf] %v237_v28  ;;  %v239_v29 = vld [vmem:[%s8529_s29 + $0xe8] sm:$0xf] }
  0x28   : > { %v241_v30 = vld [vmem:[%s8529_s29 + $0xf0] sm:$0xf]  ;;  %v243_v31 = vld [vmem:[%s8529_s29 + $0xf8] sm:$0xf]  ;;  %240 = vst [vmem:[%s8536_s30 + $0x74] sm:$0xf] %v239_v29 }
  0x29   : > { %242 = vst [vmem:[%s8536_s30 + $0x78] sm:$0xf] %v241_v30  ;;  %244 = vst [vmem:[%s8536_s30 + $0x7c] sm:$0xf] %v243_v31  ;;  %v245_v32 = vld [vmem:[%s8529_s29 + $0x100] sm:$0xf] }
  0x2a   : > { %v247_v33 = vld [vmem:[%s8529_s29 + $0x108] sm:$0xf]  ;;  %v249_v34 = vld [vmem:[%s8529_s29 + $0x110] sm:$0xf]  ;;  %246 = vst [vmem:[%s8536_s30 + $0x80] sm:$0xf] %v245_v32 }
  0x2b   : > { %248 = vst [vmem:[%s8536_s30 + $0x84] sm:$0xf] %v247_v33  ;;  %250 = vst [vmem:[%s8536_s30 + $0x88] sm:$0xf] %v249_v34  ;;  %v251_v35 = vld [vmem:[%s8529_s29 + $0x118] sm:$0xf] }
  0x2c   : > { %v253_v36 = vld [vmem:[%s8529_s29 + $0x120] sm:$0xf]  ;;  %v255_v37 = vld [vmem:[%s8529_s29 + $0x128] sm:$0xf]  ;;  %252 = vst [vmem:[%s8536_s30 + $0x8c] sm:$0xf] %v251_v35 }
  0x2d   : > { %254 = vst [vmem:[%s8536_s30 + $0x90] sm:$0xf] %v253_v36  ;;  %256 = vst [vmem:[%s8536_s30 + $0x94] sm:$0xf] %v255_v37  ;;  %v257_v38 = vld [vmem:[%s8529_s29 + $0x130] sm:$0xf] }
  0x2e   : > { %v259_v39 = vld [vmem:[%s8529_s29 + $0x138] sm:$0xf]  ;;  %v261_v40 = vld [vmem:[%s8529_s29 + $0x140] sm:$0xf]  ;;  %258 = vst [vmem:[%s8536_s30 + $0x98] sm:$0xf] %v257_v38 }
  0x2f   : > { %260 = vst [vmem:[%s8536_s30 + $0x9c] sm:$0xf] %v259_v39  ;;  %262 = vst [vmem:[%s8536_s30 + $0xa0] sm:$0xf] %v261_v40  ;;  %v263_v41 = vld [vmem:[%s8529_s29 + $0x148] sm:$0xf] }
  0x30   : > { %v265_v42 = vld [vmem:[%s8529_s29 + $0x150] sm:$0xf]  ;;  %v267_v43 = vld [vmem:[%s8529_s29 + $0x158] sm:$0xf]  ;;  %264 = vst [vmem:[%s8536_s30 + $0xa4] sm:$0xf] %v263_v41 }
  0x31   : > { %266 = vst [vmem:[%s8536_s30 + $0xa8] sm:$0xf] %v265_v42  ;;  %268 = vst [vmem:[%s8536_s30 + $0xac] sm:$0xf] %v267_v43  ;;  %v269_v44 = vld [vmem:[%s8529_s29 + $0x160] sm:$0xf] }
  0x32   : > { %v271_v45 = vld [vmem:[%s8529_s29 + $0x168] sm:$0xf]  ;;  %v273_v46 = vld [vmem:[%s8529_s29 + $0x170] sm:$0xf]  ;;  %270 = vst [vmem:[%s8536_s30 + $0xb0] sm:$0xf] %v269_v44 }
  0x33   : > { %272 = vst [vmem:[%s8536_s30 + $0xb4] sm:$0xf] %v271_v45  ;;  %274 = vst [vmem:[%s8536_s30 + $0xb8] sm:$0xf] %v273_v46  ;;  %v275_v47 = vld [vmem:[%s8529_s29 + $0x178] sm:$0xf] }
  0x34   : > { %v277_v48 = vld [vmem:[%s8529_s29 + $0x180] sm:$0xf]  ;;  %v279_v49 = vld [vmem:[%s8529_s29 + $0x188] sm:$0xf]  ;;  %276 = vst [vmem:[%s8536_s30 + $0xbc] sm:$0xf] %v275_v47 }
  0x35   : > { %278 = vst [vmem:[%s8536_s30 + $0xc0] sm:$0xf] %v277_v48  ;;  %280 = vst [vmem:[%s8536_s30 + $0xc4] sm:$0xf] %v279_v49  ;;  %v281_v50 = vld [vmem:[%s8529_s29 + $0x190] sm:$0xf] }
  0x36   : > { %v283_v51 = vld [vmem:[%s8529_s29 + $0x198] sm:$0xf]  ;;  %v285_v52 = vld [vmem:[%s8529_s29 + $0x1a0] sm:$0xf]  ;;  %282 = vst [vmem:[%s8536_s30 + $0xc8] sm:$0xf] %v281_v50 }
  0x37   : > { %284 = vst [vmem:[%s8536_s30 + $0xcc] sm:$0xf] %v283_v51  ;;  %286 = vst [vmem:[%s8536_s30 + $0xd0] sm:$0xf] %v285_v52  ;;  %v287_v53 = vld [vmem:[%s8529_s29 + $0x1a8] sm:$0xf] }
  0x38   : > { %v289_v54 = vld [vmem:[%s8529_s29 + $0x1b0] sm:$0xf]  ;;  %v291_v55 = vld [vmem:[%s8529_s29 + $0x1b8] sm:$0xf]  ;;  %288 = vst [vmem:[%s8536_s30 + $0xd4] sm:$0xf] %v287_v53 }
  0x39   : > { %290 = vst [vmem:[%s8536_s30 + $0xd8] sm:$0xf] %v289_v54  ;;  %292 = vst [vmem:[%s8536_s30 + $0xdc] sm:$0xf] %v291_v55  ;;  %v293_v56 = vld [vmem:[%s8529_s29 + $0x1c0] sm:$0xf] }
  0x3a   : > { %v295_v57 = vld [vmem:[%s8529_s29 + $0x1c8] sm:$0xf]  ;;  %v297_v58 = vld [vmem:[%s8529_s29 + $0x1d0] sm:$0xf]  ;;  %294 = vst [vmem:[%s8536_s30 + $0xe0] sm:$0xf] %v293_v56 }
  0x3b   : > { %296 = vst [vmem:[%s8536_s30 + $0xe4] sm:$0xf] %v295_v57  ;;  %298 = vst [vmem:[%s8536_s30 + $0xe8] sm:$0xf] %v297_v58  ;;  %v299_v59 = vld [vmem:[%s8529_s29 + $0x1d8] sm:$0xf] }
  0x3c   : > { %v301_v60 = vld [vmem:[%s8529_s29 + $0x1e0] sm:$0xf]  ;;  %v303_v61 = vld [vmem:[%s8529_s29 + $0x1e8] sm:$0xf]  ;;  %300 = vst [vmem:[%s8536_s30 + $0xec] sm:$0xf] %v299_v59 }
  0x3d   : > { %302 = vst [vmem:[%s8536_s30 + $0xf0] sm:$0xf] %v301_v60  ;;  %304 = vst [vmem:[%s8536_s30 + $0xf4] sm:$0xf] %v303_v61  ;;  %v305_v62 = vld [vmem:[%s8529_s29 + $0x1f0] sm:$0xf] }
  0x3e   : > { %v307_v63 = vld [vmem:[%s8529_s29 + $0x1f8] sm:$0xf]  ;;  %v309_v0 = vld [vmem:[%s8529_s29 + $0x200] sm:$0xf]  ;;  %306 = vst [vmem:[%s8536_s30 + $0xf8] sm:$0xf] %v305_v62 }
  0x3f   : > { %308 = vst [vmem:[%s8536_s30 + $0xfc] sm:$0xf] %v307_v63  ;;  %310 = vst [vmem:[%s8536_s30 + $0x100] sm:$0xf] %v309_v0  ;;  %v311_v1 = vld [vmem:[%s8529_s29 + $0x208] sm:$0xf] }
  0x40   : > { %v313_v2 = vld [vmem:[%s8529_s29 + $0x210] sm:$0xf]  ;;  %v315_v3 = vld [vmem:[%s8529_s29 + $0x218] sm:$0xf]  ;;  %312 = vst [vmem:[%s8536_s30 + $0x104] sm:$0xf] %v311_v1 }
  0x41   : > { %314 = vst [vmem:[%s8536_s30 + $0x108] sm:$0xf] %v313_v2  ;;  %316 = vst [vmem:[%s8536_s30 + $0x10c] sm:$0xf] %v315_v3  ;;  %v317_v4 = vld [vmem:[%s8529_s29 + $0x220] sm:$0xf] }
  0x42   : > { %v319_v5 = vld [vmem:[%s8529_s29 + $0x228] sm:$0xf]  ;;  %v321_v6 = vld [vmem:[%s8529_s29 + $0x230] sm:$0xf]  ;;  %318 = vst [vmem:[%s8536_s30 + $0x110] sm:$0xf] %v317_v4 }
  0x43   : > { %320 = vst [vmem:[%s8536_s30 + $0x114] sm:$0xf] %v319_v5  ;;  %322 = vst [vmem:[%s8536_s30 + $0x118] sm:$0xf] %v321_v6  ;;  %v323_v7 = vld [vmem:[%s8529_s29 + $0x238] sm:$0xf] }
  0x44   : > { %v325_v8 = vld [vmem:[%s8529_s29 + $0x240] sm:$0xf]  ;;  %v327_v9 = vld [vmem:[%s8529_s29 + $0x248] sm:$0xf]  ;;  %324 = vst [vmem:[%s8536_s30 + $0x11c] sm:$0xf] %v323_v7 }
  0x45   : > { %326 = vst [vmem:[%s8536_s30 + $0x120] sm:$0xf] %v325_v8  ;;  %328 = vst [vmem:[%s8536_s30 + $0x124] sm:$0xf] %v327_v9  ;;  %v329_v10 = vld [vmem:[%s8529_s29 + $0x250] sm:$0xf] }
  0x46   : > { %v331_v11 = vld [vmem:[%s8529_s29 + $0x258] sm:$0xf]  ;;  %v333_v12 = vld [vmem:[%s8529_s29 + $0x260] sm:$0xf]  ;;  %330 = vst [vmem:[%s8536_s30 + $0x128] sm:$0xf] %v329_v10 }
  0x47   : > { %332 = vst [vmem:[%s8536_s30 + $0x12c] sm:$0xf] %v331_v11  ;;  %334 = vst [vmem:[%s8536_s30 + $0x130] sm:$0xf] %v333_v12  ;;  %v335_v13 = vld [vmem:[%s8529_s29 + $0x268] sm:$0xf] }
  0x48   : > { %v337_v14 = vld [vmem:[%s8529_s29 + $0x270] sm:$0xf]  ;;  %v339_v15 = vld [vmem:[%s8529_s29 + $0x278] sm:$0xf]  ;;  %336 = vst [vmem:[%s8536_s30 + $0x134] sm:$0xf] %v335_v13 }
  0x49   : > { %338 = vst [vmem:[%s8536_s30 + $0x138] sm:$0xf] %v337_v14  ;;  %340 = vst [vmem:[%s8536_s30 + $0x13c] sm:$0xf] %v339_v15  ;;  %v341_v16 = vld [vmem:[%s8529_s29 + $0x280] sm:$0xf] }
  0x4a   : > { %v343_v17 = vld [vmem:[%s8529_s29 + $0x288] sm:$0xf]  ;;  %v345_v18 = vld [vmem:[%s8529_s29 + $0x290] sm:$0xf]  ;;  %342 = vst [vmem:[%s8536_s30 + $0x140] sm:$0xf] %v341_v16 }
  0x4b   : > { %344 = vst [vmem:[%s8536_s30 + $0x144] sm:$0xf] %v343_v17  ;;  %346 = vst [vmem:[%s8536_s30 + $0x148] sm:$0xf] %v345_v18  ;;  %v347_v19 = vld [vmem:[%s8529_s29 + $0x298] sm:$0xf] }
  0x4c   : > { %v349_v20 = vld [vmem:[%s8529_s29 + $0x2a0] sm:$0xf]  ;;  %v351_v21 = vld [vmem:[%s8529_s29 + $0x2a8] sm:$0xf]  ;;  %348 = vst [vmem:[%s8536_s30 + $0x14c] sm:$0xf] %v347_v19 }
  0x4d   : > { %350 = vst [vmem:[%s8536_s30 + $0x150] sm:$0xf] %v349_v20  ;;  %352 = vst [vmem:[%s8536_s30 + $0x154] sm:$0xf] %v351_v21  ;;  %v353_v22 = vld [vmem:[%s8529_s29 + $0x2b0] sm:$0xf] }
  0x4e   : > { %v355_v23 = vld [vmem:[%s8529_s29 + $0x2b8] sm:$0xf]  ;;  %v357_v24 = vld [vmem:[%s8529_s29 + $0x2c0] sm:$0xf]  ;;  %354 = vst [vmem:[%s8536_s30 + $0x158] sm:$0xf] %v353_v22 }
  0x4f   : > { %356 = vst [vmem:[%s8536_s30 + $0x15c] sm:$0xf] %v355_v23  ;;  %358 = vst [vmem:[%s8536_s30 + $0x160] sm:$0xf] %v357_v24  ;;  %v359_v25 = vld [vmem:[%s8529_s29 + $0x2c8] sm:$0xf] }
  0x50   : > { %v361_v26 = vld [vmem:[%s8529_s29 + $0x2d0] sm:$0xf]  ;;  %v363_v27 = vld [vmem:[%s8529_s29 + $0x2d8] sm:$0xf]  ;;  %360 = vst [vmem:[%s8536_s30 + $0x164] sm:$0xf] %v359_v25 }
  0x51   : > { %362 = vst [vmem:[%s8536_s30 + $0x168] sm:$0xf] %v361_v26  ;;  %364 = vst [vmem:[%s8536_s30 + $0x16c] sm:$0xf] %v363_v27  ;;  %v365_v28 = vld [vmem:[%s8529_s29 + $0x2e0] sm:$0xf] }
  0x52   : > { %v367_v29 = vld [vmem:[%s8529_s29 + $0x2e8] sm:$0xf]  ;;  %v369_v30 = vld [vmem:[%s8529_s29 + $0x2f0] sm:$0xf]  ;;  %366 = vst [vmem:[%s8536_s30 + $0x170] sm:$0xf] %v365_v28 }
  0x53   : > { %368 = vst [vmem:[%s8536_s30 + $0x174] sm:$0xf] %v367_v29  ;;  %370 = vst [vmem:[%s8536_s30 + $0x178] sm:$0xf] %v369_v30  ;;  %v371_v31 = vld [vmem:[%s8529_s29 + $0x2f8] sm:$0xf] }
  0x54   : > { %v373_v32 = vld [vmem:[%s8529_s29 + $0x300] sm:$0xf]  ;;  %v375_v33 = vld [vmem:[%s8529_s29 + $0x308] sm:$0xf]  ;;  %372 = vst [vmem:[%s8536_s30 + $0x17c] sm:$0xf] %v371_v31 }
  0x55   : > { %374 = vst [vmem:[%s8536_s30 + $0x180] sm:$0xf] %v373_v32  ;;  %376 = vst [vmem:[%s8536_s30 + $0x184] sm:$0xf] %v375_v33  ;;  %v377_v34 = vld [vmem:[%s8529_s29 + $0x310] sm:$0xf] }
  0x56   : > { %v379_v35 = vld [vmem:[%s8529_s29 + $0x318] sm:$0xf]  ;;  %v381_v36 = vld [vmem:[%s8529_s29 + $0x320] sm:$0xf]  ;;  %378 = vst [vmem:[%s8536_s30 + $0x188] sm:$0xf] %v377_v34 }
  0x57   : > { %380 = vst [vmem:[%s8536_s30 + $0x18c] sm:$0xf] %v379_v35  ;;  %382 = vst [vmem:[%s8536_s30 + $0x190] sm:$0xf] %v381_v36  ;;  %v383_v37 = vld [vmem:[%s8529_s29 + $0x328] sm:$0xf] }
  0x58   : > { %v385_v38 = vld [vmem:[%s8529_s29 + $0x330] sm:$0xf]  ;;  %v387_v39 = vld [vmem:[%s8529_s29 + $0x338] sm:$0xf]  ;;  %384 = vst [vmem:[%s8536_s30 + $0x194] sm:$0xf] %v383_v37 }
  0x59   : > { %386 = vst [vmem:[%s8536_s30 + $0x198] sm:$0xf] %v385_v38  ;;  %388 = vst [vmem:[%s8536_s30 + $0x19c] sm:$0xf] %v387_v39  ;;  %v389_v40 = vld [vmem:[%s8529_s29 + $0x340] sm:$0xf] }
  0x5a   : > { %v391_v41 = vld [vmem:[%s8529_s29 + $0x348] sm:$0xf]  ;;  %v393_v42 = vld [vmem:[%s8529_s29 + $0x350] sm:$0xf]  ;;  %390 = vst [vmem:[%s8536_s30 + $0x1a0] sm:$0xf] %v389_v40 }
  0x5b   : > { %392 = vst [vmem:[%s8536_s30 + $0x1a4] sm:$0xf] %v391_v41  ;;  %394 = vst [vmem:[%s8536_s30 + $0x1a8] sm:$0xf] %v393_v42  ;;  %v395_v43 = vld [vmem:[%s8529_s29 + $0x358] sm:$0xf] }
  0x5c   : > { %v397_v44 = vld [vmem:[%s8529_s29 + $0x360] sm:$0xf]  ;;  %v399_v45 = vld [vmem:[%s8529_s29 + $0x368] sm:$0xf]  ;;  %396 = vst [vmem:[%s8536_s30 + $0x1ac] sm:$0xf] %v395_v43 }
  0x5d   : > { %398 = vst [vmem:[%s8536_s30 + $0x1b0] sm:$0xf] %v397_v44  ;;  %400 = vst [vmem:[%s8536_s30 + $0x1b4] sm:$0xf] %v399_v45  ;;  %v401_v46 = vld [vmem:[%s8529_s29 + $0x370] sm:$0xf] }
  0x5e   : > { %v403_v47 = vld [vmem:[%s8529_s29 + $0x378] sm:$0xf]  ;;  %v405_v48 = vld [vmem:[%s8529_s29 + $0x380] sm:$0xf]  ;;  %402 = vst [vmem:[%s8536_s30 + $0x1b8] sm:$0xf] %v401_v46 }
  0x5f   : > { %404 = vst [vmem:[%s8536_s30 + $0x1bc] sm:$0xf] %v403_v47  ;;  %406 = vst [vmem:[%s8536_s30 + $0x1c0] sm:$0xf] %v405_v48  ;;  %v407_v49 = vld [vmem:[%s8529_s29 + $0x388] sm:$0xf] }
  0x60   : > { %v409_v50 = vld [vmem:[%s8529_s29 + $0x390] sm:$0xf]  ;;  %v411_v51 = vld [vmem:[%s8529_s29 + $0x398] sm:$0xf]  ;;  %408 = vst [vmem:[%s8536_s30 + $0x1c4] sm:$0xf] %v407_v49 }
  0x61   : > { %410 = vst [vmem:[%s8536_s30 + $0x1c8] sm:$0xf] %v409_v50  ;;  %412 = vst [vmem:[%s8536_s30 + $0x1cc] sm:$0xf] %v411_v51  ;;  %v413_v52 = vld [vmem:[%s8529_s29 + $0x3a0] sm:$0xf] }
  0x62   : > { %v415_v53 = vld [vmem:[%s8529_s29 + $0x3a8] sm:$0xf]  ;;  %v417_v54 = vld [vmem:[%s8529_s29 + $0x3b0] sm:$0xf]  ;;  %414 = vst [vmem:[%s8536_s30 + $0x1d0] sm:$0xf] %v413_v52 }
  0x63   : > { %416 = vst [vmem:[%s8536_s30 + $0x1d4] sm:$0xf] %v415_v53  ;;  %418 = vst [vmem:[%s8536_s30 + $0x1d8] sm:$0xf] %v417_v54  ;;  %v419_v55 = vld [vmem:[%s8529_s29 + $0x3b8] sm:$0xf] }
  0x64   : > { %v421_v56 = vld [vmem:[%s8529_s29 + $0x3c0] sm:$0xf]  ;;  %v423_v57 = vld [vmem:[%s8529_s29 + $0x3c8] sm:$0xf]  ;;  %420 = vst [vmem:[%s8536_s30 + $0x1dc] sm:$0xf] %v419_v55 }
  0x65   : > { %422 = vst [vmem:[%s8536_s30 + $0x1e0] sm:$0xf] %v421_v56  ;;  %424 = vst [vmem:[%s8536_s30 + $0x1e4] sm:$0xf] %v423_v57  ;;  %v425_v58 = vld [vmem:[%s8529_s29 + $0x3d0] sm:$0xf] }
  0x66   : > { %v427_v59 = vld [vmem:[%s8529_s29 + $0x3d8] sm:$0xf]  ;;  %v429_v60 = vld [vmem:[%s8529_s29 + $0x3e0] sm:$0xf]  ;;  %426 = vst [vmem:[%s8536_s30 + $0x1e8] sm:$0xf] %v425_v58 }
  0x67   : > { %428 = vst [vmem:[%s8536_s30 + $0x1ec] sm:$0xf] %v427_v59  ;;  %430 = vst [vmem:[%s8536_s30 + $0x1f0] sm:$0xf] %v429_v60  ;;  %v431_v61 = vld [vmem:[%s8529_s29 + $0x3e8] sm:$0xf] }
  0x68   : > { %v433_v62 = vld [vmem:[%s8529_s29 + $0x3f0] sm:$0xf]  ;;  %v435_v63 = vld [vmem:[%s8529_s29 + $0x3f8] sm:$0xf]  ;;  %432 = vst [vmem:[%s8536_s30 + $0x1f4] sm:$0xf] %v431_v61 }
  0x69   : > { %434 = vst [vmem:[%s8536_s30 + $0x1f8] sm:$0xf] %v433_v62  ;;  %436 = vst [vmem:[%s8536_s30 + $0x1fc] sm:$0xf] %v435_v63  ;;  %v437_v0 = vld [vmem:[%s8529_s29 + $0x400] sm:$0xf] }
  0x6a   : > { %v439_v1 = vld [vmem:[%s8529_s29 + $0x408] sm:$0xf]  ;;  %v441_v2 = vld [vmem:[%s8529_s29 + $0x410] sm:$0xf]  ;;  %438 = vst [vmem:[%s8536_s30 + $0x200] sm:$0xf] %v437_v0 }
  0x6b   : > { %440 = vst [vmem:[%s8536_s30 + $0x204] sm:$0xf] %v439_v1  ;;  %442 = vst [vmem:[%s8536_s30 + $0x208] sm:$0xf] %v441_v2  ;;  %v443_v3 = vld [vmem:[%s8529_s29 + $0x418] sm:$0xf] }
  0x6c   : > { %v445_v4 = vld [vmem:[%s8529_s29 + $0x420] sm:$0xf]  ;;  %v447_v5 = vld [vmem:[%s8529_s29 + $0x428] sm:$0xf]  ;;  %444 = vst [vmem:[%s8536_s30 + $0x20c] sm:$0xf] %v443_v3 }
  0x6d   : > { %446 = vst [vmem:[%s8536_s30 + $0x210] sm:$0xf] %v445_v4  ;;  %448 = vst [vmem:[%s8536_s30 + $0x214] sm:$0xf] %v447_v5  ;;  %v449_v6 = vld [vmem:[%s8529_s29 + $0x430] sm:$0xf] }
  0x6e   : > { %v451_v7 = vld [vmem:[%s8529_s29 + $0x438] sm:$0xf]  ;;  %v453_v8 = vld [vmem:[%s8529_s29 + $0x440] sm:$0xf]  ;;  %450 = vst [vmem:[%s8536_s30 + $0x218] sm:$0xf] %v449_v6 }
  0x6f   : > { %452 = vst [vmem:[%s8536_s30 + $0x21c] sm:$0xf] %v451_v7  ;;  %454 = vst [vmem:[%s8536_s30 + $0x220] sm:$0xf] %v453_v8  ;;  %v455_v9 = vld [vmem:[%s8529_s29 + $0x448] sm:$0xf] }
  0x70   : > { %v457_v10 = vld [vmem:[%s8529_s29 + $0x450] sm:$0xf]  ;;  %v459_v11 = vld [vmem:[%s8529_s29 + $0x458] sm:$0xf]  ;;  %456 = vst [vmem:[%s8536_s30 + $0x224] sm:$0xf] %v455_v9 }
  0x71   : > { %458 = vst [vmem:[%s8536_s30 + $0x228] sm:$0xf] %v457_v10  ;;  %460 = vst [vmem:[%s8536_s30 + $0x22c] sm:$0xf] %v459_v11  ;;  %v461_v12 = vld [vmem:[%s8529_s29 + $0x460] sm:$0xf] }
  0x72   : > { %v463_v13 = vld [vmem:[%s8529_s29 + $0x468] sm:$0xf]  ;;  %v465_v14 = vld [vmem:[%s8529_s29 + $0x470] sm:$0xf]  ;;  %462 = vst [vmem:[%s8536_s30 + $0x230] sm:$0xf] %v461_v12 }
  0x73   : > { %464 = vst [vmem:[%s8536_s30 + $0x234] sm:$0xf] %v463_v13  ;;  %466 = vst [vmem:[%s8536_s30 + $0x238] sm:$0xf] %v465_v14  ;;  %v467_v15 = vld [vmem:[%s8529_s29 + $0x478] sm:$0xf] }
  0x74   : > { %v469_v16 = vld [vmem:[%s8529_s29 + $0x480] sm:$0xf]  ;;  %v471_v17 = vld [vmem:[%s8529_s29 + $0x488] sm:$0xf]  ;;  %468 = vst [vmem:[%s8536_s30 + $0x23c] sm:$0xf] %v467_v15 }
  0x75   : > { %470 = vst [vmem:[%s8536_s30 + $0x240] sm:$0xf] %v469_v16  ;;  %472 = vst [vmem:[%s8536_s30 + $0x244] sm:$0xf] %v471_v17  ;;  %v473_v18 = vld [vmem:[%s8529_s29 + $0x490] sm:$0xf] }
  0x76   : > { %v475_v19 = vld [vmem:[%s8529_s29 + $0x498] sm:$0xf]  ;;  %v477_v20 = vld [vmem:[%s8529_s29 + $0x4a0] sm:$0xf]  ;;  %474 = vst [vmem:[%s8536_s30 + $0x248] sm:$0xf] %v473_v18 }
  0x77   : > { %476 = vst [vmem:[%s8536_s30 + $0x24c] sm:$0xf] %v475_v19  ;;  %478 = vst [vmem:[%s8536_s30 + $0x250] sm:$0xf] %v477_v20  ;;  %v479_v21 = vld [vmem:[%s8529_s29 + $0x4a8] sm:$0xf] }
  0x78   : > { %v481_v22 = vld [vmem:[%s8529_s29 + $0x4b0] sm:$0xf]  ;;  %v483_v23 = vld [vmem:[%s8529_s29 + $0x4b8] sm:$0xf]  ;;  %480 = vst [vmem:[%s8536_s30 + $0x254] sm:$0xf] %v479_v21 }
  0x79   : > { %482 = vst [vmem:[%s8536_s30 + $0x258] sm:$0xf] %v481_v22  ;;  %484 = vst [vmem:[%s8536_s30 + $0x25c] sm:$0xf] %v483_v23  ;;  %v485_v24 = vld [vmem:[%s8529_s29 + $0x4c0] sm:$0xf] }
  0x7a   : > { %v487_v25 = vld [vmem:[%s8529_s29 + $0x4c8] sm:$0xf]  ;;  %v489_v26 = vld [vmem:[%s8529_s29 + $0x4d0] sm:$0xf]  ;;  %486 = vst [vmem:[%s8536_s30 + $0x260] sm:$0xf] %v485_v24 }
  0x7b   : > { %488 = vst [vmem:[%s8536_s30 + $0x264] sm:$0xf] %v487_v25  ;;  %490 = vst [vmem:[%s8536_s30 + $0x268] sm:$0xf] %v489_v26  ;;  %v491_v27 = vld [vmem:[%s8529_s29 + $0x4d8] sm:$0xf] }
  0x7c   : > { %v493_v28 = vld [vmem:[%s8529_s29 + $0x4e0] sm:$0xf]  ;;  %v495_v29 = vld [vmem:[%s8529_s29 + $0x4e8] sm:$0xf]  ;;  %492 = vst [vmem:[%s8536_s30 + $0x26c] sm:$0xf] %v491_v27 }
  0x7d   : > { %494 = vst [vmem:[%s8536_s30 + $0x270] sm:$0xf] %v493_v28  ;;  %496 = vst [vmem:[%s8536_s30 + $0x274] sm:$0xf] %v495_v29  ;;  %v497_v30 = vld [vmem:[%s8529_s29 + $0x4f0] sm:$0xf] }
  0x7e   : > { %v499_v31 = vld [vmem:[%s8529_s29 + $0x4f8] sm:$0xf]  ;;  %v501_v32 = vld [vmem:[%s8529_s29 + $0x500] sm:$0xf]  ;;  %498 = vst [vmem:[%s8536_s30 + $0x278] sm:$0xf] %v497_v30 }
  0x7f   : > { %500 = vst [vmem:[%s8536_s30 + $0x27c] sm:$0xf] %v499_v31  ;;  %502 = vst [vmem:[%s8536_s30 + $0x280] sm:$0xf] %v501_v32  ;;  %v503_v33 = vld [vmem:[%s8529_s29 + $0x508] sm:$0xf] }
  0x80   : > { %v505_v34 = vld [vmem:[%s8529_s29 + $0x510] sm:$0xf]  ;;  %v507_v35 = vld [vmem:[%s8529_s29 + $0x518] sm:$0xf]  ;;  %504 = vst [vmem:[%s8536_s30 + $0x284] sm:$0xf] %v503_v33 }
  0x81   : > { %506 = vst [vmem:[%s8536_s30 + $0x288] sm:$0xf] %v505_v34  ;;  %508 = vst [vmem:[%s8536_s30 + $0x28c] sm:$0xf] %v507_v35  ;;  %v509_v36 = vld [vmem:[%s8529_s29 + $0x520] sm:$0xf] }
  0x82   : > { %v511_v37 = vld [vmem:[%s8529_s29 + $0x528] sm:$0xf]  ;;  %v513_v38 = vld [vmem:[%s8529_s29 + $0x530] sm:$0xf]  ;;  %510 = vst [vmem:[%s8536_s30 + $0x290] sm:$0xf] %v509_v36 }
  0x83   : > { %512 = vst [vmem:[%s8536_s30 + $0x294] sm:$0xf] %v511_v37  ;;  %514 = vst [vmem:[%s8536_s30 + $0x298] sm:$0xf] %v513_v38  ;;  %v515_v39 = vld [vmem:[%s8529_s29 + $0x538] sm:$0xf] }
  0x84   : > { %v517_v40 = vld [vmem:[%s8529_s29 + $0x540] sm:$0xf]  ;;  %v519_v41 = vld [vmem:[%s8529_s29 + $0x548] sm:$0xf]  ;;  %516 = vst [vmem:[%s8536_s30 + $0x29c] sm:$0xf] %v515_v39 }
  0x85   : > { %518 = vst [vmem:[%s8536_s30 + $0x2a0] sm:$0xf] %v517_v40  ;;  %520 = vst [vmem:[%s8536_s30 + $0x2a4] sm:$0xf] %v519_v41  ;;  %v521_v42 = vld [vmem:[%s8529_s29 + $0x550] sm:$0xf] }
  0x86   : > { %v523_v43 = vld [vmem:[%s8529_s29 + $0x558] sm:$0xf]  ;;  %v525_v44 = vld [vmem:[%s8529_s29 + $0x560] sm:$0xf]  ;;  %522 = vst [vmem:[%s8536_s30 + $0x2a8] sm:$0xf] %v521_v42 }
  0x87   : > { %524 = vst [vmem:[%s8536_s30 + $0x2ac] sm:$0xf] %v523_v43  ;;  %526 = vst [vmem:[%s8536_s30 + $0x2b0] sm:$0xf] %v525_v44  ;;  %v527_v45 = vld [vmem:[%s8529_s29 + $0x568] sm:$0xf] }
  0x88   : > { %v529_v46 = vld [vmem:[%s8529_s29 + $0x570] sm:$0xf]  ;;  %v531_v47 = vld [vmem:[%s8529_s29 + $0x578] sm:$0xf]  ;;  %528 = vst [vmem:[%s8536_s30 + $0x2b4] sm:$0xf] %v527_v45 }
  0x89   : > { %530 = vst [vmem:[%s8536_s30 + $0x2b8] sm:$0xf] %v529_v46  ;;  %532 = vst [vmem:[%s8536_s30 + $0x2bc] sm:$0xf] %v531_v47  ;;  %v533_v48 = vld [vmem:[%s8529_s29 + $0x580] sm:$0xf] }
  0x8a   : > { %v535_v49 = vld [vmem:[%s8529_s29 + $0x588] sm:$0xf]  ;;  %v537_v50 = vld [vmem:[%s8529_s29 + $0x590] sm:$0xf]  ;;  %534 = vst [vmem:[%s8536_s30 + $0x2c0] sm:$0xf] %v533_v48 }
  0x8b   : > { %536 = vst [vmem:[%s8536_s30 + $0x2c4] sm:$0xf] %v535_v49  ;;  %538 = vst [vmem:[%s8536_s30 + $0x2c8] sm:$0xf] %v537_v50  ;;  %v539_v51 = vld [vmem:[%s8529_s29 + $0x598] sm:$0xf] }
  0x8c   : > { %v541_v52 = vld [vmem:[%s8529_s29 + $0x5a0] sm:$0xf]  ;;  %v543_v53 = vld [vmem:[%s8529_s29 + $0x5a8] sm:$0xf]  ;;  %540 = vst [vmem:[%s8536_s30 + $0x2cc] sm:$0xf] %v539_v51 }
  0x8d   : > { %542 = vst [vmem:[%s8536_s30 + $0x2d0] sm:$0xf] %v541_v52  ;;  %544 = vst [vmem:[%s8536_s30 + $0x2d4] sm:$0xf] %v543_v53  ;;  %v545_v54 = vld [vmem:[%s8529_s29 + $0x5b0] sm:$0xf] }
  0x8e   : > { %v547_v55 = vld [vmem:[%s8529_s29 + $0x5b8] sm:$0xf]  ;;  %v549_v56 = vld [vmem:[%s8529_s29 + $0x5c0] sm:$0xf]  ;;  %546 = vst [vmem:[%s8536_s30 + $0x2d8] sm:$0xf] %v545_v54 }
  0x8f   : > { %548 = vst [vmem:[%s8536_s30 + $0x2dc] sm:$0xf] %v547_v55  ;;  %550 = vst [vmem:[%s8536_s30 + $0x2e0] sm:$0xf] %v549_v56  ;;  %v551_v57 = vld [vmem:[%s8529_s29 + $0x5c8] sm:$0xf] }
  0x90   : > { %v553_v58 = vld [vmem:[%s8529_s29 + $0x5d0] sm:$0xf]  ;;  %v555_v59 = vld [vmem:[%s8529_s29 + $0x5d8] sm:$0xf]  ;;  %552 = vst [vmem:[%s8536_s30 + $0x2e4] sm:$0xf] %v551_v57 }
  0x91   : > { %554 = vst [vmem:[%s8536_s30 + $0x2e8] sm:$0xf] %v553_v58  ;;  %556 = vst [vmem:[%s8536_s30 + $0x2ec] sm:$0xf] %v555_v59  ;;  %v557_v60 = vld [vmem:[%s8529_s29 + $0x5e0] sm:$0xf] }
  0x92   : > { %v559_v61 = vld [vmem:[%s8529_s29 + $0x5e8] sm:$0xf]  ;;  %v561_v62 = vld [vmem:[%s8529_s29 + $0x5f0] sm:$0xf]  ;;  %558 = vst [vmem:[%s8536_s30 + $0x2f0] sm:$0xf] %v557_v60 }
  0x93   : > { %560 = vst [vmem:[%s8536_s30 + $0x2f4] sm:$0xf] %v559_v61  ;;  %562 = vst [vmem:[%s8536_s30 + $0x2f8] sm:$0xf] %v561_v62  ;;  %v563_v63 = vld [vmem:[%s8529_s29 + $0x5f8] sm:$0xf] }
  0x94   : > { %v565_v0 = vld [vmem:[%s8529_s29 + $0x600] sm:$0xf]  ;;  %v567_v1 = vld [vmem:[%s8529_s29 + $0x608] sm:$0xf]  ;;  %564 = vst [vmem:[%s8536_s30 + $0x2fc] sm:$0xf] %v563_v63 }
  0x95   : > { %566 = vst [vmem:[%s8536_s30 + $0x300] sm:$0xf] %v565_v0  ;;  %568 = vst [vmem:[%s8536_s30 + $0x304] sm:$0xf] %v567_v1  ;;  %v569_v2 = vld [vmem:[%s8529_s29 + $0x610] sm:$0xf] }
  0x96   : > { %v571_v3 = vld [vmem:[%s8529_s29 + $0x618] sm:$0xf]  ;;  %v573_v4 = vld [vmem:[%s8529_s29 + $0x620] sm:$0xf]  ;;  %570 = vst [vmem:[%s8536_s30 + $0x308] sm:$0xf] %v569_v2 }
  0x97   : > { %572 = vst [vmem:[%s8536_s30 + $0x30c] sm:$0xf] %v571_v3  ;;  %574 = vst [vmem:[%s8536_s30 + $0x310] sm:$0xf] %v573_v4  ;;  %v575_v5 = vld [vmem:[%s8529_s29 + $0x628] sm:$0xf] }
  0x98   : > { %v577_v6 = vld [vmem:[%s8529_s29 + $0x630] sm:$0xf]  ;;  %v579_v7 = vld [vmem:[%s8529_s29 + $0x638] sm:$0xf]  ;;  %576 = vst [vmem:[%s8536_s30 + $0x314] sm:$0xf] %v575_v5 }
  0x99   : > { %578 = vst [vmem:[%s8536_s30 + $0x318] sm:$0xf] %v577_v6  ;;  %580 = vst [vmem:[%s8536_s30 + $0x31c] sm:$0xf] %v579_v7  ;;  %v581_v8 = vld [vmem:[%s8529_s29 + $0x640] sm:$0xf] }
  0x9a   : > { %v583_v9 = vld [vmem:[%s8529_s29 + $0x648] sm:$0xf]  ;;  %v585_v10 = vld [vmem:[%s8529_s29 + $0x650] sm:$0xf]  ;;  %582 = vst [vmem:[%s8536_s30 + $0x320] sm:$0xf] %v581_v8 }
  0x9b   : > { %584 = vst [vmem:[%s8536_s30 + $0x324] sm:$0xf] %v583_v9  ;;  %586 = vst [vmem:[%s8536_s30 + $0x328] sm:$0xf] %v585_v10  ;;  %v587_v11 = vld [vmem:[%s8529_s29 + $0x658] sm:$0xf] }
  0x9c   : > { %v589_v12 = vld [vmem:[%s8529_s29 + $0x660] sm:$0xf]  ;;  %v591_v13 = vld [vmem:[%s8529_s29 + $0x668] sm:$0xf]  ;;  %588 = vst [vmem:[%s8536_s30 + $0x32c] sm:$0xf] %v587_v11 }
  0x9d   : > { %590 = vst [vmem:[%s8536_s30 + $0x330] sm:$0xf] %v589_v12  ;;  %592 = vst [vmem:[%s8536_s30 + $0x334] sm:$0xf] %v591_v13  ;;  %v593_v14 = vld [vmem:[%s8529_s29 + $0x670] sm:$0xf] }
  0x9e   : > { %v595_v15 = vld [vmem:[%s8529_s29 + $0x678] sm:$0xf]  ;;  %v597_v16 = vld [vmem:[%s8529_s29 + $0x680] sm:$0xf]  ;;  %594 = vst [vmem:[%s8536_s30 + $0x338] sm:$0xf] %v593_v14 }
  0x9f   : > { %596 = vst [vmem:[%s8536_s30 + $0x33c] sm:$0xf] %v595_v15  ;;  %598 = vst [vmem:[%s8536_s30 + $0x340] sm:$0xf] %v597_v16  ;;  %v599_v17 = vld [vmem:[%s8529_s29 + $0x688] sm:$0xf] }
  0xa0   : > { %v601_v18 = vld [vmem:[%s8529_s29 + $0x690] sm:$0xf]  ;;  %v603_v19 = vld [vmem:[%s8529_s29 + $0x698] sm:$0xf]  ;;  %600 = vst [vmem:[%s8536_s30 + $0x344] sm:$0xf] %v599_v17 }
  0xa1   : > { %602 = vst [vmem:[%s8536_s30 + $0x348] sm:$0xf] %v601_v18  ;;  %604 = vst [vmem:[%s8536_s30 + $0x34c] sm:$0xf] %v603_v19  ;;  %v605_v20 = vld [vmem:[%s8529_s29 + $0x6a0] sm:$0xf] }
  0xa2   : > { %v607_v21 = vld [vmem:[%s8529_s29 + $0x6a8] sm:$0xf]  ;;  %v609_v22 = vld [vmem:[%s8529_s29 + $0x6b0] sm:$0xf]  ;;  %606 = vst [vmem:[%s8536_s30 + $0x350] sm:$0xf] %v605_v20 }
  0xa3   : > { %608 = vst [vmem:[%s8536_s30 + $0x354] sm:$0xf] %v607_v21  ;;  %610 = vst [vmem:[%s8536_s30 + $0x358] sm:$0xf] %v609_v22  ;;  %v611_v23 = vld [vmem:[%s8529_s29 + $0x6b8] sm:$0xf] }
  0xa4   : > { %v613_v24 = vld [vmem:[%s8529_s29 + $0x6c0] sm:$0xf]  ;;  %v615_v25 = vld [vmem:[%s8529_s29 + $0x6c8] sm:$0xf]  ;;  %612 = vst [vmem:[%s8536_s30 + $0x35c] sm:$0xf] %v611_v23 }
  0xa5   : > { %614 = vst [vmem:[%s8536_s30 + $0x360] sm:$0xf] %v613_v24  ;;  %616 = vst [vmem:[%s8536_s30 + $0x364] sm:$0xf] %v615_v25  ;;  %v617_v26 = vld [vmem:[%s8529_s29 + $0x6d0] sm:$0xf] }
  0xa6   : > { %v619_v27 = vld [vmem:[%s8529_s29 + $0x6d8] sm:$0xf]  ;;  %v621_v28 = vld [vmem:[%s8529_s29 + $0x6e0] sm:$0xf]  ;;  %618 = vst [vmem:[%s8536_s30 + $0x368] sm:$0xf] %v617_v26 }
  0xa7   : > { %620 = vst [vmem:[%s8536_s30 + $0x36c] sm:$0xf] %v619_v27  ;;  %622 = vst [vmem:[%s8536_s30 + $0x370] sm:$0xf] %v621_v28  ;;  %v623_v29 = vld [vmem:[%s8529_s29 + $0x6e8] sm:$0xf] }
  0xa8   : > { %v625_v30 = vld [vmem:[%s8529_s29 + $0x6f0] sm:$0xf]  ;;  %v627_v31 = vld [vmem:[%s8529_s29 + $0x6f8] sm:$0xf]  ;;  %624 = vst [vmem:[%s8536_s30 + $0x374] sm:$0xf] %v623_v29 }
  0xa9   : > { %626 = vst [vmem:[%s8536_s30 + $0x378] sm:$0xf] %v625_v30  ;;  %628 = vst [vmem:[%s8536_s30 + $0x37c] sm:$0xf] %v627_v31  ;;  %v629_v32 = vld [vmem:[%s8529_s29 + $0x700] sm:$0xf] }
  0xaa   : > { %v631_v33 = vld [vmem:[%s8529_s29 + $0x708] sm:$0xf]  ;;  %v633_v34 = vld [vmem:[%s8529_s29 + $0x710] sm:$0xf]  ;;  %630 = vst [vmem:[%s8536_s30 + $0x380] sm:$0xf] %v629_v32 }
  0xab   : > { %632 = vst [vmem:[%s8536_s30 + $0x384] sm:$0xf] %v631_v33  ;;  %634 = vst [vmem:[%s8536_s30 + $0x388] sm:$0xf] %v633_v34  ;;  %v635_v35 = vld [vmem:[%s8529_s29 + $0x718] sm:$0xf] }
  0xac   : > { %v637_v36 = vld [vmem:[%s8529_s29 + $0x720] sm:$0xf]  ;;  %v639_v37 = vld [vmem:[%s8529_s29 + $0x728] sm:$0xf]  ;;  %636 = vst [vmem:[%s8536_s30 + $0x38c] sm:$0xf] %v635_v35 }
  0xad   : > { %638 = vst [vmem:[%s8536_s30 + $0x390] sm:$0xf] %v637_v36  ;;  %640 = vst [vmem:[%s8536_s30 + $0x394] sm:$0xf] %v639_v37  ;;  %v641_v38 = vld [vmem:[%s8529_s29 + $0x730] sm:$0xf] }
  0xae   : > { %v643_v39 = vld [vmem:[%s8529_s29 + $0x738] sm:$0xf]  ;;  %v645_v40 = vld [vmem:[%s8529_s29 + $0x740] sm:$0xf]  ;;  %642 = vst [vmem:[%s8536_s30 + $0x398] sm:$0xf] %v641_v38 }
  0xaf   : > { %644 = vst [vmem:[%s8536_s30 + $0x39c] sm:$0xf] %v643_v39  ;;  %646 = vst [vmem:[%s8536_s30 + $0x3a0] sm:$0xf] %v645_v40  ;;  %v647_v41 = vld [vmem:[%s8529_s29 + $0x748] sm:$0xf] }
  0xb0   : > { %v649_v42 = vld [vmem:[%s8529_s29 + $0x750] sm:$0xf]  ;;  %v651_v43 = vld [vmem:[%s8529_s29 + $0x758] sm:$0xf]  ;;  %648 = vst [vmem:[%s8536_s30 + $0x3a4] sm:$0xf] %v647_v41 }
  0xb1   : > { %650 = vst [vmem:[%s8536_s30 + $0x3a8] sm:$0xf] %v649_v42  ;;  %652 = vst [vmem:[%s8536_s30 + $0x3ac] sm:$0xf] %v651_v43  ;;  %v653_v44 = vld [vmem:[%s8529_s29 + $0x760] sm:$0xf] }
  0xb2   : > { %v655_v45 = vld [vmem:[%s8529_s29 + $0x768] sm:$0xf]  ;;  %v657_v46 = vld [vmem:[%s8529_s29 + $0x770] sm:$0xf]  ;;  %654 = vst [vmem:[%s8536_s30 + $0x3b0] sm:$0xf] %v653_v44 }
  0xb3   : > { %656 = vst [vmem:[%s8536_s30 + $0x3b4] sm:$0xf] %v655_v45  ;;  %658 = vst [vmem:[%s8536_s30 + $0x3b8] sm:$0xf] %v657_v46  ;;  %v659_v47 = vld [vmem:[%s8529_s29 + $0x778] sm:$0xf] }
  0xb4   : > { %v661_v48 = vld [vmem:[%s8529_s29 + $0x780] sm:$0xf]  ;;  %v663_v49 = vld [vmem:[%s8529_s29 + $0x788] sm:$0xf]  ;;  %660 = vst [vmem:[%s8536_s30 + $0x3bc] sm:$0xf] %v659_v47 }
  0xb5   : > { %662 = vst [vmem:[%s8536_s30 + $0x3c0] sm:$0xf] %v661_v48  ;;  %664 = vst [vmem:[%s8536_s30 + $0x3c4] sm:$0xf] %v663_v49  ;;  %v665_v50 = vld [vmem:[%s8529_s29 + $0x790] sm:$0xf] }
  0xb6   : > { %v667_v51 = vld [vmem:[%s8529_s29 + $0x798] sm:$0xf]  ;;  %v669_v52 = vld [vmem:[%s8529_s29 + $0x7a0] sm:$0xf]  ;;  %666 = vst [vmem:[%s8536_s30 + $0x3c8] sm:$0xf] %v665_v50 }
  0xb7   : > { %668 = vst [vmem:[%s8536_s30 + $0x3cc] sm:$0xf] %v667_v51  ;;  %670 = vst [vmem:[%s8536_s30 + $0x3d0] sm:$0xf] %v669_v52  ;;  %v671_v53 = vld [vmem:[%s8529_s29 + $0x7a8] sm:$0xf] }
  0xb8   : > { %v673_v54 = vld [vmem:[%s8529_s29 + $0x7b0] sm:$0xf]  ;;  %v675_v55 = vld [vmem:[%s8529_s29 + $0x7b8] sm:$0xf]  ;;  %672 = vst [vmem:[%s8536_s30 + $0x3d4] sm:$0xf] %v671_v53 }
  0xb9   : > { %674 = vst [vmem:[%s8536_s30 + $0x3d8] sm:$0xf] %v673_v54  ;;  %676 = vst [vmem:[%s8536_s30 + $0x3dc] sm:$0xf] %v675_v55  ;;  %v677_v56 = vld [vmem:[%s8529_s29 + $0x7c0] sm:$0xf] }
  0xba   : > { %v679_v57 = vld [vmem:[%s8529_s29 + $0x7c8] sm:$0xf]  ;;  %v681_v58 = vld [vmem:[%s8529_s29 + $0x7d0] sm:$0xf]  ;;  %678 = vst [vmem:[%s8536_s30 + $0x3e0] sm:$0xf] %v677_v56 }
  0xbb   : > { %680 = vst [vmem:[%s8536_s30 + $0x3e4] sm:$0xf] %v679_v57  ;;  %682 = vst [vmem:[%s8536_s30 + $0x3e8] sm:$0xf] %v681_v58  ;;  %v683_v59 = vld [vmem:[%s8529_s29 + $0x7d8] sm:$0xf] }
  0xbc   : > { %v685_v60 = vld [vmem:[%s8529_s29 + $0x7e0] sm:$0xf]  ;;  %v687_v61 = vld [vmem:[%s8529_s29 + $0x7e8] sm:$0xf]  ;;  %684 = vst [vmem:[%s8536_s30 + $0x3ec] sm:$0xf] %v683_v59 }
  0xbd   : > { %686 = vst [vmem:[%s8536_s30 + $0x3f0] sm:$0xf] %v685_v60  ;;  %688 = vst [vmem:[%s8536_s30 + $0x3f4] sm:$0xf] %v687_v61  ;;  %v689_v62 = vld [vmem:[%s8529_s29 + $0x7f0] sm:$0xf] }
  0xbe   : > { %v691_v63 = vld [vmem:[%s8529_s29 + $0x7f8] sm:$0xf]  ;;  %v693_v0 = vld [vmem:[%s8529_s29 + $0x800] sm:$0xf]  ;;  %690 = vst [vmem:[%s8536_s30 + $0x3f8] sm:$0xf] %v689_v62 }
  0xbf   : > { %692 = vst [vmem:[%s8536_s30 + $0x3fc] sm:$0xf] %v691_v63  ;;  %694 = vst [vmem:[%s8536_s30 + $0x400] sm:$0xf] %v693_v0  ;;  %v695_v1 = vld [vmem:[%s8529_s29 + $0x808] sm:$0xf] }
  0xc0   : > { %v697_v2 = vld [vmem:[%s8529_s29 + $0x810] sm:$0xf]  ;;  %v699_v3 = vld [vmem:[%s8529_s29 + $0x818] sm:$0xf]  ;;  %696 = vst [vmem:[%s8536_s30 + $0x404] sm:$0xf] %v695_v1 }
  0xc1   : > { %698 = vst [vmem:[%s8536_s30 + $0x408] sm:$0xf] %v697_v2  ;;  %700 = vst [vmem:[%s8536_s30 + $0x40c] sm:$0xf] %v699_v3  ;;  %v701_v4 = vld [vmem:[%s8529_s29 + $0x820] sm:$0xf] }
  0xc2   : > { %v703_v5 = vld [vmem:[%s8529_s29 + $0x828] sm:$0xf]  ;;  %v705_v6 = vld [vmem:[%s8529_s29 + $0x830] sm:$0xf]  ;;  %702 = vst [vmem:[%s8536_s30 + $0x410] sm:$0xf] %v701_v4 }
  0xc3   : > { %704 = vst [vmem:[%s8536_s30 + $0x414] sm:$0xf] %v703_v5  ;;  %706 = vst [vmem:[%s8536_s30 + $0x418] sm:$0xf] %v705_v6  ;;  %v707_v7 = vld [vmem:[%s8529_s29 + $0x838] sm:$0xf] }
  0xc4   : > { %v709_v8 = vld [vmem:[%s8529_s29 + $0x840] sm:$0xf]  ;;  %v711_v9 = vld [vmem:[%s8529_s29 + $0x848] sm:$0xf]  ;;  %708 = vst [vmem:[%s8536_s30 + $0x41c] sm:$0xf] %v707_v7 }
  0xc5   : > { %710 = vst [vmem:[%s8536_s30 + $0x420] sm:$0xf] %v709_v8  ;;  %712 = vst [vmem:[%s8536_s30 + $0x424] sm:$0xf] %v711_v9  ;;  %v713_v10 = vld [vmem:[%s8529_s29 + $0x850] sm:$0xf] }
  0xc6   : > { %v715_v11 = vld [vmem:[%s8529_s29 + $0x858] sm:$0xf]  ;;  %v717_v12 = vld [vmem:[%s8529_s29 + $0x860] sm:$0xf]  ;;  %714 = vst [vmem:[%s8536_s30 + $0x428] sm:$0xf] %v713_v10 }
  0xc7   : > { %716 = vst [vmem:[%s8536_s30 + $0x42c] sm:$0xf] %v715_v11  ;;  %718 = vst [vmem:[%s8536_s30 + $0x430] sm:$0xf] %v717_v12  ;;  %v719_v13 = vld [vmem:[%s8529_s29 + $0x868] sm:$0xf] }
  0xc8   : > { %v721_v14 = vld [vmem:[%s8529_s29 + $0x870] sm:$0xf]  ;;  %v723_v15 = vld [vmem:[%s8529_s29 + $0x878] sm:$0xf]  ;;  %720 = vst [vmem:[%s8536_s30 + $0x434] sm:$0xf] %v719_v13 }
  0xc9   : > { %722 = vst [vmem:[%s8536_s30 + $0x438] sm:$0xf] %v721_v14  ;;  %724 = vst [vmem:[%s8536_s30 + $0x43c] sm:$0xf] %v723_v15  ;;  %v725_v16 = vld [vmem:[%s8529_s29 + $0x880] sm:$0xf] }
  0xca   : > { %v727_v17 = vld [vmem:[%s8529_s29 + $0x888] sm:$0xf]  ;;  %v729_v18 = vld [vmem:[%s8529_s29 + $0x890] sm:$0xf]  ;;  %726 = vst [vmem:[%s8536_s30 + $0x440] sm:$0xf] %v725_v16 }
  0xcb   : > { %728 = vst [vmem:[%s8536_s30 + $0x444] sm:$0xf] %v727_v17  ;;  %730 = vst [vmem:[%s8536_s30 + $0x448] sm:$0xf] %v729_v18  ;;  %v731_v19 = vld [vmem:[%s8529_s29 + $0x898] sm:$0xf] }
  0xcc   : > { %v733_v20 = vld [vmem:[%s8529_s29 + $0x8a0] sm:$0xf]  ;;  %v735_v21 = vld [vmem:[%s8529_s29 + $0x8a8] sm:$0xf]  ;;  %732 = vst [vmem:[%s8536_s30 + $0x44c] sm:$0xf] %v731_v19 }
  0xcd   : > { %734 = vst [vmem:[%s8536_s30 + $0x450] sm:$0xf] %v733_v20  ;;  %736 = vst [vmem:[%s8536_s30 + $0x454] sm:$0xf] %v735_v21  ;;  %v737_v22 = vld [vmem:[%s8529_s29 + $0x8b0] sm:$0xf] }
  0xce   : > { %v739_v23 = vld [vmem:[%s8529_s29 + $0x8b8] sm:$0xf]  ;;  %v741_v24 = vld [vmem:[%s8529_s29 + $0x8c0] sm:$0xf]  ;;  %738 = vst [vmem:[%s8536_s30 + $0x458] sm:$0xf] %v737_v22 }
  0xcf   : > { %740 = vst [vmem:[%s8536_s30 + $0x45c] sm:$0xf] %v739_v23  ;;  %742 = vst [vmem:[%s8536_s30 + $0x460] sm:$0xf] %v741_v24  ;;  %v743_v25 = vld [vmem:[%s8529_s29 + $0x8c8] sm:$0xf] }
  0xd0   : > { %v745_v26 = vld [vmem:[%s8529_s29 + $0x8d0] sm:$0xf]  ;;  %v747_v27 = vld [vmem:[%s8529_s29 + $0x8d8] sm:$0xf]  ;;  %744 = vst [vmem:[%s8536_s30 + $0x464] sm:$0xf] %v743_v25 }
  0xd1   : > { %746 = vst [vmem:[%s8536_s30 + $0x468] sm:$0xf] %v745_v26  ;;  %748 = vst [vmem:[%s8536_s30 + $0x46c] sm:$0xf] %v747_v27  ;;  %v749_v28 = vld [vmem:[%s8529_s29 + $0x8e0] sm:$0xf] }
  0xd2   : > { %v751_v29 = vld [vmem:[%s8529_s29 + $0x8e8] sm:$0xf]  ;;  %v753_v30 = vld [vmem:[%s8529_s29 + $0x8f0] sm:$0xf]  ;;  %750 = vst [vmem:[%s8536_s30 + $0x470] sm:$0xf] %v749_v28 }
  0xd3   : > { %752 = vst [vmem:[%s8536_s30 + $0x474] sm:$0xf] %v751_v29  ;;  %754 = vst [vmem:[%s8536_s30 + $0x478] sm:$0xf] %v753_v30  ;;  %v755_v31 = vld [vmem:[%s8529_s29 + $0x8f8] sm:$0xf] }
  0xd4   : > { %756 = vst [vmem:[%s8536_s30 + $0x47c] sm:$0xf] %v755_v31 }
  0xd5 PF: > { %p6433_p7 = scmp.ge.s32.totalorder %s8461_s17, 1  ;;  %p1366_p8 = scmp.lt.s32.totalorder %s8461_s17, 3 }
  0xd7   : > { %p1367_p9 = pnand %p6433_p7, %p1366_p8 }
  0xd8   : > { %s1373_s5 = sand.u32 (!%p1367_p9), 1, %s8453_s15   ;;  %v7933_v32 = vld [vmem:[%s10599_s0 + $0x4] ss:$72 sps:$4 sm:$0xff] (!%p1367_p9)   ;;  %v7936_v33 = vld [vmem:[%s10599_s0 + $0x3f4] ss:$72 sps:$4 sm:$0xff] (!%p1367_p9)   ;;  %p1403_p10 = scmp.lt.s32.totalorder (!%p1367_p9), %s8504_s18, 1 }
  0xd9   : > { %1370 = sbr.rel (%p1367_p9) target bundleno = 1059 (0x423), region = 73  ;;  %4106 = vmatprep.mubr.bf16.mxu0 (!%p1367_p9), %v7933_v32  ;;  %4162 = vmatprep.mubr.bf16.mxu1 (!%p1367_p9), %v7936_v33  ;;  %v7931_v52 = vld [vmem:[%s10599_s0] ss:$72 sps:$4 sm:$0xff] (!%p1367_p9)   ;;  %v7934_v53 = vld [vmem:[%s10599_s0 + $0x3f0] ss:$72 sps:$4 sm:$0xff] (!%p1367_p9)  }
  0xda   : > { %s7889_s6 = smul.u32 (!%p1367_p9), 1152, %s1373_s5  ;;  %v7941_v56 = vld [vmem:[%s10599_s0 + $0x94] ss:$72 sps:$4 sm:$0xff] (!%p1367_p9)   ;;  %v7943_v57 = vld [vmem:[%s10599_s0 + $0x484] ss:$72 sps:$4 sm:$0xff] (!%p1367_p9)  }
  0xdb   : > { %v7946_v63 = vld [vmem:[%s10599_s0 + $0x90] ss:$72 sps:$4 sm:$0xff] (!%p1367_p9)   ;;  %v7947_v0 = vld [vmem:[%s10599_s0 + $0x480] ss:$72 sps:$4 sm:$0xff] (!%p1367_p9)   ;;  %v7952_v2 = vld [vmem:[%s10599_s0 + $0x124] ss:$72 sps:$4 sm:$0xff] (!%p1367_p9)  }
  0xdc   : > { %s9120_s11 = scalar_lea.vmem (!%p1367_p9), [#allocation2], %s7889_s6  ;;  %v7954_v3 = vld [vmem:[%s10599_s0 + $0x514] ss:$72 sps:$4 sm:$0xff] (!%p1367_p9)   ;;  %v7957_v9 = vld [vmem:[%s10599_s0 + $0x120] ss:$72 sps:$4 sm:$0xff] (!%p1367_p9)   ;;  %s7890_s28 = smul.u32 (!%p1367_p9), 112, %s1373_s5 }
  0xdd   : > { %v7915_v34 = vld [vmem:[%s9120_s11 + $0x40] sm:$0xff] (!%p1367_p9)   ;;  %v7917_v36 = vld [vmem:[%s9120_s11 + $0x48] sm:$0xff] (!%p1367_p9)   ;;  %v7919_v38 = vld [vmem:[%s9120_s11 + $0x50] sm:$0xff] (!%p1367_p9)  }
  0xde   : > { %v7916_v35 = vld [vmem:[%s9120_s11] sm:$0xff] (!%p1367_p9)   ;;  %6972 = vmatprep.subr.bf16.mxu0 (!%p1367_p9), %v7915_v34  ;;  %7872 = vmatprep.subr.bf16.mxu1 (!%p1367_p9), %v7915_v34  ;;  %v7918_v37 = vld [vmem:[%s9120_s11 + $0x8] sm:$0xff] (!%p1367_p9)   ;;  %v7920_v39 = vld [vmem:[%s9120_s11 + $0x10] sm:$0xff] (!%p1367_p9)   ;;  %s10509_s15 = scalar_lea.vmem (!%p1367_p9), [#allocation3], %s7890_s28 }
  0xdf   : > { %6973 = vmatpush3.bf16.msra.mxu0 (!%p1367_p9), %v7916_v35  ;;  %7880 = vmatpush3.bf16.msra.mxu1 (!%p1367_p9), %v7916_v35  ;;  %v7921_v40 = vld [vmem:[%s9120_s11 + $0x58] sm:$0xff] (!%p1367_p9)   ;;  %v7923_v42 = vld [vmem:[%s9120_s11 + $0x60] sm:$0xff] (!%p1367_p9)   ;;  %v7925_v44 = vld [vmem:[%s9120_s11 + $0x68] sm:$0xff] (!%p1367_p9)  }
  0xe0   : > { %6974 = vmatprep.subr.bf16.mxu0 %v7917_v36  ;;  %7873 = vmatprep.subr.bf16.mxu1 %v7917_v36  ;;  %v7922_v41 = vld [vmem:[%s9120_s11 + $0x18] sm:$0xff]   ;;  %v7924_v43 = vld [vmem:[%s9120_s11 + $0x20] sm:$0xff]   ;;  %v7926_v45 = vld [vmem:[%s9120_s11 + $0x28] sm:$0xff]   ;;  %s1404_s20 = scalar_select %p1403_p10, %s8504_s18, 1 }
  0xe1   : > { %v7927_v46 = vld [vmem:[%s9120_s11 + $0x70] sm:$0xff]   ;;  %v7929_v48 = vld [vmem:[%s9120_s11 + $0x78] sm:$0xff]   ;;  %v7937_v50 = vld [vmem:[%s9120_s11 + $0xc0] sm:$0xff]   ;;  %s6858_s5 = sshll.u32 (%p8519_p5), %s8504_s18, 2 }
  0xe2   : > { %v7928_v47 = vld [vmem:[%s9120_s11 + $0x30] sm:$0xff]   ;;  %v7930_v49 = vld [vmem:[%s9120_s11 + $0x38] sm:$0xff]   ;;  %v7939_v51 = vld [vmem:[%s9120_s11 + $0x140] sm:$0xff]   ;;  %s1405_s25 = scalar_lea.vmem %s10601_s2, %s1404_s20  ;;  %s10533_s6 = scalar_lea.vmem (%p8519_p5), %s10603_s4, %s6858_s5 }
  0xe3   : > { %6975 = vmatpush3.bf16.msra.mxu0 %v7918_v37  ;;  %7881 = vmatpush3.bf16.msra.mxu1 %v7918_v37  ;;  %v7938_v54 = vld [vmem:[%s9120_s11 + $0x80] sm:$0xff]   ;;  %v7945_v58 = vld [vmem:[%s9120_s11 + $0xc8] sm:$0xff]   ;;  %v7951_v62 = vld [vmem:[%s9120_s11 + $0xd0] sm:$0xff]  }
  0xe4   : > { %6976 = vmatprep.subr.bf16.mxu0 %v7919_v38  ;;  %7874 = vmatprep.subr.bf16.mxu1 %v7919_v38  ;;  %v7940_v55 = vld [vmem:[%s9120_s11 + $0x100] sm:$0xff]   ;;  %v7948_v59 = vld [vmem:[%s9120_s11 + $0x88] sm:$0xff]   ;;  %v7959_v1 = vld [vmem:[%s9120_s11 + $0x150] sm:$0xff]  }
  0xe5   : > { %v7949_v60 = vld [vmem:[%s9120_s11 + $0x148] sm:$0xff]   ;;  %v7956_v4 = vld [vmem:[%s9120_s11 + $0x90] sm:$0xff]   ;;  %v7961_v6 = vld [vmem:[%s9120_s11 + $0xd8] sm:$0xff]  }
  0xe6   : > { %v7950_v61 = vld [vmem:[%s9120_s11 + $0x108] sm:$0xff]   ;;  %v7960_v5 = vld [vmem:[%s9120_s11 + $0x110] sm:$0xff]   ;;  %v7967_v7 = vld [vmem:[%s9120_s11 + $0x158] sm:$0xff]  }
  0xe7   : > { %6977 = vmatpush3.bf16.msra.mxu0 %v7920_v39  ;;  %7882 = vmatpush3.bf16.msra.mxu1 %v7920_v39  ;;  %v7962_v8 = vld [vmem:[%s9120_s11 + $0x98] sm:$0xff]   ;;  %v7971_v12 = vld [vmem:[%s9120_s11 + $0xe0] sm:$0xff]   ;;  %v7981_v18 = vld [vmem:[%s9120_s11 + $0xe8] sm:$0xff]  }
  0xe8   : > { %6978 = vmatprep.subr.bf16.mxu0 %v7921_v40  ;;  %7875 = vmatprep.subr.bf16.mxu1 %v7921_v40  ;;  %v7958_v10 = vld [vmem:[%s10599_s0 + $0x510] ss:$72 sps:$4 sm:$0xff]   ;;  %v7963_v13 = vld [vmem:[%s10599_s0 + $0x1b4] ss:$72 sps:$4 sm:$0xff]   ;;  %v7965_v14 = vld [vmem:[%s10599_s0 + $0x5a4] ss:$72 sps:$4 sm:$0xff]  }
  0xe9   : > { %v7970_v11 = vld [vmem:[%s9120_s11 + $0x118] sm:$0xff]   ;;  %v7973_v15 = vld [vmem:[%s9120_s11 + $0x160] sm:$0xff]   ;;  %v7983_v19 = vld [vmem:[%s9120_s11 + $0x168] sm:$0xff]  }
  0xea   : > { %v7972_v16 = vld [vmem:[%s9120_s11 + $0xa0] sm:$0xff]   ;;  %v7982_v20 = vld [vmem:[%s9120_s11 + $0xa8] sm:$0xff]   ;;  %v7968_v21 = vld [vmem:[%s10599_s0 + $0x1b0] ss:$72 sps:$4 sm:$0xff]  }
  0xeb   : > { %6979 = vmatpush3.bf16.msra.mxu0 %v7922_v41  ;;  %7883 = vmatpush3.bf16.msra.mxu1 %v7922_v41  ;;  %v7978_v17 = vld [vmem:[%s9120_s11 + $0x120] sm:$0xff]   ;;  %v7984_v23 = vld [vmem:[%s9120_s11 + $0x128] sm:$0xff]   ;;  %v7976_v25 = vld [vmem:[%s10599_s0 + $0x634] ss:$72 sps:$4 sm:$0xff]  }
  0xec   : > { %6980 = vmatprep.subr.bf16.mxu0 %v7923_v42  ;;  %7876 = vmatprep.subr.bf16.mxu1 %v7923_v42  ;;  %v7969_v22 = vld [vmem:[%s10599_s0 + $0x5a0] ss:$72 sps:$4 sm:$0xff]   ;;  %v7974_v24 = vld [vmem:[%s10599_s0 + $0x244] ss:$72 sps:$4 sm:$0xff]   ;;  %v7991_v26 = vld [vmem:[%s9120_s11 + $0xf0] sm:$0xff]  }
  0xed   : > { %v7993_v27 = vld [vmem:[%s9120_s11 + $0x170] sm:$0xff]   ;;  %v8001_v30 = vld [vmem:[%s9120_s11 + $0xf8] sm:$0xff]   ;;  %v7979_v31 = vld [vmem:[%s10599_s0 + $0x240] ss:$72 sps:$4 sm:$0xff]  }
  0xee   : > { %v7992_v28 = vld [vmem:[%s9120_s11 + $0xb0] sm:$0xff]   ;;  %v8002_v33 = vld [vmem:[%s9120_s11 + $0xb8] sm:$0xff]   ;;  %v7987_v37 = vld [vmem:[%s10599_s0 + $0x6c4] ss:$72 sps:$4 sm:$0xff]  }
  0xef   : > { %6981 = vmatpush3.bf16.msra.mxu0 %v7924_v43  ;;  %7884 = vmatpush3.bf16.msra.mxu1 %v7924_v43  ;;  %v7994_v29 = vld [vmem:[%s9120_s11 + $0x130] sm:$0xff]   ;;  %v8003_v34 = vld [vmem:[%s9120_s11 + $0x178] sm:$0xff]   ;;  %v8011_v38 = vld [vmem:[%s9120_s11 + $0x1c0] sm:$0xff]  }
  0xf0   : > { %6982 = vmatprep.subr.bf16.mxu0 %v7925_v44  ;;  %7877 = vmatprep.subr.bf16.mxu1 %v7925_v44  ;;  %v7980_v32 = vld [vmem:[%s10599_s0 + $0x630] ss:$72 sps:$4 sm:$0xff]   ;;  %v7985_v36 = vld [vmem:[%s10599_s0 + $0x2d4] ss:$72 sps:$4 sm:$0xff]   ;;  %v8013_v39 = vld [vmem:[%s9120_s11 + $0x240] sm:$0xff]  }
  0xf1   : > { %v8004_v35 = vld [vmem:[%s9120_s11 + $0x138] sm:$0xff]   ;;  %v7990_v41 = vld [vmem:[%s10599_s0 + $0x6c0] ss:$72 sps:$4 sm:$0xff]   ;;  %v7995_v42 = vld [vmem:[%s10599_s0 + $0x364] ss:$72 sps:$4 sm:$0xff]  }
  0xf2   : > { %v7989_v40 = vld [vmem:[%s10599_s0 + $0x2d0] ss:$72 sps:$4 sm:$0xff]   ;;  %v7997_v43 = vld [vmem:[%s10599_s0 + $0x754] ss:$72 sps:$4 sm:$0xff]   ;;  %v7999_v44 = vld [vmem:[%s10599_s0 + $0x360] ss:$72 sps:$4 sm:$0xff]  }
  0xf3   : > { %6983 = vmatpush3.bf16.msra.mxu0 %v7926_v45  ;;  %7885 = vmatpush3.bf16.msra.mxu1 %v7926_v45  ;;  %v8000_v45 = vld [vmem:[%s10599_s0 + $0x750] ss:$72 sps:$4 sm:$0xff]  }
  0xf4   : > { %6984 = vmatprep.subr.bf16.mxu0 %v7927_v46  ;;  %7878 = vmatprep.subr.bf16.mxu1 %v7927_v46  ;;  %v8007_v46 = vld [vmem:[%s10599_s0 + $0xc] ss:$72 sps:$4 sm:$0xff]  }
  0xf7   : > { %6985 = vmatpush3.bf16.msra.mxu0 %v7928_v47  ;;  %7886 = vmatpush3.bf16.msra.mxu1 %v7928_v47  ;;  %v8010_v47 = vld [vmem:[%s10599_s0 + $0x14] ss:$72 sps:$4 sm:$0xff]  }
  0xf8   : > { %6986 = vmatprep.subr.bf16.mxu0 %v7929_v48  ;;  %7879 = vmatprep.subr.bf16.mxu1 %v7929_v48  ;;  %v8005_v48 = vld [vmem:[%s10599_s0 + $0x8] ss:$72 sps:$4 sm:$0xff]  }
  0xfb   : > { %6987 = vmatpush3.bf16.msra.mxu0 %v7930_v49  ;;  %7887 = vmatpush3.bf16.msra.mxu1 %v7930_v49  ;;  %v8008_v49 = vld [vmem:[%s10599_s0 + $0x10] ss:$72 sps:$4 sm:$0xff]  }
  0xfc   : > { %7072 = vmatprep.subr.bf16.mxu1 %v7937_v50  ;;  %7172 = vmatprep.subr.bf16.mxu0 %v7939_v51  ;;  %v8012_v50 = vld [vmem:[%s9120_s11 + $0x180] sm:$0xff]  }
  0xfd   : > { %v8014_v51 = vld [vmem:[%s9120_s11 + $0x200] sm:$0xff]  }
  0xfe   : > { %4107 = vmatmul.mubr.bf16.vlgmr.msra.gmra.mrb[0].mxu0 %v7931_v52  ;;  %4163 = vmatmul.mubr.bf16.vlgmr.msra.gmra.mrb[0].mxu1 %v7934_v53  ;;  %v8015_v52 = vld [vmem:[%s10599_s0 + $0x9c] ss:$72 sps:$4 sm:$0xff]  }
  0xff   : > { %7073 = vmatpush3.bf16.msra.mxu1 %v7938_v54  ;;  %7173 = vmatpush3.bf16.msra.mxu0 %v7940_v55  ;;  %v8017_v53 = vld [vmem:[%s10599_s0 + $0xa4] ss:$72 sps:$4 sm:$0xff]  }
 0x100   : > { %4114 = vmatprep.mubr.bf16.mxu0 %v7941_v56  ;;  %4170 = vmatprep.mubr.bf16.mxu1 %v7943_v57  ;;  %v8021_v54 = vld [vmem:[%s9120_s11 + $0x1c8] sm:$0xff]  }
 0x101   : > { %7074 = vmatprep.subr.bf16.mxu1 %v7945_v58  ;;  %7174 = vmatprep.subr.bf16.mxu0 %v7949_v60  ;;  %v8029_v55 = vld [vmem:[%s9120_s11 + $0x248] sm:$0xff]   ;;  %v8037_v58 = vld [vmem:[%s9120_s11 + $0x1d0] sm:$0xff]  }
 0x102   : > { %v8026_v56 = vld [vmem:[%s9120_s11 + $0x188] sm:$0xff]  }
 0x103   : > { %7075 = vmatpush3.bf16.msra.mxu1 %v7948_v59  ;;  %7175 = vmatpush3.bf16.msra.mxu0 %v7950_v61  ;;  %v8030_v57 = vld [vmem:[%s9120_s11 + $0x208] sm:$0xff]   ;;  %v8019_v59 = vld [vmem:[%s10599_s0 + $0x98] ss:$72 sps:$4 sm:$0xff]   ;;  %v8039_v61 = vld [vmem:[%s9120_s11 + $0x250] sm:$0xff]  }
 0x104   : > { %7076 = vmatprep.subr.bf16.mxu1 %v7951_v62  ;;  %7176 = vmatprep.subr.bf16.mxu0 %v7959_v1  ;;  %v8020_v60 = vld [vmem:[%s10599_s0 + $0xa0] ss:$72 sps:$4 sm:$0xff]   ;;  %v8022_v62 = vld [vmem:[%s10599_s0 + $0x12c] ss:$72 sps:$4 sm:$0xff]  }
 0x105   : > { %v8044_v1 = vld [vmem:[%s9120_s11 + $0x210] sm:$0xff]  }
 0x106   : > { %4115 = vmatmul.mubr.bf16.gmra.mrb[4].mxu0 %v7946_v63  ;;  %4171 = vmatmul.mubr.bf16.gmra.mrb[4].mxu1 %v7947_v0  ;;  %v8024_v63 = vld [vmem:[%s10599_s0 + $0x134] ss:$72 sps:$4 sm:$0xff]  }
 0x107   : > { %4122 = vmatprep.mubr.bf16.mxu0 %v7952_v2  ;;  %4178 = vmatprep.mubr.bf16.mxu1 %v7954_v3  ;;  %v8038_v0 = vld [vmem:[%s9120_s11 + $0x190] sm:$0xff]   ;;  %v8053_v2 = vld [vmem:[%s9120_s11 + $0x1d8] sm:$0xff]  }
 0x108   : > { %7077 = vmatpush3.bf16.msra.mxu1 %v7956_v4  ;;  %7177 = vmatpush3.bf16.msra.mxu0 %v7960_v5  ;;  %v8055_v3 = vld [vmem:[%s9120_s11 + $0x258] sm:$0xff]   ;;  %v8027_v5 = vld [vmem:[%s10599_s0 + $0x128] ss:$72 sps:$4 sm:$0xff]  }
 0x109   : > { %7078 = vmatprep.subr.bf16.mxu1 %v7961_v6  ;;  %7178 = vmatprep.subr.bf16.mxu0 %v7967_v7  ;;  %v8054_v4 = vld [vmem:[%s9120_s11 + $0x198] sm:$0xff]  }
 0x10a   : > { %v8028_v6 = vld [vmem:[%s10599_s0 + $0x130] ss:$72 sps:$4 sm:$0xff]  }
 0x10b   : > { %v8056_v7 = vld [vmem:[%s9120_s11 + $0x218] sm:$0xff]  }
 0x10c   : > { %7079 = vmatpush3.bf16.msra.mxu1 %v7962_v8  ;;  %7179 = vmatpush3.bf16.msra.mxu0 %v7970_v11  ;;  %v8031_v8 = vld [vmem:[%s10599_s0 + $0x1bc] ss:$72 sps:$4 sm:$0xff]  }
 0x10d   : > { %7080 = vmatprep.subr.bf16.mxu1 %v7971_v12  ;;  %7180 = vmatprep.subr.bf16.mxu0 %v7973_v15  ;;  %v8071_v11 = vld [vmem:[%s9120_s11 + $0x260] sm:$0xff]  }
 0x10e   : > { %4123 = vmatmul.mubr.bf16.gmra.mrb[8].mxu0 %v7957_v9  ;;  %4179 = vmatmul.mubr.bf16.gmra.mrb[8].mxu1 %v7958_v10  ;;  %v8033_v9 = vld [vmem:[%s10599_s0 + $0x1c4] ss:$72 sps:$4 sm:$0xff]   ;;  %v8035_v15 = vld [vmem:[%s10599_s0 + $0x1b8] ss:$72 sps:$4 sm:$0xff]  }
 0x10f   : > { %4130 = vmatprep.mubr.bf16.mxu0 %v7963_v13  ;;  %4186 = vmatprep.mubr.bf16.mxu1 %v7965_v14  ;;  %v8069_v10 = vld [vmem:[%s9120_s11 + $0x1e0] sm:$0xff]   ;;  %v8079_v14 = vld [vmem:[%s9120_s11 + $0x1e8] sm:$0xff]  }
 0x110   : > { %7081 = vmatpush3.bf16.msra.mxu1 %v7972_v16  ;;  %7181 = vmatpush3.bf16.msra.mxu0 %v7978_v17  ;;  %v8070_v12 = vld [vmem:[%s9120_s11 + $0x1a0] sm:$0xff]   ;;  %v8040_v17 = vld [vmem:[%s10599_s0 + $0x24c] ss:$72 sps:$4 sm:$0xff]  }
 0x111   : > { %7082 = vmatprep.subr.bf16.mxu1 %v7981_v18  ;;  %7182 = vmatprep.subr.bf16.mxu0 %v7983_v19  ;;  %v8072_v13 = vld [vmem:[%s9120_s11 + $0x220] sm:$0xff]   ;;  %v8084_v18 = vld [vmem:[%s9120_s11 + $0x1a8] sm:$0xff]   ;;  %v8042_v19 = vld [vmem:[%s10599_s0 + $0x254] ss:$72 sps:$4 sm:$0xff]  }
 0x112   : > { %v8036_v16 = vld [vmem:[%s10599_s0 + $0x1c0] ss:$72 sps:$4 sm:$0xff]  }
 0x114   : > { %7083 = vmatpush3.bf16.msra.mxu1 %v7982_v20  ;;  %7183 = vmatpush3.bf16.msra.mxu0 %v7984_v23  ;;  %v8087_v20 = vld [vmem:[%s9120_s11 + $0x268] sm:$0xff]   ;;  %v8046_v23 = vld [vmem:[%s10599_s0 + $0x250] ss:$72 sps:$4 sm:$0xff]  }
 0x115   : > { %7084 = vmatprep.subr.bf16.mxu1 %v7991_v26  ;;  %7184 = vmatprep.subr.bf16.mxu0 %v7993_v27  ;;  %v8096_v26 = vld [vmem:[%s9120_s11 + $0x1b0] sm:$0xff]  }
 0x116   : > { %4131 = vmatmul.mubr.bf16.gmra.mrb[12].mxu0 %v7968_v21  ;;  %4187 = vmatmul.mubr.bf16.gmra.mrb[12].mxu1 %v7969_v22  ;;  %v8088_v21 = vld [vmem:[%s9120_s11 + $0x228] sm:$0xff]   ;;  %v8097_v27 = vld [vmem:[%s9120_s11 + $0x270] sm:$0xff]  }
 0x117   : > { %4138 = vmatprep.mubr.bf16.mxu0 %v7974_v24  ;;  %4194 = vmatprep.mubr.bf16.mxu1 %v7976_v25  ;;  %v8045_v22 = vld [vmem:[%s10599_s0 + $0x248] ss:$72 sps:$4 sm:$0xff]   ;;  %v8047_v25 = vld [vmem:[%s10599_s0 + $0x2dc] ss:$72 sps:$4 sm:$0xff]  }
 0x118   : > { %7085 = vmatpush3.bf16.msra.mxu1 %v7992_v28  ;;  %7185 = vmatpush3.bf16.msra.mxu0 %v7994_v29  ;;  %v8095_v24 = vld [vmem:[%s9120_s11 + $0x1f0] sm:$0xff]   ;;  %v8049_v28 = vld [vmem:[%s10599_s0 + $0x2e4] ss:$72 sps:$4 sm:$0xff]  }
 0x119   : > { %7086 = vmatprep.subr.bf16.mxu1 %v8001_v30  ;;  %7186 = vmatprep.subr.bf16.mxu0 %v8003_v34  ;;  %v8102_v29 = vld [vmem:[%s9120_s11 + $0x230] sm:$0xff]   ;;  %v8051_v30 = vld [vmem:[%s10599_s0 + $0x2d8] ss:$72 sps:$4 sm:$0xff]  }
 0x11a   : > { %v8111_v34 = vld [vmem:[%s9120_s11 + $0x1f8] sm:$0xff]  }
 0x11c   : > { %7087 = vmatpush3.bf16.msra.mxu1 %v8002_v33  ;;  %7187 = vmatpush3.bf16.msra.mxu0 %v8004_v35  ;;  %v8059_v33 = vld [vmem:[%s10599_s0 + $0x374] ss:$72 sps:$4 sm:$0xff]  }
 0x11d   : > { %7272 = vmatprep.subr.bf16.mxu1 %v8011_v38  ;;  %7372 = vmatprep.subr.bf16.mxu0 %v8013_v39  ;;  %v8112_v35 = vld [vmem:[%s9120_s11 + $0x1b8] sm:$0xff]   ;;  %v8061_v38 = vld [vmem:[%s10599_s0 + $0x368] ss:$72 sps:$4 sm:$0xff]  }
 0x11e   : > { %4139 = vmatmul.mubr.bf16.gmra.mrb[16].mxu0 %v7979_v31  ;;  %4195 = vmatmul.mubr.bf16.gmra.mrb[16].mxu1 %v7980_v32  ;;  %v8052_v31 = vld [vmem:[%s10599_s0 + $0x2e0] ss:$72 sps:$4 sm:$0xff]   ;;  %v8057_v32 = vld [vmem:[%s10599_s0 + $0x36c] ss:$72 sps:$4 sm:$0xff]   ;;  %v8062_v39 = vld [vmem:[%s10599_s0 + $0x370] ss:$72 sps:$4 sm:$0xff]  }
 0x11f   : > { %4146 = vmatprep.mubr.bf16.mxu0 %v7985_v36  ;;  %4202 = vmatprep.mubr.bf16.mxu1 %v7987_v37  ;;  %v8113_v36 = vld [vmem:[%s9120_s11 + $0x278] sm:$0xff]  }
 0x120   : > { %v8114_v37 = vld [vmem:[%s9120_s11 + $0x238] sm:$0xff]  }
 0x126   : > { %4147 = vmatmul.mubr.bf16.gmra.mrb[20].mxu0 %v7989_v40  ;;  %4203 = vmatmul.mubr.bf16.gmra.mrb[20].mxu1 %v7990_v41  ;;  %v8063_v40 = vld [vmem:[%s10599_s0 + $0x3fc] ss:$72 sps:$4 sm:$0xff]  }
 0x127   : > { %4154 = vmatprep.mubr.bf16.mxu0 %v7995_v42  ;;  %4210 = vmatprep.mubr.bf16.mxu1 %v7997_v43  ;;  %v8065_v41 = vld [vmem:[%s10599_s0 + $0x404] ss:$72 sps:$4 sm:$0xff]  }
 0x128   : > { %v8127_v42 = vld [vmem:[%s9120_s11 + $0x2c0] sm:$0xff]  }
 0x129   : > { %v8129_v43 = vld [vmem:[%s9120_s11 + $0x340] sm:$0xff]  }
 0x12e   : > { %4155 = vmatmul.mubr.bf16.gmra.mrb[24].mxu0 %v7999_v44  ;;  %4211 = vmatmul.mubr.bf16.gmra.mrb[24].mxu1 %v8000_v45  ;;  %v8067_v44 = vld [vmem:[%s10599_s0 + $0x3f8] ss:$72 sps:$4 sm:$0xff]  }
 0x12f   : > { %4251 = vmatprep.mubr.bf16.mxu1 %v8007_v46  ;;  %4396 = vmatprep.mubr.bf16.mxu0 %v8010_v47  ;;  %v8068_v45 = vld [vmem:[%s10599_s0 + $0x400] ss:$72 sps:$4 sm:$0xff]   ;;  %v8073_v46 = vld [vmem:[%s10599_s0 + $0x48c] ss:$72 sps:$4 sm:$0xff]  }
 0x130   : > { %v8075_v47 = vld [vmem:[%s10599_s0 + $0x494] ss:$72 sps:$4 sm:$0xff]  }
 0x136   : > { %4252 = vmatmul.mubr.bf16.vlgmr.msra.gmra.mrb[28].mxu1 %v8005_v48  ;;  %4397 = vmatmul.mubr.bf16.vlgmr.msra.gmra.mrb[28].mxu0 %v8008_v49  ;;  %v8077_v48 = vld [vmem:[%s10599_s0 + $0x488] ss:$72 sps:$4 sm:$0xff]  }
 0x137   : > { %7273 = vmatpush3.bf16.msra.mxu1 %v8012_v50  ;;  %7373 = vmatpush3.bf16.msra.mxu0 %v8014_v51  ;;  %v8078_v49 = vld [vmem:[%s10599_s0 + $0x490] ss:$72 sps:$4 sm:$0xff]   ;;  %v8080_v50 = vld [vmem:[%s10599_s0 + $0x51c] ss:$72 sps:$4 sm:$0xff]  }
 0x138   : > { %4259 = vmatprep.mubr.bf16.mxu1 %v8015_v52  ;;  %4404 = vmatprep.mubr.bf16.mxu0 %v8017_v53  ;;  %v8082_v51 = vld [vmem:[%s10599_s0 + $0x524] ss:$72 sps:$4 sm:$0xff]   ;;  %v8085_v52 = vld [vmem:[%s10599_s0 + $0x518] ss:$72 sps:$4 sm:$0xff]  }
 0x139   : > { %7274 = vmatprep.subr.bf16.mxu1 %v8021_v54  ;;  %7374 = vmatprep.subr.bf16.mxu0 %v8029_v55  ;;  %v8086_v53 = vld [vmem:[%s10599_s0 + $0x520] ss:$72 sps:$4 sm:$0xff]   ;;  %v8089_v54 = vld [vmem:[%s10599_s0 + $0x5ac] ss:$72 sps:$4 sm:$0xff]  }
 0x13a   : > { %v8091_v55 = vld [vmem:[%s10599_s0 + $0x5b4] ss:$72 sps:$4 sm:$0xff]  }
 0x13b   : > { %7275 = vmatpush3.bf16.msra.mxu1 %v8026_v56  ;;  %7375 = vmatpush3.bf16.msra.mxu0 %v8030_v57  ;;  %v8093_v56 = vld [vmem:[%s10599_s0 + $0x5a8] ss:$72 sps:$4 sm:$0xff]  }
 0x13c   : > { %7276 = vmatprep.subr.bf16.mxu1 %v8037_v58  ;;  %7376 = vmatprep.subr.bf16.mxu0 %v8039_v61  ;;  %v8094_v57 = vld [vmem:[%s10599_s0 + $0x5b0] ss:$72 sps:$4 sm:$0xff]   ;;  %v8098_v58 = vld [vmem:[%s10599_s0 + $0x63c] ss:$72 sps:$4 sm:$0xff]   ;;  %v8104_v61 = vld [vmem:[%s10599_s0 + $0x640] ss:$72 sps:$4 sm:$0xff]  }
 0x13e   : > { %4260 = vmatmul.mubr.bf16.gmra.mrb[32].mxu1 %v8019_v59  ;;  %4405 = vmatmul.mubr.bf16.gmra.mrb[32].mxu0 %v8020_v60  ;;  %v8100_v59 = vld [vmem:[%s10599_s0 + $0x644] ss:$72 sps:$4 sm:$0xff]   ;;  %v8103_v60 = vld [vmem:[%s10599_s0 + $0x638] ss:$72 sps:$4 sm:$0xff]  }
 0x13f   : > { %4267 = vmatprep.mubr.bf16.mxu1 %v8022_v62  ;;  %4412 = vmatprep.mubr.bf16.mxu0 %v8024_v63  ;;  %v8105_v62 = vld [vmem:[%s10599_s0 + $0x6cc] ss:$72 sps:$4 sm:$0xff]  }
 0x140   : > { %7277 = vmatpush3.bf16.msra.mxu1 %v8038_v0  ;;  %7377 = vmatpush3.bf16.msra.mxu0 %v8044_v1  ;;  %v8107_v63 = vld [vmem:[%s10599_s0 + $0x6d4] ss:$72 sps:$4 sm:$0xff]   ;;  %v8109_v0 = vld [vmem:[%s10599_s0 + $0x6c8] ss:$72 sps:$4 sm:$0xff]  }
 0x141   : > { %7278 = vmatprep.subr.bf16.mxu1 %v8053_v2  ;;  %7378 = vmatprep.subr.bf16.mxu0 %v8055_v3  ;;  %v8110_v1 = vld [vmem:[%s10599_s0 + $0x6d0] ss:$72 sps:$4 sm:$0xff]   ;;  %v8115_v2 = vld [vmem:[%s10599_s0 + $0x75c] ss:$72 sps:$4 sm:$0xff]  }
 0x142   : > { %v8117_v3 = vld [vmem:[%s10599_s0 + $0x764] ss:$72 sps:$4 sm:$0xff]  }
 0x144   : > { %7279 = vmatpush3.bf16.msra.mxu1 %v8054_v4  ;;  %7379 = vmatpush3.bf16.msra.mxu0 %v8056_v7  ;;  %v8119_v4 = vld [vmem:[%s10599_s0 + $0x758] ss:$72 sps:$4 sm:$0xff]   ;;  %v8126_v7 = vld [vmem:[%s10599_s0 + $0x24] ss:$72 sps:$4 sm:$0xff]  }
 0x145   : > { %7280 = vmatprep.subr.bf16.mxu1 %v8069_v10  ;;  %7380 = vmatprep.subr.bf16.mxu0 %v8071_v11  ;;  %v8128_v10 = vld [vmem:[%s9120_s11 + $0x280] sm:$0xff]  }
 0x146   : > { %4268 = vmatmul.mubr.bf16.gmra.mrb[36].mxu1 %v8027_v5  ;;  %4413 = vmatmul.mubr.bf16.gmra.mrb[36].mxu0 %v8028_v6  ;;  %v8120_v5 = vld [vmem:[%s10599_s0 + $0x760] ss:$72 sps:$4 sm:$0xff]   ;;  %v8123_v6 = vld [vmem:[%s10599_s0 + $0x1c] ss:$72 sps:$4 sm:$0xff]  }
 0x147   : > { %4275 = vmatprep.mubr.bf16.mxu1 %v8031_v8  ;;  %4420 = vmatprep.mubr.bf16.mxu0 %v8033_v9  ;;  %v8121_v8 = vld [vmem:[%s10599_s0 + $0x18] ss:$72 sps:$4 sm:$0xff]  }
 0x148   : > { %7281 = vmatpush3.bf16.msra.mxu1 %v8070_v12  ;;  %7381 = vmatpush3.bf16.msra.mxu0 %v8072_v13  ;;  %v8124_v9 = vld [vmem:[%s10599_s0 + $0x20] ss:$72 sps:$4 sm:$0xff]   ;;  %v8131_v12 = vld [vmem:[%s10599_s0 + $0xac] ss:$72 sps:$4 sm:$0xff]  }
 0x149   : > { %7282 = vmatprep.subr.bf16.mxu1 %v8079_v14  ;;  %7382 = vmatprep.subr.bf16.mxu0 %v8087_v20  ;;  %v8130_v11 = vld [vmem:[%s9120_s11 + $0x300] sm:$0xff]   ;;  %v8133_v13 = vld [vmem:[%s10599_s0 + $0xb4] ss:$72 sps:$4 sm:$0xff]   ;;  %v8137_v14 = vld [vmem:[%s9120_s11 + $0x2c8] sm:$0xff]  }
 0x14a   : > { %v8136_v20 = vld [vmem:[%s10599_s0 + $0xb0] ss:$72 sps:$4 sm:$0xff]  }
 0x14c   : > { %7283 = vmatpush3.bf16.msra.mxu1 %v8084_v18  ;;  %7383 = vmatpush3.bf16.msra.mxu0 %v8088_v21  ;;  %v8153_v18 = vld [vmem:[%s9120_s11 + $0x2d0] sm:$0xff]  }
 0x14d   : > { %7284 = vmatprep.subr.bf16.mxu1 %v8095_v24  ;;  %7384 = vmatprep.subr.bf16.mxu0 %v8097_v27  ;;  %v8155_v21 = vld [vmem:[%s9120_s11 + $0x350] sm:$0xff]   ;;  %v8171_v27 = vld [vmem:[%s9120_s11 + $0x358] sm:$0xff]  }
 0x14e   : > { %4276 = vmatmul.mubr.bf16.gmra.mrb[40].mxu1 %v8035_v15  ;;  %4421 = vmatmul.mubr.bf16.gmra.mrb[40].mxu0 %v8036_v16  ;;  %v8145_v15 = vld [vmem:[%s9120_s11 + $0x348] sm:$0xff]   ;;  %v8154_v24 = vld [vmem:[%s9120_s11 + $0x290] sm:$0xff]  }
 0x14f   : > { %4283 = vmatprep.mubr.bf16.mxu1 %v8040_v17  ;;  %4428 = vmatprep.mubr.bf16.mxu0 %v8042_v19  ;;  %v8142_v16 = vld [vmem:[%s9120_s11 + $0x288] sm:$0xff]  }
 0x150   : > { %7285 = vmatpush3.bf16.msra.mxu1 %v8096_v26  ;;  %7385 = vmatpush3.bf16.msra.mxu0 %v8102_v29  ;;  %v8146_v17 = vld [vmem:[%s9120_s11 + $0x308] sm:$0xff]   ;;  %v8169_v26 = vld [vmem:[%s9120_s11 + $0x2d8] sm:$0xff]  }
 0x151   : > { %7286 = vmatprep.subr.bf16.mxu1 %v8111_v34  ;;  %7386 = vmatprep.subr.bf16.mxu0 %v8113_v36  ;;  %v8135_v19 = vld [vmem:[%s10599_s0 + $0xa8] ss:$72 sps:$4 sm:$0xff]   ;;  %v8172_v29 = vld [vmem:[%s9120_s11 + $0x318] sm:$0xff]   ;;  %v8187_v34 = vld [vmem:[%s9120_s11 + $0x360] sm:$0xff]  }
 0x152   : > { %v8186_v36 = vld [vmem:[%s9120_s11 + $0x2a0] sm:$0xff]  }
 0x154   : > { %7287 = vmatpush3.bf16.msra.mxu1 %v8112_v35  ;;  %7387 = vmatpush3.bf16.msra.mxu0 %v8114_v37  ;;  %v8149_v35 = vld [vmem:[%s10599_s0 + $0x1d4] ss:$72 sps:$4 sm:$0xff]   ;;  %v8188_v37 = vld [vmem:[%s9120_s11 + $0x320] sm:$0xff]  }
 0x155   : > { %7472 = vmatprep.subr.bf16.mxu1 %v8127_v42  ;;  %7572 = vmatprep.subr.bf16.mxu0 %v8129_v43  ;;  %v8151_v42 = vld [vmem:[%s10599_s0 + $0x1c8] ss:$72 sps:$4 sm:$0xff]  }
 0x156   : > { %4284 = vmatmul.mubr.bf16.gmra.mrb[44].mxu1 %v8045_v22  ;;  %4429 = vmatmul.mubr.bf16.gmra.mrb[44].mxu0 %v8046_v23  ;;  %v8138_v22 = vld [vmem:[%s10599_s0 + $0x13c] ss:$72 sps:$4 sm:$0xff]   ;;  %v8152_v43 = vld [vmem:[%s10599_s0 + $0x1d0] ss:$72 sps:$4 sm:$0xff]  }
 0x157   : > { %4291 = vmatprep.mubr.bf16.mxu1 %v8047_v25  ;;  %4436 = vmatprep.mubr.bf16.mxu0 %v8049_v28  ;;  %v8140_v23 = vld [vmem:[%s10599_s0 + $0x144] ss:$72 sps:$4 sm:$0xff]   ;;  %v8160_v25 = vld [vmem:[%s9120_s11 + $0x310] sm:$0xff]   ;;  %v8170_v28 = vld [vmem:[%s9120_s11 + $0x298] sm:$0xff]  }
 0x15e   : > { %4292 = vmatmul.mubr.bf16.gmra.mrb[48].mxu1 %v8051_v30  ;;  %4437 = vmatmul.mubr.bf16.gmra.mrb[48].mxu0 %v8052_v31  ;;  %v8143_v30 = vld [vmem:[%s10599_s0 + $0x138] ss:$72 sps:$4 sm:$0xff]  }
 0x15f   : > { %4299 = vmatprep.mubr.bf16.mxu1 %v8057_v32  ;;  %4444 = vmatprep.mubr.bf16.mxu0 %v8059_v33  ;;  %v8144_v31 = vld [vmem:[%s10599_s0 + $0x140] ss:$72 sps:$4 sm:$0xff]   ;;  %v8147_v33 = vld [vmem:[%s10599_s0 + $0x1cc] ss:$72 sps:$4 sm:$0xff]  }
 0x160   : > { %v8185_v32 = vld [vmem:[%s9120_s11 + $0x2e0] sm:$0xff]  }
 0x166   : > { %4300 = vmatmul.mubr.bf16.gmra.mrb[52].mxu1 %v8061_v38  ;;  %4445 = vmatmul.mubr.bf16.gmra.mrb[52].mxu0 %v8062_v39  ;;  %v8195_v38 = vld [vmem:[%s9120_s11 + $0x2e8] sm:$0xff]  }
 0x167   : > { %4307 = vmatprep.mubr.bf16.mxu1 %v8063_v40  ;;  %4452 = vmatprep.mubr.bf16.mxu0 %v8065_v41  ;;  %v8203_v39 = vld [vmem:[%s9120_s11 + $0x368] sm:$0xff]  }
 0x168   : > { %v8200_v40 = vld [vmem:[%s9120_s11 + $0x2a8] sm:$0xff]  }
 0x169   : > { %v8204_v41 = vld [vmem:[%s9120_s11 + $0x328] sm:$0xff]  }
 0x16e   : > { %4308 = vmatmul.mubr.bf16.gmra.mrb[56].mxu1 %v8067_v44  ;;  %4453 = vmatmul.mubr.bf16.gmra.mrb[56].mxu0 %v8068_v45  ;;  %v8211_v44 = vld [vmem:[%s9120_s11 + $0x2f0] sm:$0xff]   ;;  %v8156_v45 = vld [vmem:[%s10599_s0 + $0x25c] ss:$72 sps:$4 sm:$0xff]  }
 0x16f   : > { %4315 = vmatprep.mubr.bf16.mxu1 %v8073_v46  ;;  %4460 = vmatprep.mubr.bf16.mxu0 %v8075_v47  ;;  %v8158_v46 = vld [vmem:[%s10599_s0 + $0x264] ss:$72 sps:$4 sm:$0xff]   ;;  %v8213_v47 = vld [vmem:[%s9120_s11 + $0x370] sm:$0xff]  }
 0x176   : > { %4316 = vmatmul.mubr.bf16.gmra.mrb[60].mxu1 %v8077_v48  ;;  %4461 = vmatmul.mubr.bf16.gmra.mrb[60].mxu0 %v8078_v49  ;;  %v8212_v48 = vld [vmem:[%s9120_s11 + $0x2b0] sm:$0xff]  }
 0x177   : > { %4323 = vmatprep.mubr.bf16.mxu1 %v8080_v50  ;;  %4468 = vmatprep.mubr.bf16.mxu0 %v8082_v51  ;;  %v8218_v49 = vld [vmem:[%s9120_s11 + $0x330] sm:$0xff]   ;;  %v8227_v50 = vld [vmem:[%s9120_s11 + $0x2f8] sm:$0xff]  }
 0x178   : > { %v8229_v51 = vld [vmem:[%s9120_s11 + $0x378] sm:$0xff]  }
 0x17e   : > { %4324 = vmatmul.mubr.bf16.gmra.mrb[64].mxu1 %v8085_v52  ;;  %4469 = vmatmul.mubr.bf16.gmra.mrb[64].mxu0 %v8086_v53  ;;  %v8228_v52 = vld [vmem:[%s9120_s11 + $0x2b8] sm:$0xff]  }
 0x17f   : > { %4331 = vmatprep.mubr.bf16.mxu1 %v8089_v54  ;;  %4476 = vmatprep.mubr.bf16.mxu0 %v8091_v55  ;;  %v8161_v53 = vld [vmem:[%s10599_s0 + $0x258] ss:$72 sps:$4 sm:$0xff]  }
 0x180   : > { %v8162_v54 = vld [vmem:[%s10599_s0 + $0x260] ss:$72 sps:$4 sm:$0xff]   ;;  %v8230_v55 = vld [vmem:[%s9120_s11 + $0x338] sm:$0xff]  }
 0x186   : > { %4332 = vmatmul.mubr.bf16.gmra.mrb[68].mxu1 %v8093_v56  ;;  %4477 = vmatmul.mubr.bf16.gmra.mrb[68].mxu0 %v8094_v57  ;;  %v8243_v56 = vld [vmem:[%s9120_s11 + $0x3c0] sm:$0xff]  }
 0x187   : > { %4339 = vmatprep.mubr.bf16.mxu1 %v8098_v58  ;;  %4484 = vmatprep.mubr.bf16.mxu0 %v8100_v59  ;;  %v8245_v57 = vld [vmem:[%s9120_s11 + $0x440] sm:$0xff]   ;;  %v8163_v58 = vld [vmem:[%s10599_s0 + $0x2ec] ss:$72 sps:$4 sm:$0xff]  }
 0x188   : > { %v8165_v59 = vld [vmem:[%s10599_s0 + $0x2f4] ss:$72 sps:$4 sm:$0xff]  }
 0x18e   : > { %4340 = vmatmul.mubr.bf16.gmra.mrb[72].mxu1 %v8103_v60  ;;  %4485 = vmatmul.mubr.bf16.gmra.mrb[72].mxu0 %v8104_v61  ;;  %v8167_v60 = vld [vmem:[%s10599_s0 + $0x2e8] ss:$72 sps:$4 sm:$0xff]  }
 0x18f   : > { %4347 = vmatprep.mubr.bf16.mxu1 %v8105_v62  ;;  %4492 = vmatprep.mubr.bf16.mxu0 %v8107_v63  ;;  %v8168_v61 = vld [vmem:[%s10599_s0 + $0x2f0] ss:$72 sps:$4 sm:$0xff]   ;;  %v8173_v62 = vld [vmem:[%s10599_s0 + $0x37c] ss:$72 sps:$4 sm:$0xff]  }
 0x190   : > { %v8175_v63 = vld [vmem:[%s10599_s0 + $0x384] ss:$72 sps:$4 sm:$0xff]  }
 0x196   : > { %4348 = vmatmul.mubr.bf16.gmra.mrb[76].mxu1 %v8109_v0  ;;  %4493 = vmatmul.mubr.bf16.gmra.mrb[76].mxu0 %v8110_v1 }
 0x197   : > { %4355 = vmatprep.mubr.bf16.mxu1 %v8115_v2  ;;  %4500 = vmatprep.mubr.bf16.mxu0 %v8117_v3  ;;  %v8177_v2 = vld [vmem:[%s10599_s0 + $0x378] ss:$72 sps:$4 sm:$0xff]  }
 0x198   : > { %v8178_v3 = vld [vmem:[%s10599_s0 + $0x380] ss:$72 sps:$4 sm:$0xff]  }
 0x19e   : > { %4356 = vmatmul.mubr.bf16.gmra.mrb[80].mxu1 %v8119_v4  ;;  %4501 = vmatmul.mubr.bf16.gmra.mrb[80].mxu0 %v8120_v5 }
 0x19f   : > { %4541 = vmatprep.mubr.bf16.mxu1 %v8123_v6  ;;  %4686 = vmatprep.mubr.bf16.mxu0 %v8126_v7 }
 0x1a6   : > { %4542 = vmatmul.mubr.bf16.vlgmr.msra.gmra.mrb[84].mxu1 %v8121_v8  ;;  %4687 = vmatmul.mubr.bf16.vlgmr.msra.gmra.mrb[84].mxu0 %v8124_v9 }
 0x1a7   : > { %7473 = vmatpush3.bf16.msra.mxu1 %v8128_v10  ;;  %7573 = vmatpush3.bf16.msra.mxu0 %v8130_v11  ;;  %v8179_v10 = vld [vmem:[%s10599_s0 + $0x40c] ss:$72 sps:$4 sm:$0xff]  }
 0x1a8   : > { %4549 = vmatprep.mubr.bf16.mxu1 %v8131_v12  ;;  %4694 = vmatprep.mubr.bf16.mxu0 %v8133_v13  ;;  %v8181_v11 = vld [vmem:[%s10599_s0 + $0x414] ss:$72 sps:$4 sm:$0xff]  }
 0x1a9   : > { %7474 = vmatprep.subr.bf16.mxu1 %v8137_v14  ;;  %7574 = vmatprep.subr.bf16.mxu0 %v8145_v15 }
 0x1ab   : > { %7475 = vmatpush3.bf16.msra.mxu1 %v8142_v16  ;;  %7575 = vmatpush3.bf16.msra.mxu0 %v8146_v17  ;;  %v8183_v16 = vld [vmem:[%s10599_s0 + $0x408] ss:$72 sps:$4 sm:$0xff]  }
 0x1ac   : > { %7476 = vmatprep.subr.bf16.mxu1 %v8153_v18  ;;  %7576 = vmatprep.subr.bf16.mxu0 %v8155_v21  ;;  %v8184_v17 = vld [vmem:[%s10599_s0 + $0x410] ss:$72 sps:$4 sm:$0xff]  }
 0x1ae   : > { %4550 = vmatmul.mubr.bf16.gmra.mrb[88].mxu1 %v8135_v19  ;;  %4695 = vmatmul.mubr.bf16.gmra.mrb[88].mxu0 %v8136_v20 }
 0x1af   : > { %4557 = vmatprep.mubr.bf16.mxu1 %v8138_v22  ;;  %4702 = vmatprep.mubr.bf16.mxu0 %v8140_v23 }
 0x1b0   : > { %7477 = vmatpush3.bf16.msra.mxu1 %v8154_v24  ;;  %7577 = vmatpush3.bf16.msra.mxu0 %v8160_v25 }
 0x1b1   : > { %7478 = vmatprep.subr.bf16.mxu1 %v8169_v26  ;;  %7578 = vmatprep.subr.bf16.mxu0 %v8171_v27  ;;  %v8189_v26 = vld [vmem:[%s10599_s0 + $0x49c] ss:$72 sps:$4 sm:$0xff]  }
 0x1b2   : > { %v8191_v27 = vld [vmem:[%s10599_s0 + $0x4a4] ss:$72 sps:$4 sm:$0xff]  }
 0x1b4   : > { %7479 = vmatpush3.bf16.msra.mxu1 %v8170_v28  ;;  %7579 = vmatpush3.bf16.msra.mxu0 %v8172_v29 }
 0x1b5   : > { %7480 = vmatprep.subr.bf16.mxu1 %v8185_v32  ;;  %7580 = vmatprep.subr.bf16.mxu0 %v8187_v34  ;;  %v8193_v34 = vld [vmem:[%s10599_s0 + $0x498] ss:$72 sps:$4 sm:$0xff]  }
 0x1b6   : > { %4558 = vmatmul.mubr.bf16.gmra.mrb[92].mxu1 %v8143_v30  ;;  %4703 = vmatmul.mubr.bf16.gmra.mrb[92].mxu0 %v8144_v31 }
 0x1b7   : > { %4565 = vmatprep.mubr.bf16.mxu1 %v8147_v33  ;;  %4710 = vmatprep.mubr.bf16.mxu0 %v8149_v35  ;;  %v8194_v35 = vld [vmem:[%s10599_s0 + $0x4a0] ss:$72 sps:$4 sm:$0xff]  }
 0x1b8   : > { %7481 = vmatpush3.bf16.msra.mxu1 %v8186_v36  ;;  %7581 = vmatpush3.bf16.msra.mxu0 %v8188_v37 }
 0x1b9   : > { %7482 = vmatprep.subr.bf16.mxu1 %v8195_v38  ;;  %7582 = vmatprep.subr.bf16.mxu0 %v8203_v39 }
 0x1bc   : > { %7483 = vmatpush3.bf16.msra.mxu1 %v8200_v40  ;;  %7583 = vmatpush3.bf16.msra.mxu0 %v8204_v41 }
 0x1bd   : > { %7484 = vmatprep.subr.bf16.mxu1 %v8211_v44  ;;  %7584 = vmatprep.subr.bf16.mxu0 %v8213_v47 }
 0x1be   : > { %4566 = vmatmul.mubr.bf16.gmra.mrb[96].mxu1 %v8151_v42  ;;  %4711 = vmatmul.mubr.bf16.gmra.mrb[96].mxu0 %v8152_v43  ;;  %v8196_v42 = vld [vmem:[%s10599_s0 + $0x52c] ss:$72 sps:$4 sm:$0xff]  }
 0x1bf   : > { %4573 = vmatprep.mubr.bf16.mxu1 %v8156_v45  ;;  %4718 = vmatprep.mubr.bf16.mxu0 %v8158_v46  ;;  %v8198_v43 = vld [vmem:[%s10599_s0 + $0x534] ss:$72 sps:$4 sm:$0xff]  }
 0x1c0   : > { %7485 = vmatpush3.bf16.msra.mxu1 %v8212_v48  ;;  %7585 = vmatpush3.bf16.msra.mxu0 %v8218_v49  ;;  %v8201_v48 = vld [vmem:[%s10599_s0 + $0x528] ss:$72 sps:$4 sm:$0xff]  }
 0x1c1   : > { %7486 = vmatprep.subr.bf16.mxu1 %v8227_v50  ;;  %7586 = vmatprep.subr.bf16.mxu0 %v8229_v51  ;;  %v8202_v49 = vld [vmem:[%s10599_s0 + $0x530] ss:$72 sps:$4 sm:$0xff]  }
 0x1c4   : > { %7487 = vmatpush3.bf16.msra.mxu1 %v8228_v52  ;;  %7587 = vmatpush3.bf16.msra.mxu0 %v8230_v55 }
 0x1c5   : > { %7672 = vmatprep.subr.bf16.mxu1 %v8243_v56  ;;  %7772 = vmatprep.subr.bf16.mxu0 %v8245_v57 }
 0x1c6   : > { %4574 = vmatmul.mubr.bf16.gmra.mrb[100].mxu1 %v8161_v53  ;;  %4719 = vmatmul.mubr.bf16.gmra.mrb[100].mxu0 %v8162_v54 }
 0x1c7   : > { %4581 = vmatprep.mubr.bf16.mxu1 %v8163_v58  ;;  %4726 = vmatprep.mubr.bf16.mxu0 %v8165_v59  ;;  %v8205_v58 = vld [vmem:[%s10599_s0 + $0x5bc] ss:$72 sps:$4 sm:$0xff]  }
 0x1c8   : > { %v8207_v59 = vld [vmem:[%s10599_s0 + $0x5c4] ss:$72 sps:$4 sm:$0xff]  }
 0x1ce   : > { %4582 = vmatmul.mubr.bf16.gmra.mrb[104].mxu1 %v8167_v60  ;;  %4727 = vmatmul.mubr.bf16.gmra.mrb[104].mxu0 %v8168_v61 }
 0x1cf   : > { %4589 = vmatprep.mubr.bf16.mxu1 %v8173_v62  ;;  %4734 = vmatprep.mubr.bf16.mxu0 %v8175_v63 }
 0x1d1   : > { %v6988_v0 = vpop.f32.mrb[0].mxu0  ;;  %v7030_v1 = vpop.f32.mrb[0].mxu1 }
 0x1d2   : > { %v6989_v4 = vpop.f32.mrb[1].mxu0  ;;  %v7031_v5 = vpop.f32.mrb[1].mxu1 }
 0x1d3   : > { %v9566_v6 = vadd.f32 %v6989_v4, %v6988_v0  ;;  %v9568_v7 = vadd.f32 %v7031_v5, %v7030_v1  ;;  %v6991_v8 = vpop.f32.mrb[2].mxu0  ;;  %v7033_v9 = vpop.f32.mrb[2].mxu1  ;;  %v8209_v0 = vld [vmem:[%s10599_s0 + $0x5b8] ss:$72 sps:$4 sm:$0xff]  }
 0x1d4   : > { %v6992_v12 = vpop.f32.mrb[3].mxu0  ;;  %v7034_v13 = vpop.f32.mrb[3].mxu1 }
 0x1d5   : > { %v9576_v14 = vadd.f32 %v6992_v12, %v6991_v8  ;;  %v9578_v15 = vadd.f32 %v7034_v13, %v7033_v9  ;;  %v8214_v12 = vld [vmem:[%s10599_s0 + $0x64c] ss:$72 sps:$4 sm:$0xff]  }
 0x1d6   : > { %4590 = vmatmul.mubr.bf16.gmra.mrb[108].mxu1 %v8177_v2  ;;  %4735 = vmatmul.mubr.bf16.gmra.mrb[108].mxu0 %v8178_v3  ;;  %v8210_v3 = vld [vmem:[%s10599_s0 + $0x5c0] ss:$72 sps:$4 sm:$0xff]   ;;  %v8216_v13 = vld [vmem:[%s10599_s0 + $0x654] ss:$72 sps:$4 sm:$0xff]  }
 0x1d7   : > { %4597 = vmatprep.mubr.bf16.mxu1 %v8179_v10  ;;  %4742 = vmatprep.mubr.bf16.mxu0 %v8181_v11 }
 0x1d9   : > { %v6994_v18 = vpop.f32.mrb[4].mxu0  ;;  %v7036_v19 = vpop.f32.mrb[4].mxu1 }
 0x1da   : > { %v6995_v20 = vpop.f32.mrb[5].mxu0  ;;  %v7037_v21 = vpop.f32.mrb[5].mxu1 }
 0x1db   : > { %v9586_v22 = vadd.f32 %v6995_v20, %v6994_v18  ;;  %v9588_v23 = vadd.f32 %v7037_v21, %v7036_v19  ;;  %v6997_v24 = vpop.f32.mrb[6].mxu0  ;;  %v7039_v25 = vpop.f32.mrb[6].mxu1  ;;  %v8219_v20 = vld [vmem:[%s10599_s0 + $0x648] ss:$72 sps:$4 sm:$0xff]  }
 0x1dc   : > { %v6998_v28 = vpop.f32.mrb[7].mxu0  ;;  %v7040_v29 = vpop.f32.mrb[7].mxu1 }
 0x1dd   : > { %v9596_v30 = vadd.f32 %v6998_v28, %v6997_v24  ;;  %v9598_v31 = vadd.f32 %v7040_v29, %v7039_v25  ;;  %v8220_v25 = vld [vmem:[%s10599_s0 + $0x650] ss:$72 sps:$4 sm:$0xff]  }
 0x1de   : > { %4598 = vmatmul.mubr.bf16.gmra.mrb[112].mxu1 %v8183_v16  ;;  %4743 = vmatmul.mubr.bf16.gmra.mrb[112].mxu0 %v8184_v17 }
 0x1df   : > { %4605 = vmatprep.mubr.bf16.mxu1 %v8189_v26  ;;  %4750 = vmatprep.mubr.bf16.mxu0 %v8191_v27 }
 0x1e1   : > { %v7000_v32 = vpop.f32.mrb[8].mxu0  ;;  %v7042_v33 = vpop.f32.mrb[8].mxu1 }
 0x1e2   : > { %v7001_v36 = vpop.f32.mrb[9].mxu0  ;;  %v7043_v37 = vpop.f32.mrb[9].mxu1 }
 0x1e3   : > { %v9606_v38 = vadd.f32 %v7001_v36, %v7000_v32  ;;  %v9608_v39 = vadd.f32 %v7043_v37, %v7042_v33  ;;  %v7003_v40 = vpop.f32.mrb[10].mxu0  ;;  %v7045_v41 = vpop.f32.mrb[10].mxu1 }
 0x1e4   : > { %v7004_v44 = vpop.f32.mrb[11].mxu0  ;;  %v7046_v45 = vpop.f32.mrb[11].mxu1 }
 0x1e5   : > { %v9616_v46 = vadd.f32 %v7004_v44, %v7003_v40  ;;  %v9618_v47 = vadd.f32 %v7046_v45, %v7045_v41 }
 0x1e6   : > { %4606 = vmatmul.mubr.bf16.gmra.mrb[116].mxu1 %v8193_v34  ;;  %4751 = vmatmul.mubr.bf16.gmra.mrb[116].mxu0 %v8194_v35  ;;  %v8221_v34 = vld [vmem:[%s10599_s0 + $0x6dc] ss:$72 sps:$4 sm:$0xff]  }
 0x1e7   : > { %4613 = vmatprep.mubr.bf16.mxu1 %v8196_v42  ;;  %4758 = vmatprep.mubr.bf16.mxu0 %v8198_v43  ;;  %v8223_v35 = vld [vmem:[%s10599_s0 + $0x6e4] ss:$72 sps:$4 sm:$0xff]  }
 0x1e9   : > { %v7006_v50 = vpop.f32.mrb[12].mxu0  ;;  %v7048_v51 = vpop.f32.mrb[12].mxu1 }
 0x1ea   : > { %v7007_v52 = vpop.f32.mrb[13].mxu0  ;;  %v7049_v53 = vpop.f32.mrb[13].mxu1 }
 0x1eb   : > { %v9626_v54 = vadd.f32 %v7007_v52, %v7006_v50  ;;  %v9628_v55 = vadd.f32 %v7049_v53, %v7048_v51  ;;  %v7009_v56 = vpop.f32.mrb[14].mxu0  ;;  %v7051_v57 = vpop.f32.mrb[14].mxu1 }
 0x1ec   : > { %v7010_v60 = vpop.f32.mrb[15].mxu0  ;;  %v7052_v61 = vpop.f32.mrb[15].mxu1 }
 0x1ed   : > { %v9636_v62 = vadd.f32 %v7010_v60, %v7009_v56  ;;  %v9638_v63 = vadd.f32 %v7052_v61, %v7051_v57  ;;  %v8231_v56 = vld [vmem:[%s10599_s0 + $0x76c] ss:$72 sps:$4 sm:$0xff]  }
 0x1ee   : > { %4614 = vmatmul.mubr.bf16.gmra.mrb[120].mxu1 %v8201_v48  ;;  %4759 = vmatmul.mubr.bf16.gmra.mrb[120].mxu0 %v8202_v49  ;;  %v8225_v48 = vld [vmem:[%s10599_s0 + $0x6d8] ss:$72 sps:$4 sm:$0xff]   ;;  %v8233_v57 = vld [vmem:[%s10599_s0 + $0x774] ss:$72 sps:$4 sm:$0xff]  }
 0x1ef   : > { %4621 = vmatprep.mubr.bf16.mxu1 %v8205_v58  ;;  %4766 = vmatprep.mubr.bf16.mxu0 %v8207_v59  ;;  %v8226_v49 = vld [vmem:[%s10599_s0 + $0x6e0] ss:$72 sps:$4 sm:$0xff]  }
 0x1f1   : > { %v7012_v1 = vpop.f32.mrb[16].mxu0  ;;  %v7054_v2 = vpop.f32.mrb[16].mxu1 }
 0x1f2   : > { %v7013_v4 = vpop.f32.mrb[17].mxu0  ;;  %v7055_v5 = vpop.f32.mrb[17].mxu1 }
 0x1f3   : > { %v9646_v8 = vadd.f32 %v7013_v4, %v7012_v1  ;;  %v9648_v9 = vadd.f32 %v7055_v5, %v7054_v2  ;;  %v7015_v10 = vpop.f32.mrb[18].mxu0  ;;  %v7057_v11 = vpop.f32.mrb[18].mxu1  ;;  %v8235_v4 = vld [vmem:[%s10599_s0 + $0x768] ss:$72 sps:$4 sm:$0xff]  }
 0x1f4   : > { %v7016_v16 = vpop.f32.mrb[19].mxu0  ;;  %v7058_v17 = vpop.f32.mrb[19].mxu1  ;;  %v8236_v5 = vld [vmem:[%s10599_s0 + $0x770] ss:$72 sps:$4 sm:$0xff]  }
 0x1f5   : > { %v9656_v18 = vadd.f32 %v7016_v16, %v7015_v10  ;;  %v9658_v19 = vadd.f32 %v7058_v17, %v7057_v11  ;;  %v8239_v16 = vld [vmem:[%s10599_s0 + $0x2c] ss:$72 sps:$4 sm:$0xff]  }
 0x1f6   : > { %4622 = vmatmul.mubr.bf16.gmra.mrb[124].mxu1 %v8209_v0  ;;  %4767 = vmatmul.mubr.bf16.gmra.mrb[124].mxu0 %v8210_v3  ;;  %v8242_v17 = vld [vmem:[%s10599_s0 + $0x34] ss:$72 sps:$4 sm:$0xff]  }
 0x1f7   : > { %4629 = vmatprep.mubr.bf16.mxu1 %v8214_v12  ;;  %4774 = vmatprep.mubr.bf16.mxu0 %v8216_v13 }
 0x1f9   : > { %v7018_v21 = vpop.f32.mrb[20].mxu0  ;;  %v7060_v24 = vpop.f32.mrb[20].mxu1 }
 0x1fa   : > { %v7019_v26 = vpop.f32.mrb[21].mxu0  ;;  %v7061_v27 = vpop.f32.mrb[21].mxu1 }
 0x1fb   : > { %v9666_v28 = vadd.f32 %v7019_v26, %v7018_v21  ;;  %v9668_v29 = vadd.f32 %v7061_v27, %v7060_v24  ;;  %v7021_v32 = vpop.f32.mrb[22].mxu0  ;;  %v7063_v33 = vpop.f32.mrb[22].mxu1 }
 0x1fc   : > { %v7022_v36 = vpop.f32.mrb[23].mxu0  ;;  %v7064_v37 = vpop.f32.mrb[23].mxu1 }
 0x1fd   : > { %v9676_v40 = vadd.f32 %v7022_v36, %v7021_v32  ;;  %v9678_v41 = vadd.f32 %v7064_v37, %v7063_v33 }
 0x1fe   : > { %4630 = vmatmul.mubr.bf16.gmra.mrb[128].mxu1 %v8219_v20  ;;  %4775 = vmatmul.mubr.bf16.gmra.mrb[128].mxu0 %v8220_v25 }
 0x1ff   : > { %4637 = vmatprep.mubr.bf16.mxu1 %v8221_v34  ;;  %4782 = vmatprep.mubr.bf16.mxu0 %v8223_v35 }
 0x201   : > { %v7024_v42 = vpop.f32.mrb[24].mxu0  ;;  %v7066_v43 = vpop.f32.mrb[24].mxu1 }
 0x202   : > { %v7025_v44 = vpop.f32.mrb[25].mxu0  ;;  %v7067_v45 = vpop.f32.mrb[25].mxu1 }
 0x203   : > { %v9686_v50 = vadd.f32 %v7025_v44, %v7024_v42  ;;  %v9688_v51 = vadd.f32 %v7067_v45, %v7066_v43  ;;  %v7027_v52 = vpop.f32.mrb[26].mxu0  ;;  %v7069_v53 = vpop.f32.mrb[26].mxu1  ;;  %v8240_v42 = vld [vmem:[%s10599_s0 + $0x30] ss:$72 sps:$4 sm:$0xff]  }
 0x204   : > { %v7028_v58 = vpop.f32.mrb[27].mxu0  ;;  %v7070_v59 = vpop.f32.mrb[27].mxu1 }
 0x205   : > { %v9696_v60 = vadd.f32 %v7028_v58, %v7027_v52  ;;  %v9698_v61 = vadd.f32 %v7070_v59, %v7069_v53 }
 0x206   : > { %4638 = vmatmul.mubr.bf16.gmra.mrb[132].mxu1 %v8225_v48  ;;  %4783 = vmatmul.mubr.bf16.gmra.mrb[132].mxu0 %v8226_v49  ;;  %v8244_v48 = vld [vmem:[%s9120_s11 + $0x380] sm:$0xff]  }
 0x207   : > { %4645 = vmatprep.mubr.bf16.mxu1 %v8231_v56  ;;  %4790 = vmatprep.mubr.bf16.mxu0 %v8233_v57  ;;  %v8246_v49 = vld [vmem:[%s9120_s11 + $0x400] sm:$0xff]  }
 0x208   : > { %v8247_v56 = vld [vmem:[%s10599_s0 + $0xbc] ss:$72 sps:$4 sm:$0xff]  }
 0x209   : > { %v7088_v0 = vpop.f32.mrb[28].mxu1  ;;  %v7188_v1 = vpop.f32.mrb[28].mxu0  ;;  %v8249_v57 = vld [vmem:[%s10599_s0 + $0xc4] ss:$72 sps:$4 sm:$0xff]  }
 0x20a   : > { %v7089_v2 = vpop.f32.mrb[29].mxu1  ;;  %v7189_v3 = vpop.f32.mrb[29].mxu0 }
 0x20b   : > { %v7090_v10 = vadd.f32 %v7089_v2, %v7088_v0  ;;  %v7190_v11 = vadd.f32 %v7189_v3, %v7188_v1  ;;  %v7091_v12 = vpop.f32.mrb[30].mxu1  ;;  %v7191_v13 = vpop.f32.mrb[30].mxu0  ;;  %v8253_v1 = vld [vmem:[%s9120_s11 + $0x3c8] sm:$0xff]  }
 0x20c   : > { %v7092_v20 = vpop.f32.mrb[31].mxu1  ;;  %v7192_v21 = vpop.f32.mrb[31].mxu0  ;;  %v8261_v2 = vld [vmem:[%s9120_s11 + $0x448] sm:$0xff]  }
 0x20d   : > { %v4254_v24 = vadd.f32 %v7090_v10, %v9566_v6  ;;  %v7093_v25 = vadd.f32 %v7092_v20, %v7091_v12  ;;  %v7193_v26 = vadd.f32 %v7192_v21, %v7191_v13  ;;  %v8237_v6 = vld [vmem:[%s10599_s0 + $0x28] ss:$72 sps:$4 sm:$0xff]  }
 0x20e   : > { %4646 = vmatmul.mubr.bf16.gmra.mrb[136].mxu1 %v8235_v4  ;;  %4791 = vmatmul.mubr.bf16.gmra.mrb[136].mxu0 %v8236_v5  ;;  %v8258_v5 = vld [vmem:[%s9120_s11 + $0x388] sm:$0xff]   ;;  %v8271_v12 = vld [vmem:[%s9120_s11 + $0x450] sm:$0xff]  }
 0x20f   : > { %v9713_v27 = vadd.f32 %v7190_v11, %v4254_v24  ;;  %v4257_v32 = vadd.f32 %v7093_v25, %v9576_v14  ;;  %4831 = vmatprep.mubr.bf16.mxu1 %v8239_v16  ;;  %4976 = vmatprep.mubr.bf16.mxu0 %v8242_v17  ;;  %v8262_v10 = vld [vmem:[%s9120_s11 + $0x408] sm:$0xff]   ;;  %v8269_v11 = vld [vmem:[%s9120_s11 + $0x3d0] sm:$0xff]  }
 0x210   : > { %v8252_v21 = vld [vmem:[%s10599_s0 + $0xc0] ss:$72 sps:$4 sm:$0xff]  }
 0x211   : > { %v9716_v33 = vadd.f32 %v7193_v26, %v4257_v32  ;;  %v7094_v34 = vpop.f32.mrb[32].mxu1  ;;  %v7194_v35 = vpop.f32.mrb[32].mxu0 }
 0x212   : > { %v7095_v36 = vpop.f32.mrb[33].mxu1  ;;  %v7195_v37 = vpop.f32.mrb[33].mxu0 }
 0x213   : > { %v7096_v43 = vadd.f32 %v7095_v36, %v7094_v34  ;;  %v7196_v14 = vadd.f32 %v7195_v37, %v7194_v35  ;;  %v7097_v44 = vpop.f32.mrb[34].mxu1  ;;  %v7197_v45 = vpop.f32.mrb[34].mxu0  ;;  %v8254_v34 = vld [vmem:[%s10599_s0 + $0x14c] ss:$72 sps:$4 sm:$0xff]  }
 0x214   : > { %v7098_v52 = vpop.f32.mrb[35].mxu1  ;;  %v7198_v53 = vpop.f32.mrb[35].mxu0  ;;  %v8256_v35 = vld [vmem:[%s10599_s0 + $0x154] ss:$72 sps:$4 sm:$0xff]  }
 0x215   : > { %v4262_v58 = vadd.f32 %v7096_v43, %v9586_v22  ;;  %v7099_v59 = vadd.f32 %v7098_v52, %v7097_v44  ;;  %v7199_v0 = vadd.f32 %v7198_v53, %v7197_v45  ;;  %v8285_v45 = vld [vmem:[%s9120_s11 + $0x3d8] sm:$0xff]  }
 0x216   : > { %4832 = vmatmul.mubr.bf16.vlgmr.msra.gmra.mrb[140].mxu1 %v8237_v6  ;;  %4977 = vmatmul.mubr.bf16.vlgmr.msra.gmra.mrb[140].mxu0 %v8240_v42  ;;  %v8270_v6 = vld [vmem:[%s9120_s11 + $0x390] sm:$0xff]   ;;  %v8286_v53 = vld [vmem:[%s9120_s11 + $0x398] sm:$0xff]  }
 0x217   : > { %v9735_v3 = vadd.f32 %v7196_v14, %v4262_v58  ;;  %v4265_v4 = vadd.f32 %v7099_v59, %v9596_v30  ;;  %7673 = vmatpush3.bf16.msra.mxu1 %v8244_v48  ;;  %7773 = vmatpush3.bf16.msra.mxu0 %v8246_v49  ;;  %v8251_v30 = vld [vmem:[%s10599_s0 + $0xb8] ss:$72 sps:$4 sm:$0xff]   ;;  %v8276_v42 = vld [vmem:[%s9120_s11 + $0x410] sm:$0xff]  }
 0x218   : > { %4839 = vmatprep.mubr.bf16.mxu1 %v8247_v56  ;;  %4984 = vmatprep.mubr.bf16.mxu0 %v8249_v57  ;;  %v8287_v48 = vld [vmem:[%s9120_s11 + $0x458] sm:$0xff]   ;;  %v8301_v59 = vld [vmem:[%s9120_s11 + $0x3e0] sm:$0xff]  }
 0x219   : > { %v9742_v22 = vadd.f32 %v7199_v0, %v4265_v4  ;;  %v7100_v13 = vpop.f32.mrb[36].mxu1  ;;  %v7200_v16 = vpop.f32.mrb[36].mxu0  ;;  %7674 = vmatprep.subr.bf16.mxu1 %v8253_v1  ;;  %7774 = vmatprep.subr.bf16.mxu0 %v8261_v2  ;;  %v8288_v56 = vld [vmem:[%s9120_s11 + $0x418] sm:$0xff]   ;;  %v8303_v0 = vld [vmem:[%s9120_s11 + $0x460] sm:$0xff]  }
 0x21a   : > { %v7101_v17 = vpop.f32.mrb[37].mxu1  ;;  %v7201_v20 = vpop.f32.mrb[37].mxu0  ;;  %v8260_v4 = vld [vmem:[%s10599_s0 + $0x150] ss:$72 sps:$4 sm:$0xff]  }
 0x21b   : > { %v7102_v24 = vadd.f32 %v7101_v17, %v7100_v13  ;;  %v7202_v25 = vadd.f32 %v7201_v20, %v7200_v16  ;;  %v7103_v26 = vpop.f32.mrb[38].mxu1  ;;  %v7203_v32 = vpop.f32.mrb[38].mxu0  ;;  %7675 = vmatpush3.bf16.msra.mxu1 %v8258_v5  ;;  %7775 = vmatpush3.bf16.msra.mxu0 %v8262_v10  ;;  %v8263_v13 = vld [vmem:[%s10599_s0 + $0x1dc] ss:$72 sps:$4 sm:$0xff]  }
 0x21c   : > { %v7104_v36 = vpop.f32.mrb[39].mxu1  ;;  %v7204_v37 = vpop.f32.mrb[39].mxu0  ;;  %7676 = vmatprep.subr.bf16.mxu1 %v8269_v11  ;;  %7776 = vmatprep.subr.bf16.mxu0 %v8271_v12  ;;  %v8265_v16 = vld [vmem:[%s10599_s0 + $0x1e4] ss:$72 sps:$4 sm:$0xff]  }
 0x21d   : > { %v4270_v43 = vadd.f32 %v7102_v24, %v9606_v38  ;;  %v7105_v14 = vadd.f32 %v7104_v36, %v7103_v26  ;;  %v7205_v44 = vadd.f32 %v7204_v37, %v7203_v32  ;;  %v8311_v32 = vld [vmem:[%s9120_s11 + $0x3e8] sm:$0xff]  }
 0x21e   : > { %4840 = vmatmul.mubr.bf16.gmra.mrb[144].mxu1 %v8251_v30  ;;  %4985 = vmatmul.mubr.bf16.gmra.mrb[144].mxu0 %v8252_v21  ;;  %v8302_v30 = vld [vmem:[%s9120_s11 + $0x3a0] sm:$0xff]   ;;  %v8320_v37 = vld [vmem:[%s9120_s11 + $0x428] sm:$0xff]  }
 0x21f   : > { %v9761_v49 = vadd.f32 %v7202_v25, %v4270_v43  ;;  %v4273_v52 = vadd.f32 %v7105_v14, %v9616_v46  ;;  %4847 = vmatprep.mubr.bf16.mxu1 %v8254_v34  ;;  %4992 = vmatprep.mubr.bf16.mxu0 %v8256_v35  ;;  %v8259_v46 = vld [vmem:[%s10599_s0 + $0x148] ss:$72 sps:$4 sm:$0xff]   ;;  %v8304_v21 = vld [vmem:[%s9120_s11 + $0x420] sm:$0xff]  }
 0x220   : > { %7677 = vmatpush3.bf16.msra.mxu1 %v8270_v6  ;;  %7777 = vmatpush3.bf16.msra.mxu0 %v8276_v42  ;;  %v8319_v34 = vld [vmem:[%s9120_s11 + $0x468] sm:$0xff]   ;;  %v8327_v14 = vld [vmem:[%s9120_s11 + $0x3f0] sm:$0xff]  }
 0x221   : > { %v9766_v57 = vadd.f32 %v7205_v44, %v4273_v52  ;;  %v7106_v38 = vpop.f32.mrb[40].mxu1  ;;  %v7206_v58 = vpop.f32.mrb[40].mxu0  ;;  %7678 = vmatprep.subr.bf16.mxu1 %v8285_v45  ;;  %7778 = vmatprep.subr.bf16.mxu0 %v8287_v48  ;;  %v8329_v44 = vld [vmem:[%s9120_s11 + $0x470] sm:$0xff]   ;;  %v8268_v52 = vld [vmem:[%s10599_s0 + $0x1e0] ss:$72 sps:$4 sm:$0xff]  }
 0x222   : > { %v7107_v1 = vpop.f32.mrb[41].mxu1  ;;  %v7207_v2 = vpop.f32.mrb[41].mxu0 }
 0x223   : > { %v7108_v5 = vadd.f32 %v7107_v1, %v7106_v38  ;;  %v7208_v10 = vadd.f32 %v7207_v2, %v7206_v58  ;;  %v7109_v11 = vpop.f32.mrb[42].mxu1  ;;  %v7209_v12 = vpop.f32.mrb[42].mxu0 }
 0x224   : > { %v7110_v17 = vpop.f32.mrb[43].mxu1  ;;  %v7210_v20 = vpop.f32.mrb[43].mxu0  ;;  %7679 = vmatpush3.bf16.msra.mxu1 %v8286_v53  ;;  %7779 = vmatpush3.bf16.msra.mxu0 %v8288_v56 }
 0x225   : > { %v4278_v24 = vadd.f32 %v7108_v5, %v9626_v54  ;;  %v7111_v25 = vadd.f32 %v7110_v17, %v7109_v11  ;;  %v7211_v26 = vadd.f32 %v7210_v20, %v7209_v12  ;;  %7680 = vmatprep.subr.bf16.mxu1 %v8301_v59  ;;  %7780 = vmatprep.subr.bf16.mxu0 %v8303_v0  ;;  %v8316_v54 = vld [vmem:[%s9120_s11 + $0x3a8] sm:$0xff]   ;;  %v8274_v0 = vld [vmem:[%s10599_s0 + $0x274] ss:$72 sps:$4 sm:$0xff]  }
 0x226   : > { %4848 = vmatmul.mubr.bf16.gmra.mrb[148].mxu1 %v8259_v46  ;;  %4993 = vmatmul.mubr.bf16.gmra.mrb[148].mxu0 %v8260_v4  ;;  %v8272_v59 = vld [vmem:[%s10599_s0 + $0x26c] ss:$72 sps:$4 sm:$0xff]   ;;  %v8343_v12 = vld [vmem:[%s9120_s11 + $0x3f8] sm:$0xff]  }
 0x227   : > { %v9787_v35 = vadd.f32 %v7208_v10, %v4278_v24  ;;  %v4281_v36 = vadd.f32 %v7111_v25, %v9636_v62  ;;  %4855 = vmatprep.mubr.bf16.mxu1 %v8263_v13  ;;  %5000 = vmatprep.mubr.bf16.mxu0 %v8265_v16  ;;  %v8267_v62 = vld [vmem:[%s10599_s0 + $0x1d8] ss:$72 sps:$4 sm:$0xff]   ;;  %v8328_v46 = vld [vmem:[%s9120_s11 + $0x3b0] sm:$0xff]  }
 0x228   : > { %7681 = vmatpush3.bf16.msra.mxu1 %v8302_v30  ;;  %7781 = vmatpush3.bf16.msra.mxu0 %v8304_v21  ;;  %v8334_v4 = vld [vmem:[%s9120_s11 + $0x430] sm:$0xff]   ;;  %v8345_v13 = vld [vmem:[%s9120_s11 + $0x478] sm:$0xff]  }
 0x229   : > { %v9792_v6 = vadd.f32 %v7211_v26, %v4281_v36  ;;  %v7112_v42 = vpop.f32.mrb[44].mxu1  ;;  %v7212_v43 = vpop.f32.mrb[44].mxu0  ;;  %7682 = vmatprep.subr.bf16.mxu1 %v8311_v32  ;;  %7782 = vmatprep.subr.bf16.mxu0 %v8319_v34  ;;  %v8344_v20 = vld [vmem:[%s9120_s11 + $0x3b8] sm:$0xff]   ;;  %v8277_v32 = vld [vmem:[%s10599_s0 + $0x268] ss:$72 sps:$4 sm:$0xff]  }
 0x22a   : > { %v7113_v45 = vpop.f32.mrb[45].mxu1  ;;  %v7213_v48 = vpop.f32.mrb[45].mxu0  ;;  %v8346_v30 = vld [vmem:[%s9120_s11 + $0x438] sm:$0xff]   ;;  %s1408_s11 = scalar_lea.vmem %s10602_s3, %s1404_s20 }
 0x22b   : > { %v7114_v53 = vadd.f32 %v7113_v45, %v7112_v42  ;;  %v7214_v56 = vadd.f32 %v7213_v48, %v7212_v43  ;;  %v7115_v38 = vpop.f32.mrb[46].mxu1  ;;  %v7215_v58 = vpop.f32.mrb[46].mxu0  ;;  %v8279_v42 = vld [vmem:[%s10599_s0 + $0x2fc] ss:$72 sps:$4 sm:$0xff]  }
 0x22c   : > { %v7116_v1 = vpop.f32.mrb[47].mxu1  ;;  %v7216_v2 = vpop.f32.mrb[47].mxu0  ;;  %7683 = vmatpush3.bf16.msra.mxu1 %v8316_v54  ;;  %7783 = vmatpush3.bf16.msra.mxu0 %v8320_v37  ;;  %v8281_v43 = vld [vmem:[%s10599_s0 + $0x304] ss:$72 sps:$4 sm:$0xff]  }
 0x22d   : > { %v4286_v5 = vadd.f32 %v7114_v53, %v9646_v8  ;;  %v7117_v10 = vadd.f32 %v7116_v1, %v7115_v38  ;;  %v7217_v11 = vadd.f32 %v7216_v2, %v7215_v58  ;;  %7684 = vmatprep.subr.bf16.mxu1 %v8327_v14  ;;  %7784 = vmatprep.subr.bf16.mxu0 %v8329_v44  ;;  %v8284_v1 = vld [vmem:[%s10599_s0 + $0x300] ss:$72 sps:$4 sm:$0xff]  }
 0x22e   : > { %4856 = vmatmul.mubr.bf16.gmra.mrb[152].mxu1 %v8267_v62  ;;  %5001 = vmatmul.mubr.bf16.gmra.mrb[152].mxu0 %v8268_v52 }
 0x22f   : > { %v9813_v16 = vadd.f32 %v7214_v56, %v4286_v5  ;;  %v4289_v17 = vadd.f32 %v7117_v10, %v9656_v18  ;;  %4863 = vmatprep.mubr.bf16.mxu1 %v8272_v59  ;;  %5008 = vmatprep.mubr.bf16.mxu0 %v8274_v0  ;;  %v8278_v18 = vld [vmem:[%s10599_s0 + $0x270] ss:$72 sps:$4 sm:$0xff]   ;;  %v8289_v5 = vld [vmem:[%s10599_s0 + $0x38c] ss:$72 sps:$4 sm:$0xff]  }
 0x230   : > { %7685 = vmatpush3.bf16.msra.mxu1 %v8328_v46  ;;  %7785 = vmatpush3.bf16.msra.mxu0 %v8334_v4  ;;  %v8291_v10 = vld [vmem:[%s10599_s0 + $0x394] ss:$72 sps:$4 sm:$0xff]  }
 0x231   : > { %v9818_v8 = vadd.f32 %v7217_v11, %v4289_v17  ;;  %v7118_v21 = vpop.f32.mrb[48].mxu1  ;;  %v7218_v24 = vpop.f32.mrb[48].mxu0  ;;  %7686 = vmatprep.subr.bf16.mxu1 %v8343_v12  ;;  %7786 = vmatprep.subr.bf16.mxu0 %v8345_v13 }
 0x232   : > { %v7119_v25 = vpop.f32.mrb[49].mxu1  ;;  %v7219_v26 = vpop.f32.mrb[49].mxu0 }
 0x233   : > { %v7120_v34 = vadd.f32 %v7119_v25, %v7118_v21  ;;  %v7220_v36 = vadd.f32 %v7219_v26, %v7218_v24  ;;  %v7121_v54 = vpop.f32.mrb[50].mxu1  ;;  %v7221_v37 = vpop.f32.mrb[50].mxu0 }
 0x234   : > { %v7122_v14 = vpop.f32.mrb[51].mxu1  ;;  %v7222_v44 = vpop.f32.mrb[51].mxu0  ;;  %7687 = vmatpush3.bf16.msra.mxu1 %v8344_v20  ;;  %7787 = vmatpush3.bf16.msra.mxu0 %v8346_v30 }
 0x235   : > { %v4294_v45 = vadd.f32 %v7120_v34, %v9666_v28  ;;  %v7123_v48 = vadd.f32 %v7122_v14, %v7121_v54  ;;  %v7223_v62 = vadd.f32 %v7222_v44, %v7221_v37  ;;  %v8283_v28 = vld [vmem:[%s10599_s0 + $0x2f8] ss:$72 sps:$4 sm:$0xff]  }
 0x236   : > { %4864 = vmatmul.mubr.bf16.gmra.mrb[156].mxu1 %v8277_v32  ;;  %5009 = vmatmul.mubr.bf16.gmra.mrb[156].mxu0 %v8278_v18  ;;  %v8294_v34 = vld [vmem:[%s10599_s0 + $0x390] ss:$72 sps:$4 sm:$0xff]  }
 0x237   : > { %v9833_v52 = vadd.f32 %v7220_v36, %v4294_v45  ;;  %v4297_v53 = vadd.f32 %v7123_v48, %v9676_v40  ;;  %4871 = vmatprep.mubr.bf16.mxu1 %v8279_v42  ;;  %5016 = vmatprep.mubr.bf16.mxu0 %v8281_v43  ;;  %v8295_v42 = vld [vmem:[%s10599_s0 + $0x41c] ss:$72 sps:$4 sm:$0xff]  }
 0x238   : > { %v8297_v43 = vld [vmem:[%s10599_s0 + $0x424] ss:$72 sps:$4 sm:$0xff]  }
 0x239   : > { %v9836_v56 = vadd.f32 %v7223_v62, %v4297_v53  ;;  %v7124_v38 = vpop.f32.mrb[52].mxu1  ;;  %v7224_v58 = vpop.f32.mrb[52].mxu0 }
 0x23a   : > { %v7125_v59 = vpop.f32.mrb[53].mxu1  ;;  %v7225_v0 = vpop.f32.mrb[53].mxu0 }
 0x23b   : > { %v7126_v2 = vadd.f32 %v7125_v59, %v7124_v38  ;;  %v7226_v46 = vadd.f32 %v7225_v0, %v7224_v58  ;;  %v7127_v4 = vpop.f32.mrb[54].mxu1  ;;  %v7227_v40 = vpop.f32.mrb[54].mxu0 }
 0x23c   : > { %v7128_v11 = vpop.f32.mrb[55].mxu1  ;;  %v7228_v12 = vpop.f32.mrb[55].mxu0 }
 0x23d   : > { %v4302_v13 = vadd.f32 %v7126_v2, %v9686_v50  ;;  %v7129_v17 = vadd.f32 %v7128_v11, %v7127_v4  ;;  %v7229_v20 = vadd.f32 %v7228_v12, %v7227_v40  ;;  %v8293_v50 = vld [vmem:[%s10599_s0 + $0x388] ss:$72 sps:$4 sm:$0xff]  }
 0x23e   : > { %4872 = vmatmul.mubr.bf16.gmra.mrb[160].mxu1 %v8283_v28  ;;  %5017 = vmatmul.mubr.bf16.gmra.mrb[160].mxu0 %v8284_v1  ;;  %v8300_v2 = vld [vmem:[%s10599_s0 + $0x420] ss:$72 sps:$4 sm:$0xff]  }
 0x23f   : > { %v9851_v30 = vadd.f32 %v7226_v46, %v4302_v13  ;;  %v4305_v21 = vadd.f32 %v7129_v17, %v9696_v60  ;;  %4879 = vmatprep.mubr.bf16.mxu1 %v8289_v5  ;;  %5024 = vmatprep.mubr.bf16.mxu0 %v8291_v10  ;;  %v8305_v5 = vld [vmem:[%s10599_s0 + $0x4ac] ss:$72 sps:$4 sm:$0xff]  }
 0x240   : > { %v8307_v10 = vld [vmem:[%s10599_s0 + $0x4b4] ss:$72 sps:$4 sm:$0xff]  }
 0x241   : > { %v9854_v24 = vadd.f32 %v7229_v20, %v4305_v21  ;;  %v7130_v25 = vpop.f32.mrb[56].mxu1  ;;  %v7230_v26 = vpop.f32.mrb[56].mxu0 }
 0x242   : > { %v7131_v32 = vpop.f32.mrb[57].mxu1  ;;  %v7231_v18 = vpop.f32.mrb[57].mxu0 }
 0x243   : > { %v7132_v36 = vadd.f32 %v7131_v32, %v7130_v25  ;;  %v7232_v54 = vadd.f32 %v7231_v18, %v7230_v26  ;;  %v7133_v37 = vpop.f32.mrb[58].mxu1  ;;  %v7233_v60 = vpop.f32.mrb[58].mxu0 }
 0x244   : > { %v7134_v14 = vpop.f32.mrb[59].mxu1  ;;  %v7234_v44 = vpop.f32.mrb[59].mxu0 }
 0x245   : > { %v4310_v45 = vadd.f32 %v7132_v36, %v9568_v7  ;;  %v7135_v48 = vadd.f32 %v7134_v14, %v7133_v37  ;;  %v7235_v62 = vadd.f32 %v7234_v44, %v7233_v60  ;;  %v8299_v7 = vld [vmem:[%s10599_s0 + $0x418] ss:$72 sps:$4 sm:$0xff]  }
 0x246   : > { %4880 = vmatmul.mubr.bf16.gmra.mrb[164].mxu1 %v8293_v50  ;;  %5025 = vmatmul.mubr.bf16.gmra.mrb[164].mxu0 %v8294_v34  ;;  %v8310_v36 = vld [vmem:[%s10599_s0 + $0x4b0] ss:$72 sps:$4 sm:$0xff]  }
 0x247   : > { %v9869_v53 = vadd.f32 %v7232_v54, %v4310_v45  ;;  %v4313_v38 = vadd.f32 %v7135_v48, %v9578_v15  ;;  %4887 = vmatprep.mubr.bf16.mxu1 %v8295_v42  ;;  %5032 = vmatprep.mubr.bf16.mxu0 %v8297_v43  ;;  %v8312_v42 = vld [vmem:[%s10599_s0 + $0x53c] ss:$72 sps:$4 sm:$0xff]  }
 0x248   : > { %v8314_v43 = vld [vmem:[%s10599_s0 + $0x544] ss:$72 sps:$4 sm:$0xff]  }
 0x249   : > { %v9872_v58 = vadd.f32 %v7235_v62, %v4313_v38  ;;  %v7136_v59 = vpop.f32.mrb[60].mxu1  ;;  %v7236_v0 = vpop.f32.mrb[60].mxu0 }
 0x24a   : > { %v7137_v28 = vpop.f32.mrb[61].mxu1  ;;  %v7237_v1 = vpop.f32.mrb[61].mxu0 }
 0x24b   : > { %v7138_v46 = vadd.f32 %v7137_v28, %v7136_v59  ;;  %v7238_v4 = vadd.f32 %v7237_v1, %v7236_v0  ;;  %v7139_v40 = vpop.f32.mrb[62].mxu1  ;;  %v7239_v15 = vpop.f32.mrb[62].mxu0 }
 0x24c   : > { %v7140_v11 = vpop.f32.mrb[63].mxu1  ;;  %v7240_v12 = vpop.f32.mrb[63].mxu0 }
 0x24d   : > { %v4318_v13 = vadd.f32 %v7138_v46, %v9588_v23  ;;  %v7141_v17 = vadd.f32 %v7140_v11, %v7139_v40  ;;  %v7241_v20 = vadd.f32 %v7240_v12, %v7239_v15  ;;  %v8309_v23 = vld [vmem:[%s10599_s0 + $0x4a8] ss:$72 sps:$4 sm:$0xff]  }
 0x24e   : > { %4888 = vmatmul.mubr.bf16.gmra.mrb[168].mxu1 %v8299_v7  ;;  %5033 = vmatmul.mubr.bf16.gmra.mrb[168].mxu0 %v8300_v2  ;;  %v8318_v46 = vld [vmem:[%s10599_s0 + $0x540] ss:$72 sps:$4 sm:$0xff]  }
 0x24f   : > { %v9887_v21 = vadd.f32 %v7238_v4, %v4318_v13  ;;  %v4321_v25 = vadd.f32 %v7141_v17, %v9598_v31  ;;  %4895 = vmatprep.mubr.bf16.mxu1 %v8305_v5  ;;  %5040 = vmatprep.mubr.bf16.mxu0 %v8307_v10  ;;  %v8321_v5 = vld [vmem:[%s10599_s0 + $0x5cc] ss:$72 sps:$4 sm:$0xff]  }
 0x250   : > { %v8323_v10 = vld [vmem:[%s10599_s0 + $0x5d4] ss:$72 sps:$4 sm:$0xff]  }
 0x251   : > { %v9890_v26 = vadd.f32 %v7241_v20, %v4321_v25  ;;  %v7142_v32 = vpop.f32.mrb[64].mxu1  ;;  %v7242_v18 = vpop.f32.mrb[64].mxu0 }
 0x252   : > { %v7143_v50 = vpop.f32.mrb[65].mxu1  ;;  %v7243_v34 = vpop.f32.mrb[65].mxu0 }
 0x253   : > { %v7144_v54 = vadd.f32 %v7143_v50, %v7142_v32  ;;  %v7244_v37 = vadd.f32 %v7243_v34, %v7242_v18  ;;  %v7145_v60 = vpop.f32.mrb[66].mxu1  ;;  %v7245_v31 = vpop.f32.mrb[66].mxu0 }
 0x254   : > { %v7146_v14 = vpop.f32.mrb[67].mxu1  ;;  %v7246_v44 = vpop.f32.mrb[67].mxu0 }
 0x255   : > { %v4326_v45 = vadd.f32 %v7144_v54, %v9608_v39  ;;  %v7147_v48 = vadd.f32 %v7146_v14, %v7145_v60  ;;  %v7247_v62 = vadd.f32 %v7246_v44, %v7245_v31  ;;  %v8317_v39 = vld [vmem:[%s10599_s0 + $0x538] ss:$72 sps:$4 sm:$0xff]  }
 0x256   : > { %4896 = vmatmul.mubr.bf16.gmra.mrb[172].mxu1 %v8309_v23  ;;  %5041 = vmatmul.mubr.bf16.gmra.mrb[172].mxu0 %v8310_v36  ;;  %v8326_v54 = vld [vmem:[%s10599_s0 + $0x5d0] ss:$72 sps:$4 sm:$0xff]  }
 0x257   : > { %v9905_v38 = vadd.f32 %v7244_v37, %v4326_v45  ;;  %v4329_v59 = vadd.f32 %v7147_v48, %v9618_v47  ;;  %4903 = vmatprep.mubr.bf16.mxu1 %v8312_v42  ;;  %5048 = vmatprep.mubr.bf16.mxu0 %v8314_v43  ;;  %v8330_v42 = vld [vmem:[%s10599_s0 + $0x65c] ss:$72 sps:$4 sm:$0xff]  }
 0x258   : > { %v8332_v43 = vld [vmem:[%s10599_s0 + $0x664] ss:$72 sps:$4 sm:$0xff]  }
 0x259   : > { %v9908_v0 = vadd.f32 %v7247_v62, %v4329_v59  ;;  %v7148_v28 = vpop.f32.mrb[68].mxu1  ;;  %v7248_v1 = vpop.f32.mrb[68].mxu0 }
 0x25a   : > { %v7149_v7 = vpop.f32.mrb[69].mxu1  ;;  %v7249_v2 = vpop.f32.mrb[69].mxu0 }
 0x25b   : > { %v7150_v4 = vadd.f32 %v7149_v7, %v7148_v28  ;;  %v7250_v40 = vadd.f32 %v7249_v2, %v7248_v1  ;;  %v7151_v15 = vpop.f32.mrb[70].mxu1  ;;  %v7251_v47 = vpop.f32.mrb[70].mxu0 }
 0x25c   : > { %v7152_v11 = vpop.f32.mrb[71].mxu1  ;;  %v7252_v12 = vpop.f32.mrb[71].mxu0 }
 0x25d   : > { %v4334_v13 = vadd.f32 %v7150_v4, %v9628_v55  ;;  %v7153_v17 = vadd.f32 %v7152_v11, %v7151_v15  ;;  %v7253_v20 = vadd.f32 %v7252_v12, %v7251_v47  ;;  %v8325_v55 = vld [vmem:[%s10599_s0 + $0x5c8] ss:$72 sps:$4 sm:$0xff]  }
 0x25e   : > { %4904 = vmatmul.mubr.bf16.gmra.mrb[176].mxu1 %v8317_v39  ;;  %5049 = vmatmul.mubr.bf16.gmra.mrb[176].mxu0 %v8318_v46  ;;  %v8336_v4 = vld [vmem:[%s10599_s0 + $0x660] ss:$72 sps:$4 sm:$0xff]  }
 0x25f   : > { %v9923_v25 = vadd.f32 %v7250_v40, %v4334_v13  ;;  %v4337_v32 = vadd.f32 %v7153_v17, %v9638_v63  ;;  %4911 = vmatprep.mubr.bf16.mxu1 %v8321_v5  ;;  %5056 = vmatprep.mubr.bf16.mxu0 %v8323_v10  ;;  %v8337_v5 = vld [vmem:[%s10599_s0 + $0x6ec] ss:$72 sps:$4 sm:$0xff]  }
 0x260   : > { %v8339_v10 = vld [vmem:[%s10599_s0 + $0x6f4] ss:$72 sps:$4 sm:$0xff]  }
 0x261   : > { %v9926_v18 = vadd.f32 %v7253_v20, %v4337_v32  ;;  %v7154_v50 = vpop.f32.mrb[72].mxu1  ;;  %v7254_v34 = vpop.f32.mrb[72].mxu0 }
 0x262   : > { %v7155_v23 = vpop.f32.mrb[73].mxu1  ;;  %v7255_v36 = vpop.f32.mrb[73].mxu0 }
 0x263   : > { %v7156_v37 = vadd.f32 %v7155_v23, %v7154_v50  ;;  %v7256_v60 = vadd.f32 %v7255_v36, %v7254_v34  ;;  %v7157_v31 = vpop.f32.mrb[74].mxu1  ;;  %v7257_v63 = vpop.f32.mrb[74].mxu0 }
 0x264   : > { %v7158_v14 = vpop.f32.mrb[75].mxu1  ;;  %v7258_v44 = vpop.f32.mrb[75].mxu0 }
 0x265   : > { %v4342_v45 = vadd.f32 %v7156_v37, %v9648_v9  ;;  %v7159_v48 = vadd.f32 %v7158_v14, %v7157_v31  ;;  %v7259_v62 = vadd.f32 %v7258_v44, %v7257_v63  ;;  %v8335_v9 = vld [vmem:[%s10599_s0 + $0x658] ss:$72 sps:$4 sm:$0xff]  }
 0x266   : > { %4912 = vmatmul.mubr.bf16.gmra.mrb[180].mxu1 %v8325_v55  ;;  %5057 = vmatmul.mubr.bf16.gmra.mrb[180].mxu0 %v8326_v54  ;;  %v8342_v37 = vld [vmem:[%s10599_s0 + $0x6f0] ss:$72 sps:$4 sm:$0xff]  }
 0x267   : > { %v9941_v59 = vadd.f32 %v7256_v60, %v4342_v45  ;;  %v4345_v28 = vadd.f32 %v7159_v48, %v9658_v19  ;;  %4919 = vmatprep.mubr.bf16.mxu1 %v8330_v42  ;;  %5064 = vmatprep.mubr.bf16.mxu0 %v8332_v43  ;;  %v8347_v42 = vld [vmem:[%s10599_s0 + $0x77c] ss:$72 sps:$4 sm:$0xff]  }
 0x268   : > { %v8349_v43 = vld [vmem:[%s10599_s0 + $0x784] ss:$72 sps:$4 sm:$0xff]  }
 0x269   : > { %v9944_v1 = vadd.f32 %v7259_v62, %v4345_v28  ;;  %v7160_v7 = vpop.f32.mrb[76].mxu1  ;;  %v7260_v2 = vpop.f32.mrb[76].mxu0 }
 0x26a   : > { %v7161_v39 = vpop.f32.mrb[77].mxu1  ;;  %v7261_v46 = vpop.f32.mrb[77].mxu0 }
 0x26b   : > { %v7162_v40 = vadd.f32 %v7161_v39, %v7160_v7  ;;  %v7262_v15 = vadd.f32 %v7261_v46, %v7260_v2  ;;  %v7163_v47 = vpop.f32.mrb[78].mxu1  ;;  %v7263_v19 = vpop.f32.mrb[78].mxu0 }
 0x26c   : > { %v7164_v11 = vpop.f32.mrb[79].mxu1  ;;  %v7264_v12 = vpop.f32.mrb[79].mxu0 }
 0x26d   : > { %v4350_v13 = vadd.f32 %v7162_v40, %v9668_v29  ;;  %v7165_v17 = vadd.f32 %v7164_v11, %v7163_v47  ;;  %v7265_v20 = vadd.f32 %v7264_v12, %v7263_v19  ;;  %v8341_v29 = vld [vmem:[%s10599_s0 + $0x6e8] ss:$72 sps:$4 sm:$0xff]  }
 0x26e   : > { %4920 = vmatmul.mubr.bf16.gmra.mrb[184].mxu1 %v8335_v9  ;;  %5065 = vmatmul.mubr.bf16.gmra.mrb[184].mxu0 %v8336_v4  ;;  %v8352_v40 = vld [vmem:[%s10599_s0 + $0x780] ss:$72 sps:$4 sm:$0xff]  }
 0x26f   : > { %v9959_v32 = vadd.f32 %v7262_v15, %v4350_v13  ;;  %v4353_v50 = vadd.f32 %v7165_v17, %v9678_v41  ;;  %4927 = vmatprep.mubr.bf16.mxu1 %v8337_v5  ;;  %5072 = vmatprep.mubr.bf16.mxu0 %v8339_v10  ;;  %v8355_v5 = vld [vmem:[%s10599_s0 + $0x3c] ss:$72 sps:$4 sm:$0xff]  }
 0x270   : > { %v8358_v10 = vld [vmem:[%s10599_s0 + $0x44] ss:$72 sps:$4 sm:$0xff]  }
 0x271   : > { %v9962_v34 = vadd.f32 %v7265_v20, %v4353_v50  ;;  %v7166_v23 = vpop.f32.mrb[80].mxu1  ;;  %v7266_v36 = vpop.f32.mrb[80].mxu0 }
 0x272   : > { %v7167_v55 = vpop.f32.mrb[81].mxu1  ;;  %v7267_v54 = vpop.f32.mrb[81].mxu0 }
 0x273   : > { %v7168_v60 = vadd.f32 %v7167_v55, %v7166_v23  ;;  %v7268_v31 = vadd.f32 %v7267_v54, %v7266_v36  ;;  %v7169_v63 = vpop.f32.mrb[82].mxu1  ;;  %v7269_v41 = vpop.f32.mrb[82].mxu0 }
 0x274   : > { %v7170_v14 = vpop.f32.mrb[83].mxu1  ;;  %v7270_v44 = vpop.f32.mrb[83].mxu0 }
 0x275   : > { %v4358_v45 = vadd.f32 %v7168_v60, %v9688_v51  ;;  %v7171_v48 = vadd.f32 %v7170_v14, %v7169_v63  ;;  %v7271_v62 = vadd.f32 %v7270_v44, %v7269_v41  ;;  %v8351_v51 = vld [vmem:[%s10599_s0 + $0x778] ss:$72 sps:$4 sm:$0xff]  }
 0x276   : > { %4928 = vmatmul.mubr.bf16.gmra.mrb[188].mxu1 %v8341_v29  ;;  %5073 = vmatmul.mubr.bf16.gmra.mrb[188].mxu0 %v8342_v37  ;;  %v8356_v60 = vld [vmem:[%s10599_s0 + $0x40] ss:$72 sps:$4 sm:$0xff]  }
 0x277   : > { %v9977_v28 = vadd.f32 %v7268_v31, %v4358_v45  ;;  %v4361_v7 = vadd.f32 %v7171_v48, %v9698_v61  ;;  %4935 = vmatprep.mubr.bf16.mxu1 %v8347_v42  ;;  %5080 = vmatprep.mubr.bf16.mxu0 %v8349_v43  ;;  %v8359_v42 = vld [vmem:[%s10599_s0 + $0xcc] ss:$72 sps:$4 sm:$0xff]  }
 0x278   : > { %v8361_v43 = vld [vmem:[%s10599_s0 + $0xd4] ss:$72 sps:$4 sm:$0xff]  }
 0x279   : > { %v9980_v2 = vadd.f32 %v7271_v62, %v4361_v7  ;;  %v7288_v39 = vpop.f32.mrb[84].mxu1  ;;  %v7388_v46 = vpop.f32.mrb[84].mxu0 }
 0x27a   : > { %v7289_v9 = vpop.f32.mrb[85].mxu1  ;;  %v7389_v4 = vpop.f32.mrb[85].mxu0 }
 0x27b   : > { %v7290_v15 = vadd.f32 %v7289_v9, %v7288_v39  ;;  %v7390_v47 = vadd.f32 %v7389_v4, %v7388_v46  ;;  %v7291_v19 = vpop.f32.mrb[86].mxu1  ;;  %v7391_v61 = vpop.f32.mrb[86].mxu0 }
 0x27c   : > { %v7292_v11 = vpop.f32.mrb[87].mxu1  ;;  %v7392_v12 = vpop.f32.mrb[87].mxu0 }
 0x27d   : > { %v4544_v13 = vadd.f32 %v7290_v15, %v9713_v27  ;;  %v7293_v17 = vadd.f32 %v7292_v11, %v7291_v19  ;;  %v7393_v20 = vadd.f32 %v7392_v12, %v7391_v61  ;;  %v8353_v27 = vld [vmem:[%s10599_s0 + $0x38] ss:$72 sps:$4 sm:$0xff]  }
 0x27e   : > { %4936 = vmatmul.mubr.bf16.gmra.mrb[192].mxu1 %v8351_v51  ;;  %5081 = vmatmul.mubr.bf16.gmra.mrb[192].mxu0 %v8352_v40  ;;  %v8364_v15 = vld [vmem:[%s10599_s0 + $0xd0] ss:$72 sps:$4 sm:$0xff]  }
 0x27f   : > { %v9995_v50 = vadd.f32 %v7390_v47, %v4544_v13  ;;  %v4547_v23 = vadd.f32 %v7293_v17, %v9716_v33  ;;  %5121 = vmatprep.mubr.bf16.mxu1 %v8355_v5  ;;  %5266 = vmatprep.mubr.bf16.mxu0 %v8358_v10  ;;  %v8365_v5 = vld [vmem:[%s10599_s0 + $0x15c] ss:$72 sps:$4 sm:$0xff]  }
 0x280   : > { %v8367_v10 = vld [vmem:[%s10599_s0 + $0x164] ss:$72 sps:$4 sm:$0xff]  }
 0x281   : > { %v9998_v36 = vadd.f32 %v7393_v20, %v4547_v23  ;;  %v7294_v55 = vpop.f32.mrb[88].mxu1  ;;  %v7394_v54 = vpop.f32.mrb[88].mxu0 }
 0x282   : > { %v7295_v29 = vpop.f32.mrb[89].mxu1  ;;  %v7395_v37 = vpop.f32.mrb[89].mxu0 }
 0x283   : > { %v7296_v31 = vadd.f32 %v7295_v29, %v7294_v55  ;;  %v7396_v63 = vadd.f32 %v7395_v37, %v7394_v54  ;;  %v7297_v41 = vpop.f32.mrb[90].mxu1  ;;  %v7397_v33 = vpop.f32.mrb[90].mxu0 }
 0x284   : > { %v7298_v14 = vpop.f32.mrb[91].mxu1  ;;  %v7398_v44 = vpop.f32.mrb[91].mxu0 }
 0x285   : > { %v4552_v45 = vadd.f32 %v7296_v31, %v9735_v3  ;;  %v7299_v48 = vadd.f32 %v7298_v14, %v7297_v41  ;;  %v7399_v62 = vadd.f32 %v7398_v44, %v7397_v33  ;;  %v8363_v3 = vld [vmem:[%s10599_s0 + $0xc8] ss:$72 sps:$4 sm:$0xff]  }
 0x286   : > { %5122 = vmatmul.mubr.bf16.vlgmr.msra.gmra.mrb[196].mxu1 %v8353_v27  ;;  %5267 = vmatmul.mubr.bf16.vlgmr.msra.gmra.mrb[196].mxu0 %v8356_v60  ;;  %v8370_v31 = vld [vmem:[%s10599_s0 + $0x160] ss:$72 sps:$4 sm:$0xff]  }
 0x287   : > { %v10013_v7 = vadd.f32 %v7396_v63, %v4552_v45  ;;  %v4555_v39 = vadd.f32 %v7299_v48, %v9742_v22  ;;  %5129 = vmatprep.mubr.bf16.mxu1 %v8359_v42  ;;  %5274 = vmatprep.mubr.bf16.mxu0 %v8361_v43  ;;  %v8371_v42 = vld [vmem:[%s10599_s0 + $0x1ec] ss:$72 sps:$4 sm:$0xff]  }
 0x288   : > { %v8373_v43 = vld [vmem:[%s10599_s0 + $0x1f4] ss:$72 sps:$4 sm:$0xff]  }
 0x289   : > { %v10016_v46 = vadd.f32 %v7399_v62, %v4555_v39  ;;  %v7300_v9 = vpop.f32.mrb[92].mxu1  ;;  %v7400_v4 = vpop.f32.mrb[92].mxu0 }
 0x28a   : > { %v7301_v51 = vpop.f32.mrb[93].mxu1  ;;  %v7401_v40 = vpop.f32.mrb[93].mxu0 }
 0x28b   : > { %v7302_v47 = vadd.f32 %v7301_v51, %v7300_v9  ;;  %v7402_v19 = vadd.f32 %v7401_v40, %v7400_v4  ;;  %v7303_v61 = vpop.f32.mrb[94].mxu1  ;;  %v7403_v22 = vpop.f32.mrb[94].mxu0 }
 0x28c   : > { %v7304_v11 = vpop.f32.mrb[95].mxu1  ;;  %v7404_v12 = vpop.f32.mrb[95].mxu0 }
 0x28d   : > { %v4560_v13 = vadd.f32 %v7302_v47, %v9761_v49  ;;  %v7305_v17 = vadd.f32 %v7304_v11, %v7303_v61  ;;  %v7405_v20 = vadd.f32 %v7404_v12, %v7403_v22  ;;  %v8369_v49 = vld [vmem:[%s10599_s0 + $0x158] ss:$72 sps:$4 sm:$0xff]  }
 0x28e   : > { %5130 = vmatmul.mubr.bf16.gmra.mrb[200].mxu1 %v8363_v3  ;;  %5275 = vmatmul.mubr.bf16.gmra.mrb[200].mxu0 %v8364_v15  ;;  %v8376_v47 = vld [vmem:[%s10599_s0 + $0x1f0] ss:$72 sps:$4 sm:$0xff]  }
 0x28f   : > { %v10031_v23 = vadd.f32 %v7402_v19, %v4560_v13  ;;  %v4563_v55 = vadd.f32 %v7305_v17, %v9766_v57  ;;  %5137 = vmatprep.mubr.bf16.mxu1 %v8365_v5  ;;  %5282 = vmatprep.mubr.bf16.mxu0 %v8367_v10  ;;  %v8377_v5 = vld [vmem:[%s10599_s0 + $0x27c] ss:$72 sps:$4 sm:$0xff]  }
 0x290   : > { %v8379_v10 = vld [vmem:[%s10599_s0 + $0x284] ss:$72 sps:$4 sm:$0xff]  }
 0x291   : > { %v10034_v54 = vadd.f32 %v7405_v20, %v4563_v55  ;;  %v7306_v29 = vpop.f32.mrb[96].mxu1  ;;  %v7406_v37 = vpop.f32.mrb[96].mxu0 }
 0x292   : > { %v7307_v27 = vpop.f32.mrb[97].mxu1  ;;  %v7407_v60 = vpop.f32.mrb[97].mxu0 }
 0x293   : > { %v7308_v63 = vadd.f32 %v7307_v27, %v7306_v29  ;;  %v7408_v41 = vadd.f32 %v7407_v60, %v7406_v37  ;;  %v7309_v33 = vpop.f32.mrb[98].mxu1  ;;  %v7409_v57 = vpop.f32.mrb[98].mxu0 }
 0x294   : > { %v7310_v14 = vpop.f32.mrb[99].mxu1  ;;  %v7410_v44 = vpop.f32.mrb[99].mxu0 }
 0x295   : > { %v4568_v45 = vadd.f32 %v7308_v63, %v9787_v35  ;;  %v7311_v48 = vadd.f32 %v7310_v14, %v7309_v33  ;;  %v7411_v62 = vadd.f32 %v7410_v44, %v7409_v57  ;;  %v8375_v35 = vld [vmem:[%s10599_s0 + $0x1e8] ss:$72 sps:$4 sm:$0xff]  }
 0x296   : > { %5138 = vmatmul.mubr.bf16.gmra.mrb[204].mxu1 %v8369_v49  ;;  %5283 = vmatmul.mubr.bf16.gmra.mrb[204].mxu0 %v8370_v31  ;;  %v8382_v63 = vld [vmem:[%s10599_s0 + $0x280] ss:$72 sps:$4 sm:$0xff]  }
 0x297   : > { %v10049_v39 = vadd.f32 %v7408_v41, %v4568_v45  ;;  %v4571_v9 = vadd.f32 %v7311_v48, %v9792_v6  ;;  %5145 = vmatprep.mubr.bf16.mxu1 %v8371_v42  ;;  %5290 = vmatprep.mubr.bf16.mxu0 %v8373_v43  ;;  %v8383_v42 = vld [vmem:[%s10599_s0 + $0x30c] ss:$72 sps:$4 sm:$0xff]  }
 0x298   : > { %v8385_v43 = vld [vmem:[%s10599_s0 + $0x314] ss:$72 sps:$4 sm:$0xff]  }
 0x299   : > { %v10052_v4 = vadd.f32 %v7411_v62, %v4571_v9  ;;  %v7312_v51 = vpop.f32.mrb[100].mxu1  ;;  %v7412_v40 = vpop.f32.mrb[100].mxu0 }
 0x29a   : > { %v7313_v3 = vpop.f32.mrb[101].mxu1  ;;  %v7413_v15 = vpop.f32.mrb[101].mxu0 }
 0x29b   : > { %v7314_v19 = vadd.f32 %v7313_v3, %v7312_v51  ;;  %v7414_v61 = vadd.f32 %v7413_v15, %v7412_v40  ;;  %v7315_v22 = vpop.f32.mrb[102].mxu1  ;;  %v7415_v6 = vpop.f32.mrb[102].mxu0 }
 0x29c   : > { %v7316_v11 = vpop.f32.mrb[103].mxu1  ;;  %v7416_v12 = vpop.f32.mrb[103].mxu0 }
 0x29d   : > { %v4576_v13 = vadd.f32 %v7314_v19, %v9813_v16  ;;  %v7317_v17 = vadd.f32 %v7316_v11, %v7315_v22  ;;  %v7417_v20 = vadd.f32 %v7416_v12, %v7415_v6  ;;  %v8381_v16 = vld [vmem:[%s10599_s0 + $0x278] ss:$72 sps:$4 sm:$0xff]  }
 0x29e   : > { %5146 = vmatmul.mubr.bf16.gmra.mrb[208].mxu1 %v8375_v35  ;;  %5291 = vmatmul.mubr.bf16.gmra.mrb[208].mxu0 %v8376_v47  ;;  %v8388_v19 = vld [vmem:[%s10599_s0 + $0x310] ss:$72 sps:$4 sm:$0xff]  }
 0x29f   : > { %v10067_v55 = vadd.f32 %v7414_v61, %v4576_v13  ;;  %v4579_v29 = vadd.f32 %v7317_v17, %v9818_v8  ;;  %5153 = vmatprep.mubr.bf16.mxu1 %v8377_v5  ;;  %5298 = vmatprep.mubr.bf16.mxu0 %v8379_v10  ;;  %v8389_v5 = vld [vmem:[%s10599_s0 + $0x39c] ss:$72 sps:$4 sm:$0xff]  }
 0x2a0   : > { %v8391_v10 = vld [vmem:[%s10599_s0 + $0x3a4] ss:$72 sps:$4 sm:$0xff]  }
 0x2a1   : > { %v10070_v37 = vadd.f32 %v7417_v20, %v4579_v29  ;;  %v7318_v27 = vpop.f32.mrb[104].mxu1  ;;  %v7418_v60 = vpop.f32.mrb[104].mxu0 }
 0x2a2   : > { %v7319_v49 = vpop.f32.mrb[105].mxu1  ;;  %v7419_v31 = vpop.f32.mrb[105].mxu0 }
 0x2a3   : > { %v7320_v41 = vadd.f32 %v7319_v49, %v7318_v27  ;;  %v7420_v33 = vadd.f32 %v7419_v31, %v7418_v60  ;;  %v7321_v57 = vpop.f32.mrb[106].mxu1  ;;  %v7421_v8 = vpop.f32.mrb[106].mxu0 }
 0x2a4   : > { %v7322_v14 = vpop.f32.mrb[107].mxu1  ;;  %v7422_v44 = vpop.f32.mrb[107].mxu0 }
 0x2a5   : > { %v4584_v45 = vadd.f32 %v7320_v41, %v9833_v52  ;;  %v7323_v48 = vadd.f32 %v7322_v14, %v7321_v57  ;;  %v7423_v62 = vadd.f32 %v7422_v44, %v7421_v8  ;;  %v8387_v52 = vld [vmem:[%s10599_s0 + $0x308] ss:$72 sps:$4 sm:$0xff]  }
 0x2a6   : > { %5154 = vmatmul.mubr.bf16.gmra.mrb[212].mxu1 %v8381_v16  ;;  %5299 = vmatmul.mubr.bf16.gmra.mrb[212].mxu0 %v8382_v63  ;;  %v8394_v41 = vld [vmem:[%s10599_s0 + $0x3a0] ss:$72 sps:$4 sm:$0xff]  }
 0x2a7   : > { %v10085_v9 = vadd.f32 %v7420_v33, %v4584_v45  ;;  %v4587_v51 = vadd.f32 %v7323_v48, %v9836_v56  ;;  %5161 = vmatprep.mubr.bf16.mxu1 %v8383_v42  ;;  %5306 = vmatprep.mubr.bf16.mxu0 %v8385_v43  ;;  %v8395_v42 = vld [vmem:[%s10599_s0 + $0x42c] ss:$72 sps:$4 sm:$0xff]  }
 0x2a8   : > { %v8397_v43 = vld [vmem:[%s10599_s0 + $0x434] ss:$72 sps:$4 sm:$0xff]  }
 0x2a9   : > { %v10088_v40 = vadd.f32 %v7423_v62, %v4587_v51  ;;  %v7324_v3 = vpop.f32.mrb[108].mxu1  ;;  %v7424_v15 = vpop.f32.mrb[108].mxu0 }
 0x2aa   : > { %v7325_v35 = vpop.f32.mrb[109].mxu1  ;;  %v7425_v47 = vpop.f32.mrb[109].mxu0 }
 0x2ab   : > { %v7326_v61 = vadd.f32 %v7325_v35, %v7324_v3  ;;  %v7426_v22 = vadd.f32 %v7425_v47, %v7424_v15  ;;  %v7327_v6 = vpop.f32.mrb[110].mxu1  ;;  %v7427_v56 = vpop.f32.mrb[110].mxu0 }
 0x2ac   : > { %v7328_v11 = vpop.f32.mrb[111].mxu1  ;;  %v7428_v12 = vpop.f32.mrb[111].mxu0 }
 0x2ad   : > { %v4592_v13 = vadd.f32 %v7326_v61, %v9851_v30  ;;  %v7329_v17 = vadd.f32 %v7328_v11, %v7327_v6  ;;  %v7429_v20 = vadd.f32 %v7428_v12, %v7427_v56  ;;  %v8393_v30 = vld [vmem:[%s10599_s0 + $0x398] ss:$72 sps:$4 sm:$0xff]  }
 0x2ae   : > { %5162 = vmatmul.mubr.bf16.gmra.mrb[216].mxu1 %v8387_v52  ;;  %5307 = vmatmul.mubr.bf16.gmra.mrb[216].mxu0 %v8388_v19  ;;  %v8400_v61 = vld [vmem:[%s10599_s0 + $0x430] ss:$72 sps:$4 sm:$0xff]  }
 0x2af   : > { %v10103_v29 = vadd.f32 %v7426_v22, %v4592_v13  ;;  %v4595_v27 = vadd.f32 %v7329_v17, %v9854_v24  ;;  %5169 = vmatprep.mubr.bf16.mxu1 %v8389_v5  ;;  %5314 = vmatprep.mubr.bf16.mxu0 %v8391_v10  ;;  %v8401_v5 = vld [vmem:[%s10599_s0 + $0x4bc] ss:$72 sps:$4 sm:$0xff]  }
 0x2b0   : > { %v8403_v10 = vld [vmem:[%s10599_s0 + $0x4c4] ss:$72 sps:$4 sm:$0xff]  }
 0x2b1   : > { %v10106_v60 = vadd.f32 %v7429_v20, %v4595_v27  ;;  %v7330_v49 = vpop.f32.mrb[112].mxu1  ;;  %v7430_v31 = vpop.f32.mrb[112].mxu0 }
 0x2b2   : > { %v7331_v16 = vpop.f32.mrb[113].mxu1  ;;  %v7431_v63 = vpop.f32.mrb[113].mxu0 }
 0x2b3   : > { %v7332_v33 = vadd.f32 %v7331_v16, %v7330_v49  ;;  %v7432_v57 = vadd.f32 %v7431_v63, %v7430_v31  ;;  %v7333_v8 = vpop.f32.mrb[114].mxu1  ;;  %v7433_v24 = vpop.f32.mrb[114].mxu0 }
 0x2b4   : > { %v7334_v14 = vpop.f32.mrb[115].mxu1  ;;  %v7434_v44 = vpop.f32.mrb[115].mxu0 }
 0x2b5   : > { %v4600_v45 = vadd.f32 %v7332_v33, %v9869_v53  ;;  %v7335_v48 = vadd.f32 %v7334_v14, %v7333_v8  ;;  %v7435_v62 = vadd.f32 %v7434_v44, %v7433_v24  ;;  %v8399_v53 = vld [vmem:[%s10599_s0 + $0x428] ss:$72 sps:$4 sm:$0xff]  }
 0x2b6   : > { %5170 = vmatmul.mubr.bf16.gmra.mrb[220].mxu1 %v8393_v30  ;;  %5315 = vmatmul.mubr.bf16.gmra.mrb[220].mxu0 %v8394_v41  ;;  %v8406_v33 = vld [vmem:[%s10599_s0 + $0x4c0] ss:$72 sps:$4 sm:$0xff]  }
 0x2b7   : > { %v10121_v51 = vadd.f32 %v7432_v57, %v4600_v45  ;;  %v4603_v3 = vadd.f32 %v7335_v48, %v9872_v58  ;;  %5177 = vmatprep.mubr.bf16.mxu1 %v8395_v42  ;;  %5322 = vmatprep.mubr.bf16.mxu0 %v8397_v43  ;;  %v8407_v42 = vld [vmem:[%s10599_s0 + $0x54c] ss:$72 sps:$4 sm:$0xff]  }
 0x2b8   : > { %v8409_v43 = vld [vmem:[%s10599_s0 + $0x554] ss:$72 sps:$4 sm:$0xff]  }
 0x2b9   : > { %v10124_v15 = vadd.f32 %v7435_v62, %v4603_v3  ;;  %v7336_v35 = vpop.f32.mrb[116].mxu1  ;;  %v7436_v47 = vpop.f32.mrb[116].mxu0 }
 0x2ba   : > { %v7337_v52 = vpop.f32.mrb[117].mxu1  ;;  %v7437_v19 = vpop.f32.mrb[117].mxu0 }
 0x2bb   : > { %v7338_v22 = vadd.f32 %v7337_v52, %v7336_v35  ;;  %v7438_v6 = vadd.f32 %v7437_v19, %v7436_v47  ;;  %v7339_v56 = vpop.f32.mrb[118].mxu1  ;;  %v7439_v58 = vpop.f32.mrb[118].mxu0 }
 0x2bc   : > { %v7340_v11 = vpop.f32.mrb[119].mxu1  ;;  %v7440_v12 = vpop.f32.mrb[119].mxu0 }
 0x2bd   : > { %v4608_v13 = vadd.f32 %v7338_v22, %v9887_v21  ;;  %v7341_v17 = vadd.f32 %v7340_v11, %v7339_v56  ;;  %v7441_v20 = vadd.f32 %v7440_v12, %v7439_v58  ;;  %v8405_v21 = vld [vmem:[%s10599_s0 + $0x4b8] ss:$72 sps:$4 sm:$0xff]  }
 0x2be   : > { %5178 = vmatmul.mubr.bf16.gmra.mrb[224].mxu1 %v8399_v53  ;;  %5323 = vmatmul.mubr.bf16.gmra.mrb[224].mxu0 %v8400_v61  ;;  %v8412_v22 = vld [vmem:[%s10599_s0 + $0x550] ss:$72 sps:$4 sm:$0xff]  }
 0x2bf   : > { %v10139_v27 = vadd.f32 %v7438_v6, %v4608_v13  ;;  %v4611_v49 = vadd.f32 %v7341_v17, %v9890_v26  ;;  %5185 = vmatprep.mubr.bf16.mxu1 %v8401_v5  ;;  %5330 = vmatprep.mubr.bf16.mxu0 %v8403_v10  ;;  %v8413_v5 = vld [vmem:[%s10599_s0 + $0x5dc] ss:$72 sps:$4 sm:$0xff]  }
 0x2c0   : > { %v8415_v10 = vld [vmem:[%s10599_s0 + $0x5e4] ss:$72 sps:$4 sm:$0xff]  }
 0x2c1   : > { %v10142_v31 = vadd.f32 %v7441_v20, %v4611_v49  ;;  %v7342_v16 = vpop.f32.mrb[120].mxu1  ;;  %v7442_v63 = vpop.f32.mrb[120].mxu0 }
 0x2c2   : > { %v7343_v30 = vpop.f32.mrb[121].mxu1  ;;  %v7443_v41 = vpop.f32.mrb[121].mxu0 }
 0x2c3   : > { %v7344_v57 = vadd.f32 %v7343_v30, %v7342_v16  ;;  %v7444_v8 = vadd.f32 %v7443_v41, %v7442_v63  ;;  %v7345_v24 = vpop.f32.mrb[122].mxu1  ;;  %v7445_v26 = vpop.f32.mrb[122].mxu0 }
 0x2c4   : > { %v7346_v14 = vpop.f32.mrb[123].mxu1  ;;  %v7446_v44 = vpop.f32.mrb[123].mxu0 }
 0x2c5   : > { %v4616_v45 = vadd.f32 %v7344_v57, %v9905_v38  ;;  %v7347_v48 = vadd.f32 %v7346_v14, %v7345_v24  ;;  %v7447_v62 = vadd.f32 %v7446_v44, %v7445_v26  ;;  %v8411_v38 = vld [vmem:[%s10599_s0 + $0x548] ss:$72 sps:$4 sm:$0xff]  }
 0x2c6   : > { %5186 = vmatmul.mubr.bf16.gmra.mrb[228].mxu1 %v8405_v21  ;;  %5331 = vmatmul.mubr.bf16.gmra.mrb[228].mxu0 %v8406_v33  ;;  %v8418_v57 = vld [vmem:[%s10599_s0 + $0x5e0] ss:$72 sps:$4 sm:$0xff]  }
 0x2c7   : > { %v10157_v3 = vadd.f32 %v7444_v8, %v4616_v45  ;;  %v4619_v35 = vadd.f32 %v7347_v48, %v9908_v0  ;;  %5193 = vmatprep.mubr.bf16.mxu1 %v8407_v42  ;;  %5338 = vmatprep.mubr.bf16.mxu0 %v8409_v43  ;;  %v8419_v42 = vld [vmem:[%s10599_s0 + $0x66c] ss:$72 sps:$4 sm:$0xff]  }
 0x2c8   : > { %v8421_v43 = vld [vmem:[%s10599_s0 + $0x674] ss:$72 sps:$4 sm:$0xff]  }
 0x2c9   : > { %v10160_v47 = vadd.f32 %v7447_v62, %v4619_v35  ;;  %v7348_v52 = vpop.f32.mrb[124].mxu1  ;;  %v7448_v19 = vpop.f32.mrb[124].mxu0 }
 0x2ca   : > { %v7349_v53 = vpop.f32.mrb[125].mxu1  ;;  %v7449_v61 = vpop.f32.mrb[125].mxu0 }
 0x2cb   : > { %v7350_v6 = vadd.f32 %v7349_v53, %v7348_v52  ;;  %v7450_v56 = vadd.f32 %v7449_v61, %v7448_v19  ;;  %v7351_v58 = vpop.f32.mrb[126].mxu1  ;;  %v7451_v0 = vpop.f32.mrb[126].mxu0 }
 0x2cc   : > { %v7352_v11 = vpop.f32.mrb[127].mxu1  ;;  %v7452_v12 = vpop.f32.mrb[127].mxu0 }
 0x2cd   : > { %v4624_v13 = vadd.f32 %v7350_v6, %v9923_v25  ;;  %v7353_v17 = vadd.f32 %v7352_v11, %v7351_v58  ;;  %v7453_v20 = vadd.f32 %v7452_v12, %v7451_v0  ;;  %v8417_v25 = vld [vmem:[%s10599_s0 + $0x5d8] ss:$72 sps:$4 sm:$0xff]  }
 0x2ce   : > { %5194 = vmatmul.mubr.bf16.gmra.mrb[232].mxu1 %v8411_v38  ;;  %5339 = vmatmul.mubr.bf16.gmra.mrb[232].mxu0 %v8412_v22  ;;  %v8424_v6 = vld [vmem:[%s10599_s0 + $0x670] ss:$72 sps:$4 sm:$0xff]  }
 0x2cf   : > { %v10175_v49 = vadd.f32 %v7450_v56, %v4624_v13  ;;  %v4627_v16 = vadd.f32 %v7353_v17, %v9926_v18  ;;  %5201 = vmatprep.mubr.bf16.mxu1 %v8413_v5  ;;  %5346 = vmatprep.mubr.bf16.mxu0 %v8415_v10  ;;  %v8425_v5 = vld [vmem:[%s10599_s0 + $0x6fc] ss:$72 sps:$4 sm:$0xff]  }
 0x2d0   : > { %v8427_v10 = vld [vmem:[%s10599_s0 + $0x704] ss:$72 sps:$4 sm:$0xff]  }
 0x2d1   : > { %v10178_v63 = vadd.f32 %v7453_v20, %v4627_v16  ;;  %v7354_v30 = vpop.f32.mrb[128].mxu1  ;;  %v7454_v41 = vpop.f32.mrb[128].mxu0 }
 0x2d2   : > { %v7355_v21 = vpop.f32.mrb[129].mxu1  ;;  %v7455_v33 = vpop.f32.mrb[129].mxu0 }
 0x2d3   : > { %v7356_v8 = vadd.f32 %v7355_v21, %v7354_v30  ;;  %v7456_v24 = vadd.f32 %v7455_v33, %v7454_v41  ;;  %v7357_v26 = vpop.f32.mrb[130].mxu1  ;;  %v7457_v18 = vpop.f32.mrb[130].mxu0 }
 0x2d4   : > { %v7358_v14 = vpop.f32.mrb[131].mxu1  ;;  %v7458_v44 = vpop.f32.mrb[131].mxu0 }
 0x2d5   : > { %v4632_v45 = vadd.f32 %v7356_v8, %v9941_v59  ;;  %v7359_v48 = vadd.f32 %v7358_v14, %v7357_v26  ;;  %v7459_v62 = vadd.f32 %v7458_v44, %v7457_v18  ;;  %v8423_v59 = vld [vmem:[%s10599_s0 + $0x668] ss:$72 sps:$4 sm:$0xff]  }
 0x2d6   : > { %5202 = vmatmul.mubr.bf16.gmra.mrb[236].mxu1 %v8417_v25  ;;  %5347 = vmatmul.mubr.bf16.gmra.mrb[236].mxu0 %v8418_v57  ;;  %v8430_v8 = vld [vmem:[%s10599_s0 + $0x700] ss:$72 sps:$4 sm:$0xff]  }
 0x2d7   : > { %v10193_v35 = vadd.f32 %v7456_v24, %v4632_v45  ;;  %v4635_v52 = vadd.f32 %v7359_v48, %v9944_v1  ;;  %5209 = vmatprep.mubr.bf16.mxu1 %v8419_v42  ;;  %5354 = vmatprep.mubr.bf16.mxu0 %v8421_v43  ;;  %v8431_v42 = vld [vmem:[%s10599_s0 + $0x78c] ss:$72 sps:$4 sm:$0xff]  }
 0x2d8   : > { %v8433_v43 = vld [vmem:[%s10599_s0 + $0x794] ss:$72 sps:$4 sm:$0xff]  }
 0x2d9   : > { %v10196_v19 = vadd.f32 %v7459_v62, %v4635_v52  ;;  %v7360_v53 = vpop.f32.mrb[132].mxu1  ;;  %v7460_v61 = vpop.f32.mrb[132].mxu0 }
 0x2da   : > { %v7361_v38 = vpop.f32.mrb[133].mxu1  ;;  %v7461_v22 = vpop.f32.mrb[133].mxu0 }
 0x2db   : > { %v7362_v56 = vadd.f32 %v7361_v38, %v7360_v53  ;;  %v7462_v58 = vadd.f32 %v7461_v22, %v7460_v61  ;;  %v7363_v0 = vpop.f32.mrb[134].mxu1  ;;  %v7463_v1 = vpop.f32.mrb[134].mxu0 }
 0x2dc   : > { %v7364_v11 = vpop.f32.mrb[135].mxu1  ;;  %v7464_v12 = vpop.f32.mrb[135].mxu0 }
 0x2dd   : > { %v4640_v13 = vadd.f32 %v7362_v56, %v9959_v32  ;;  %v7365_v17 = vadd.f32 %v7364_v11, %v7363_v0  ;;  %v7465_v20 = vadd.f32 %v7464_v12, %v7463_v1  ;;  %v8429_v32 = vld [vmem:[%s10599_s0 + $0x6f8] ss:$72 sps:$4 sm:$0xff]  }
 0x2de   : > { %5210 = vmatmul.mubr.bf16.gmra.mrb[240].mxu1 %v8423_v59  ;;  %5355 = vmatmul.mubr.bf16.gmra.mrb[240].mxu0 %v8424_v6  ;;  %v8436_v56 = vld [vmem:[%s10599_s0 + $0x790] ss:$72 sps:$4 sm:$0xff]  }
 0x2df   : > { %v10211_v16 = vadd.f32 %v7462_v58, %v4640_v13  ;;  %v4643_v30 = vadd.f32 %v7365_v17, %v9962_v34  ;;  %5217 = vmatprep.mubr.bf16.mxu1 %v8425_v5  ;;  %5362 = vmatprep.mubr.bf16.mxu0 %v8427_v10 }
 0x2e1   : > { %v10214_v41 = vadd.f32 %v7465_v20, %v4643_v30  ;;  %v7366_v21 = vpop.f32.mrb[136].mxu1  ;;  %v7466_v33 = vpop.f32.mrb[136].mxu0 }
 0x2e2   : > { %v7367_v25 = vpop.f32.mrb[137].mxu1  ;;  %v7467_v57 = vpop.f32.mrb[137].mxu0 }
 0x2e3   : > { %v7368_v24 = vadd.f32 %v7367_v25, %v7366_v21  ;;  %v7468_v26 = vadd.f32 %v7467_v57, %v7466_v33  ;;  %v7369_v18 = vpop.f32.mrb[138].mxu1  ;;  %v7469_v34 = vpop.f32.mrb[138].mxu0 }
 0x2e4   : > { %v7370_v14 = vpop.f32.mrb[139].mxu1  ;;  %v7470_v44 = vpop.f32.mrb[139].mxu0 }
 0x2e5   : > { %v4648_v45 = vadd.f32 %v7368_v24, %v9977_v28  ;;  %v7371_v48 = vadd.f32 %v7370_v14, %v7369_v18  ;;  %v7471_v62 = vadd.f32 %v7470_v44, %v7469_v34  ;;  %v8435_v28 = vld [vmem:[%s10599_s0 + $0x788] ss:$72 sps:$4 sm:$0xff]  }
 0x2e6   : > { %5218 = vmatmul.mubr.bf16.gmra.mrb[244].mxu1 %v8429_v32  ;;  %5363 = vmatmul.mubr.bf16.gmra.mrb[244].mxu0 %v8430_v8 }
 0x2e7   : > { %v10229_v52 = vadd.f32 %v7468_v26, %v4648_v45  ;;  %v4651_v53 = vadd.f32 %v7371_v48, %v9980_v2  ;;  %5225 = vmatprep.mubr.bf16.mxu1 %v8431_v42  ;;  %5370 = vmatprep.mubr.bf16.mxu0 %v8433_v43 }
 0x2e9   : > { %v10232_v61 = vadd.f32 %v7471_v62, %v4651_v53  ;;  %v7488_v38 = vpop.f32.mrb[140].mxu1  ;;  %v7588_v22 = vpop.f32.mrb[140].mxu0 }
 0x2ea   : > { %v7489_v59 = vpop.f32.mrb[141].mxu1  ;;  %v7589_v6 = vpop.f32.mrb[141].mxu0 }
 0x2eb   : > { %v7490_v58 = vadd.f32 %v7489_v59, %v7488_v38  ;;  %v7590_v0 = vadd.f32 %v7589_v6, %v7588_v22  ;;  %v7491_v1 = vpop.f32.mrb[142].mxu1  ;;  %v7591_v2 = vpop.f32.mrb[142].mxu0 }
 0x2ec   : > { %v7492_v5 = vpop.f32.mrb[143].mxu1  ;;  %v7592_v10 = vpop.f32.mrb[143].mxu0 }
 0x2ed   : > { %v4834_v11 = vadd.f32 %v7490_v58, %v9995_v50  ;;  %v7493_v12 = vadd.f32 %v7492_v5, %v7491_v1  ;;  %v7593_v13 = vadd.f32 %v7592_v10, %v7591_v2 }
 0x2ee   : > { %5226 = vmatmul.mubr.bf16.gmra.mrb[248].mxu1 %v8435_v28  ;;  %5371 = vmatmul.mubr.bf16.gmra.mrb[248].mxu0 %v8436_v56 }
 0x2ef   : > { %v10241_v17 = vadd.f32 %v7590_v0, %v4834_v11  ;;  %v4837_v20 = vadd.f32 %v7493_v12, %v9998_v36 }
 0x2f1   : > { %v10244_v30 = vadd.f32 %v7593_v13, %v4837_v20  ;;  %v7494_v21 = vpop.f32.mrb[144].mxu1  ;;  %v7594_v33 = vpop.f32.mrb[144].mxu0 }
 0x2f2   : > { %v7495_v25 = vpop.f32.mrb[145].mxu1  ;;  %v7595_v57 = vpop.f32.mrb[145].mxu0 }
 0x2f3   : > { %v7496_v32 = vadd.f32 %v7495_v25, %v7494_v21  ;;  %v7596_v8 = vadd.f32 %v7595_v57, %v7594_v33  ;;  %v7497_v24 = vpop.f32.mrb[146].mxu1  ;;  %v7597_v26 = vpop.f32.mrb[146].mxu0 }
 0x2f4   : > { %v7498_v18 = vpop.f32.mrb[147].mxu1  ;;  %v7598_v50 = vpop.f32.mrb[147].mxu0 }
 0x2f5   : > { %v4842_v34 = vadd.f32 %v7496_v32, %v10013_v7  ;;  %v7499_v42 = vadd.f32 %v7498_v18, %v7497_v24  ;;  %v7599_v43 = vadd.f32 %v7598_v50, %v7597_v26 }
 0x2f7   : > { %v10247_v14 = vadd.f32 %v7596_v8, %v4842_v34  ;;  %v4845_v36 = vadd.f32 %v7499_v42, %v10016_v46 }
 0x2f9   : > { %v10250_v44 = vadd.f32 %v7599_v43, %v4845_v36  ;;  %v7500_v45 = vpop.f32.mrb[148].mxu1  ;;  %v7600_v48 = vpop.f32.mrb[148].mxu0 }
 0x2fa   : > { %v7501_v62 = vpop.f32.mrb[149].mxu1  ;;  %v7601_v53 = vpop.f32.mrb[149].mxu0 }
 0x2fb   : > { %v7502_v38 = vadd.f32 %v7501_v62, %v7500_v45  ;;  %v7602_v22 = vadd.f32 %v7601_v53, %v7600_v48  ;;  %v7503_v59 = vpop.f32.mrb[150].mxu1  ;;  %v7603_v6 = vpop.f32.mrb[150].mxu0 }
 0x2fc   : > { %v7504_v28 = vpop.f32.mrb[151].mxu1  ;;  %v7604_v56 = vpop.f32.mrb[151].mxu0 }
 0x2fd   : > { %v4850_v7 = vadd.f32 %v7502_v38, %v10031_v23  ;;  %v7505_v58 = vadd.f32 %v7504_v28, %v7503_v59  ;;  %v7605_v0 = vadd.f32 %v7604_v56, %v7603_v6 }
 0x2ff   : > { %v10253_v1 = vadd.f32 %v7602_v22, %v4850_v7  ;;  %v4853_v46 = vadd.f32 %v7505_v58, %v10034_v54 }
 0x301   : > { %v10256_v2 = vadd.f32 %v7605_v0, %v4853_v46  ;;  %v7506_v5 = vpop.f32.mrb[152].mxu1  ;;  %v7606_v10 = vpop.f32.mrb[152].mxu0 }
 0x302   : > { %v7507_v11 = vpop.f32.mrb[153].mxu1  ;;  %v7607_v12 = vpop.f32.mrb[153].mxu0 }
 0x303   : > { %v7508_v13 = vadd.f32 %v7507_v11, %v7506_v5  ;;  %v7608_v20 = vadd.f32 %v7607_v12, %v7606_v10  ;;  %v7509_v21 = vpop.f32.mrb[154].mxu1  ;;  %v7609_v33 = vpop.f32.mrb[154].mxu0 }
 0x304   : > { %v7510_v25 = vpop.f32.mrb[155].mxu1  ;;  %v7610_v57 = vpop.f32.mrb[155].mxu0 }
 0x305   : > { %v4858_v23 = vadd.f32 %v7508_v13, %v10049_v39  ;;  %v7511_v32 = vadd.f32 %v7510_v25, %v7509_v21  ;;  %v7611_v8 = vadd.f32 %v7610_v57, %v7609_v33 }
 0x307   : > { %v10259_v24 = vadd.f32 %v7608_v20, %v4858_v23  ;;  %v4861_v54 = vadd.f32 %v7511_v32, %v10052_v4 }
 0x309   : > { %v10262_v26 = vadd.f32 %v7611_v8, %v4861_v54  ;;  %v7512_v18 = vpop.f32.mrb[156].mxu1  ;;  %v7612_v50 = vpop.f32.mrb[156].mxu0 }
 0x30a   : > { %v7513_v34 = vpop.f32.mrb[157].mxu1  ;;  %v7613_v42 = vpop.f32.mrb[157].mxu0 }
 0x30b   : > { %v7514_v43 = vadd.f32 %v7513_v34, %v7512_v18  ;;  %v7614_v36 = vadd.f32 %v7613_v42, %v7612_v50  ;;  %v7515_v45 = vpop.f32.mrb[158].mxu1  ;;  %v7615_v48 = vpop.f32.mrb[158].mxu0 }
 0x30c   : > { %v7516_v62 = vpop.f32.mrb[159].mxu1  ;;  %v7616_v53 = vpop.f32.mrb[159].mxu0 }
 0x30d   : > { %v4866_v39 = vadd.f32 %v7514_v43, %v10067_v55  ;;  %v7517_v38 = vadd.f32 %v7516_v62, %v7515_v45  ;;  %v7617_v22 = vadd.f32 %v7616_v53, %v7615_v48 }
 0x30f   : > { %v10265_v59 = vadd.f32 %v7614_v36, %v4866_v39  ;;  %v4869_v4 = vadd.f32 %v7517_v38, %v10070_v37 }
 0x311   : > { %v10268_v6 = vadd.f32 %v7617_v22, %v4869_v4  ;;  %v7518_v28 = vpop.f32.mrb[160].mxu1  ;;  %v7618_v56 = vpop.f32.mrb[160].mxu0 }
 0x312   : > { %v7519_v7 = vpop.f32.mrb[161].mxu1  ;;  %v7619_v58 = vpop.f32.mrb[161].mxu0 }
 0x313   : > { %v7520_v0 = vadd.f32 %v7519_v7, %v7518_v28  ;;  %v7620_v46 = vadd.f32 %v7619_v58, %v7618_v56  ;;  %v7521_v5 = vpop.f32.mrb[162].mxu1  ;;  %v7621_v10 = vpop.f32.mrb[162].mxu0 }
 0x314   : > { %v7522_v11 = vpop.f32.mrb[163].mxu1  ;;  %v7622_v12 = vpop.f32.mrb[163].mxu0 }
 0x315   : > { %v4874_v55 = vadd.f32 %v7520_v0, %v10085_v9  ;;  %v7523_v13 = vadd.f32 %v7522_v11, %v7521_v5  ;;  %v7623_v20 = vadd.f32 %v7622_v12, %v7621_v10 }
 0x317   : > { %v10271_v21 = vadd.f32 %v7620_v46, %v4874_v55  ;;  %v4877_v37 = vadd.f32 %v7523_v13, %v10088_v40 }
 0x319   : > { %v10274_v33 = vadd.f32 %v7623_v20, %v4877_v37  ;;  %v7524_v25 = vpop.f32.mrb[164].mxu1  ;;  %v7624_v57 = vpop.f32.mrb[164].mxu0 }
 0x31a   : > { %v7525_v23 = vpop.f32.mrb[165].mxu1  ;;  %v7625_v32 = vpop.f32.mrb[165].mxu0 }
 0x31b   : > { %v7526_v8 = vadd.f32 %v7525_v23, %v7524_v25  ;;  %v7626_v54 = vadd.f32 %v7625_v32, %v7624_v57  ;;  %v7527_v18 = vpop.f32.mrb[166].mxu1  ;;  %v7627_v50 = vpop.f32.mrb[166].mxu0 }
 0x31c   : > { %v7528_v34 = vpop.f32.mrb[167].mxu1  ;;  %v7628_v42 = vpop.f32.mrb[167].mxu0 }
 0x31d   : > { %v4882_v9 = vadd.f32 %v7526_v8, %v10103_v29  ;;  %v7529_v43 = vadd.f32 %v7528_v34, %v7527_v18  ;;  %v7629_v36 = vadd.f32 %v7628_v42, %v7627_v50 }
 0x31f   : > { %v10277_v45 = vadd.f32 %v7626_v54, %v4882_v9  ;;  %v4885_v40 = vadd.f32 %v7529_v43, %v10106_v60 }
 0x321   : > { %v10280_v48 = vadd.f32 %v7629_v36, %v4885_v40  ;;  %v7530_v62 = vpop.f32.mrb[168].mxu1  ;;  %v7630_v53 = vpop.f32.mrb[168].mxu0 }
 0x322   : > { %v7531_v39 = vpop.f32.mrb[169].mxu1  ;;  %v7631_v38 = vpop.f32.mrb[169].mxu0 }
 0x323   : > { %v7532_v22 = vadd.f32 %v7531_v39, %v7530_v62  ;;  %v7632_v4 = vadd.f32 %v7631_v38, %v7630_v53  ;;  %v7533_v28 = vpop.f32.mrb[170].mxu1  ;;  %v7633_v56 = vpop.f32.mrb[170].mxu0 }
 0x324   : > { %v7534_v7 = vpop.f32.mrb[171].mxu1  ;;  %v7634_v58 = vpop.f32.mrb[171].mxu0 }
 0x325   : > { %v4890_v29 = vadd.f32 %v7532_v22, %v10121_v51  ;;  %v7535_v0 = vadd.f32 %v7534_v7, %v7533_v28  ;;  %v7635_v46 = vadd.f32 %v7634_v58, %v7633_v56 }
 0x327   : > { %v10283_v5 = vadd.f32 %v7632_v4, %v4890_v29  ;;  %v4893_v60 = vadd.f32 %v7535_v0, %v10124_v15 }
 0x329   : > { %v10286_v10 = vadd.f32 %v7635_v46, %v4893_v60  ;;  %v7536_v11 = vpop.f32.mrb[172].mxu1  ;;  %v7636_v12 = vpop.f32.mrb[172].mxu0 }
 0x32a   : > { %v7537_v55 = vpop.f32.mrb[173].mxu1  ;;  %v7637_v13 = vpop.f32.mrb[173].mxu0 }
 0x32b   : > { %v7538_v20 = vadd.f32 %v7537_v55, %v7536_v11  ;;  %v7638_v37 = vadd.f32 %v7637_v13, %v7636_v12  ;;  %v7539_v25 = vpop.f32.mrb[174].mxu1  ;;  %v7639_v57 = vpop.f32.mrb[174].mxu0 }
 0x32c   : > { %v7540_v23 = vpop.f32.mrb[175].mxu1  ;;  %v7640_v32 = vpop.f32.mrb[175].mxu0 }
 0x32d   : > { %v4898_v51 = vadd.f32 %v7538_v20, %v10139_v27  ;;  %v7541_v8 = vadd.f32 %v7540_v23, %v7539_v25  ;;  %v7641_v54 = vadd.f32 %v7640_v32, %v7639_v57 }
 0x32f   : > { %v10289_v18 = vadd.f32 %v7638_v37, %v4898_v51  ;;  %v4901_v15 = vadd.f32 %v7541_v8, %v10142_v31 }
 0x331   : > { %v10292_v50 = vadd.f32 %v7641_v54, %v4901_v15  ;;  %v7542_v34 = vpop.f32.mrb[176].mxu1  ;;  %v7642_v42 = vpop.f32.mrb[176].mxu0 }
 0x332   : > { %v7543_v9 = vpop.f32.mrb[177].mxu1  ;;  %v7643_v43 = vpop.f32.mrb[177].mxu0 }
 0x333   : > { %v7544_v36 = vadd.f32 %v7543_v9, %v7542_v34  ;;  %v7644_v40 = vadd.f32 %v7643_v43, %v7642_v42  ;;  %v7545_v62 = vpop.f32.mrb[178].mxu1  ;;  %v7645_v53 = vpop.f32.mrb[178].mxu0 }
 0x334   : > { %v7546_v39 = vpop.f32.mrb[179].mxu1  ;;  %v7646_v38 = vpop.f32.mrb[179].mxu0 }
 0x335   : > { %v4906_v27 = vadd.f32 %v7544_v36, %v10157_v3  ;;  %v7547_v22 = vadd.f32 %v7546_v39, %v7545_v62  ;;  %v7647_v4 = vadd.f32 %v7646_v38, %v7645_v53 }
 0x337   : > { %v10295_v28 = vadd.f32 %v7644_v40, %v4906_v27  ;;  %v4909_v31 = vadd.f32 %v7547_v22, %v10160_v47 }
 0x339   : > { %v10298_v56 = vadd.f32 %v7647_v4, %v4909_v31  ;;  %v7548_v7 = vpop.f32.mrb[180].mxu1  ;;  %v7648_v58 = vpop.f32.mrb[180].mxu0 }
 0x33a   : > { %v7549_v29 = vpop.f32.mrb[181].mxu1  ;;  %v7649_v0 = vpop.f32.mrb[181].mxu0 }
 0x33b   : > { %v7550_v46 = vadd.f32 %v7549_v29, %v7548_v7  ;;  %v7650_v60 = vadd.f32 %v7649_v0, %v7648_v58  ;;  %v7551_v11 = vpop.f32.mrb[182].mxu1  ;;  %v7651_v12 = vpop.f32.mrb[182].mxu0 }
 0x33c   : > { %v7552_v55 = vpop.f32.mrb[183].mxu1  ;;  %v7652_v13 = vpop.f32.mrb[183].mxu0 }
 0x33d   : > { %v4914_v3 = vadd.f32 %v7550_v46, %v10175_v49  ;;  %v7553_v20 = vadd.f32 %v7552_v55, %v7551_v11  ;;  %v7653_v37 = vadd.f32 %v7652_v13, %v7651_v12 }
 0x33f   : > { %v10301_v25 = vadd.f32 %v7650_v60, %v4914_v3  ;;  %v4917_v47 = vadd.f32 %v7553_v20, %v10178_v63 }
 0x341   : > { %v10304_v57 = vadd.f32 %v7653_v37, %v4917_v47  ;;  %v7554_v23 = vpop.f32.mrb[184].mxu1  ;;  %v7654_v32 = vpop.f32.mrb[184].mxu0 }
 0x342   : > { %v7555_v51 = vpop.f32.mrb[185].mxu1  ;;  %v7655_v8 = vpop.f32.mrb[185].mxu0 }
 0x343   : > { %v7556_v54 = vadd.f32 %v7555_v51, %v7554_v23  ;;  %v7656_v15 = vadd.f32 %v7655_v8, %v7654_v32  ;;  %v7557_v34 = vpop.f32.mrb[186].mxu1  ;;  %v7657_v42 = vpop.f32.mrb[186].mxu0 }
 0x344   : > { %v7558_v9 = vpop.f32.mrb[187].mxu1  ;;  %v7658_v43 = vpop.f32.mrb[187].mxu0 }
 0x345   : > { %v4922_v49 = vadd.f32 %v7556_v54, %v10193_v35  ;;  %v7559_v36 = vadd.f32 %v7558_v9, %v7557_v34  ;;  %v7659_v40 = vadd.f32 %v7658_v43, %v7657_v42 }
 0x347   : > { %v10307_v62 = vadd.f32 %v7656_v15, %v4922_v49  ;;  %v4925_v63 = vadd.f32 %v7559_v36, %v10196_v19 }
 0x349   : > { %v10310_v53 = vadd.f32 %v7659_v40, %v4925_v63  ;;  %v7560_v39 = vpop.f32.mrb[188].mxu1  ;;  %v7660_v38 = vpop.f32.mrb[188].mxu0 }
 0x34a   : > { %v7561_v27 = vpop.f32.mrb[189].mxu1  ;;  %v7661_v22 = vpop.f32.mrb[189].mxu0 }
 0x34b   : > { %v7562_v4 = vadd.f32 %v7561_v27, %v7560_v39  ;;  %v7662_v31 = vadd.f32 %v7661_v22, %v7660_v38  ;;  %v7563_v7 = vpop.f32.mrb[190].mxu1  ;;  %v7663_v58 = vpop.f32.mrb[190].mxu0 }
 0x34c   : > { %v7564_v29 = vpop.f32.mrb[191].mxu1  ;;  %v7664_v0 = vpop.f32.mrb[191].mxu0 }
 0x34d   : > { %v4930_v35 = vadd.f32 %v7562_v4, %v10211_v16  ;;  %v7565_v46 = vadd.f32 %v7564_v29, %v7563_v7  ;;  %v7665_v60 = vadd.f32 %v7664_v0, %v7663_v58  ;;  %v5379_v4 = vlaneseq }
 0x34f   : > { %v10313_v11 = vadd.f32 %v7662_v31, %v4930_v35  ;;  %v4933_v19 = vadd.f32 %v7565_v46, %v10214_v41  ;;  %v10328_v29 = vshrl.u32 %v5379_v4, 7 }
 0x351   : > { %v10316_v12 = vadd.f32 %v7665_v60, %v4933_v19  ;;  %v7566_v55 = vpop.f32.mrb[192].mxu1  ;;  %v7666_v13 = vpop.f32.mrb[192].mxu0 }
 0x352   : > { %v7567_v3 = vpop.f32.mrb[193].mxu1  ;;  %v7667_v20 = vpop.f32.mrb[193].mxu0 }
 0x353   : > { %v7568_v37 = vadd.f32 %v7567_v3, %v7566_v55  ;;  %v7668_v47 = vadd.f32 %v7667_v20, %v7666_v13  ;;  %v7569_v23 = vpop.f32.mrb[194].mxu1  ;;  %v7669_v32 = vpop.f32.mrb[194].mxu0 }
 0x354   : > { %v7570_v51 = vpop.f32.mrb[195].mxu1  ;;  %v7670_v8 = vpop.f32.mrb[195].mxu0 }
 0x355   : > { %v4938_v16 = vadd.f32 %v7568_v37, %v10229_v52  ;;  %v7571_v54 = vadd.f32 %v7570_v51, %v7569_v23  ;;  %v7671_v15 = vadd.f32 %v7670_v8, %v7669_v32 }
 0x357   : > { %v10319_v34 = vadd.f32 %v7668_v47, %v4938_v16  ;;  %v4941_v41 = vadd.f32 %v7571_v54, %v10232_v61 }
 0x359   : > { %v10322_v42 = vadd.f32 %v7671_v15, %v4941_v41  ;;  %v7688_v9 = vpop.f32.mrb[196].mxu1  ;;  %v7788_v43 = vpop.f32.mrb[196].mxu0 }
 0x35a   : > { %v7689_v49 = vpop.f32.mrb[197].mxu1  ;;  %v7789_v36 = vpop.f32.mrb[197].mxu0 }
 0x35b   : > { %v7690_v40 = vadd.f32 %v7689_v49, %v7688_v9  ;;  %v7790_v63 = vadd.f32 %v7789_v36, %v7788_v43  ;;  %v7691_v39 = vpop.f32.mrb[198].mxu1  ;;  %v7791_v38 = vpop.f32.mrb[198].mxu0  ;;  %v5383_v9 = vadd.s32 24, %v10328_v29 }
 0x35c   : > { %v7692_v27 = vpop.f32.mrb[199].mxu1  ;;  %v7792_v22 = vpop.f32.mrb[199].mxu0 }
 0x35d   : > { %v5124_v52 = vadd.f32 %v7690_v40, %v10241_v17  ;;  %v7693_v31 = vadd.f32 %v7692_v27, %v7691_v39  ;;  %v7793_v7 = vadd.f32 %v7792_v22, %v7791_v38  ;;  %v5381_v17 = vadd.s32 8, %v10328_v29 }
 0x35e   : > { %v5433_v4 = vand.u32 15, %v5383_v9 }
 0x35f   : > { %v10325_v58 = vadd.f32 %v7790_v63, %v5124_v52  ;;  %v5127_v61 = vadd.f32 %v7693_v31, %v10244_v30  ;;  %v5419_v16 = vand.u32 15, %v5381_v17 }
 0x360   : > { %vm5747_vm1 = vcmp.lt.s32.totalorder %v5433_v4, 14 }
 0x361   : > { %v10330_v0 = vadd.f32 %v7793_v7, %v5127_v61  ;;  %v7694_v35 = vpop.f32.mrb[200].mxu1  ;;  %v7794_v46 = vpop.f32.mrb[200].mxu0  ;;  %vm5745_vm0 = vcmp.lt.s32.totalorder %v5419_v16, 14  ;;  %v5385_v61 = vadd.s32 40, %v10328_v29 }
 0x362   : > { %v7695_v60 = vpop.f32.mrb[201].mxu1  ;;  %v7795_v19 = vpop.f32.mrb[201].mxu0 }
 0x363   : > { %v7696_v55 = vadd.f32 %v7695_v60, %v7694_v35  ;;  %v7796_v13 = vadd.f32 %v7795_v19, %v7794_v46  ;;  %v7697_v3 = vpop.f32.mrb[202].mxu1  ;;  %v7797_v20 = vpop.f32.mrb[202].mxu0  ;;  %v5829_v52 = vsel %vm5745_vm0, %v10330_v0, 0.0 }
 0x364   : > { %v7698_v37 = vpop.f32.mrb[203].mxu1  ;;  %v7798_v47 = vpop.f32.mrb[203].mxu0  ;;  %v5890_v19 = vmul.f32 %v5829_v52, %v5829_v52 }
 0x365   : > { %v5132_v23 = vadd.f32 %v7696_v55, %v10247_v14  ;;  %v7699_v32 = vadd.f32 %v7698_v37, %v7697_v3  ;;  %v7799_v30 = vadd.f32 %v7798_v47, %v7797_v20  ;;  %v5889_v37 = vmul.f32 %v10325_v58, %v10325_v58 }
 0x366   : > { %v5856_v47 = vadd.f32 %v5829_v52, %v10325_v58 }
 0x367   : > { %v10334_v51 = vadd.f32 %v7796_v13, %v5132_v23  ;;  %v5135_v8 = vadd.f32 %v7699_v32, %v10250_v44  ;;  %v5447_v23 = vand.u32 15, %v5385_v61  ;;  %v5917_v9 = vadd.f32 %v5890_v19, %v5889_v37 }
 0x369   : > { %v10337_v54 = vadd.f32 %v7799_v30, %v5135_v8  ;;  %v7700_v15 = vpop.f32.mrb[204].mxu1  ;;  %v7800_v41 = vpop.f32.mrb[204].mxu0  ;;  %vm5749_vm2 = vcmp.lt.s32.totalorder %v5447_v23, 14 }
 0x36a   : > { %v7701_v43 = vpop.f32.mrb[205].mxu1  ;;  %v7801_v49 = vpop.f32.mrb[205].mxu0 }
 0x36b   : > { %v7702_v36 = vadd.f32 %v7701_v43, %v7700_v15  ;;  %v7802_v40 = vadd.f32 %v7801_v49, %v7800_v41  ;;  %v7703_v63 = vpop.f32.mrb[206].mxu1  ;;  %v7803_v39 = vpop.f32.mrb[206].mxu0  ;;  %v5831_v8 = vsel %vm5747_vm1, %v10337_v54, 0.0  ;;  %v5857_v43 = vadd.f32 %v5856_v47, %v10334_v51 }
 0x36c   : > { %v7704_v14 = vpop.f32.mrb[207].mxu1  ;;  %v7804_v38 = vpop.f32.mrb[207].mxu0  ;;  %v5387_v49 = vadd.s32 56, %v10328_v29 }
 0x36d   : > { %v5140_v27 = vadd.f32 %v7702_v36, %v10253_v1  ;;  %v7705_v22 = vadd.f32 %v7704_v14, %v7703_v63  ;;  %v7805_v44 = vadd.f32 %v7804_v38, %v7803_v39  ;;  %v5892_v39 = vmul.f32 %v5831_v8, %v5831_v8 }
 0x36f   : > { %v10342_v31 = vadd.f32 %v7802_v40, %v5140_v27  ;;  %v5143_v7 = vadd.f32 %v7705_v22, %v10256_v2  ;;  %v5891_v2 = vmul.f32 %v10334_v51, %v10334_v51  ;;  %v5858_v22 = vadd.f32 %v5857_v43, %v5831_v8 }
 0x371   : > { %v10346_v35 = vadd.f32 %v7805_v44, %v5143_v7  ;;  %v7706_v46 = vpop.f32.mrb[208].mxu1  ;;  %v7806_v60 = vpop.f32.mrb[208].mxu0  ;;  %v5918_v63 = vadd.f32 %v5917_v9, %v5891_v2  ;;  %v5461_v44 = vand.u32 15, %v5387_v49 }
 0x372   : > { %v7707_v55 = vpop.f32.mrb[209].mxu1  ;;  %v7807_v13 = vpop.f32.mrb[209].mxu0 }
 0x373   : > { %v7708_v1 = vadd.f32 %v7707_v55, %v7706_v46  ;;  %v7808_v3 = vadd.f32 %v7807_v13, %v7806_v60  ;;  %v7709_v20 = vpop.f32.mrb[210].mxu1  ;;  %v7809_v17 = vpop.f32.mrb[210].mxu0  ;;  %v5833_v7 = vsel %vm5749_vm2, %v10346_v35, 0.0  ;;  %v5919_v19 = vadd.f32 %v5918_v63, %v5892_v39 }
 0x374   : > { %v7710_v32 = vpop.f32.mrb[211].mxu1  ;;  %v7810_v30 = vpop.f32.mrb[211].mxu0  ;;  %v5859_v55 = vadd.f32 %v5858_v22, %v10342_v31  ;;  %v5894_v2 = vmul.f32 %v5833_v7, %v5833_v7  ;;  %vm5751_vm3 = vcmp.lt.s32.totalorder %v5461_v44, 14  ;;  %v5391_v39 = vadd.s32 88, %v10328_v29 }
 0x375   : > { %v5148_v16 = vadd.f32 %v7708_v1, %v10259_v24  ;;  %v7711_v15 = vadd.f32 %v7710_v32, %v7709_v20  ;;  %v7811_v41 = vadd.f32 %v7810_v30, %v7809_v17  ;;  %v5893_v24 = vmul.f32 %v10342_v31, %v10342_v31 }
 0x376   : > { %v5860_v30 = vadd.f32 %v5859_v55, %v5833_v7 }
 0x377   : > { %v10357_v36 = vadd.f32 %v7808_v3, %v5148_v16  ;;  %v5151_v40 = vadd.f32 %v7711_v15, %v10262_v26  ;;  %v5389_v3 = vadd.s32 72, %v10328_v29  ;;  %v5920_v47 = vadd.f32 %v5919_v19, %v5893_v24 }
 0x378   : > { %v5489_v19 = vand.u32 15, %v5391_v39 }
 0x379   : > { %v10360_v14 = vadd.f32 %v7811_v41, %v5151_v40  ;;  %v7712_v38 = vpop.f32.mrb[212].mxu1  ;;  %v7812_v27 = vpop.f32.mrb[212].mxu0  ;;  %v5895_v8 = vmul.f32 %v10357_v36, %v10357_v36  ;;  %v5475_v16 = vand.u32 15, %v5389_v3  ;;  %v5921_v43 = vadd.f32 %v5920_v47, %v5894_v2 }
 0x37a   : > { %v7713_v4 = vpop.f32.mrb[213].mxu1  ;;  %v7813_v52 = vpop.f32.mrb[213].mxu0  ;;  %v5861_v49 = vadd.f32 %v5860_v30, %v10357_v36  ;;  %vm5755_vm5 = vcmp.lt.s32.totalorder %v5489_v19, 14 }
 0x37b   : > { %v7714_v61 = vadd.f32 %v7713_v4, %v7712_v38  ;;  %v7814_v46 = vadd.f32 %v7813_v52, %v7812_v27  ;;  %v7715_v60 = vpop.f32.mrb[214].mxu1  ;;  %v7815_v26 = vpop.f32.mrb[214].mxu0  ;;  %v5835_v15 = vsel %vm5751_vm3, %v10360_v14, 0.0  ;;  %v5922_v24 = vadd.f32 %v5921_v43, %v5895_v8 }
 0x37c   : > { %v7716_v13 = vpop.f32.mrb[215].mxu1  ;;  %v7816_v1 = vpop.f32.mrb[215].mxu0  ;;  %v5896_v44 = vmul.f32 %v5835_v15, %v5835_v15  ;;  %vm5753_vm4 = vcmp.lt.s32.totalorder %v5475_v16, 14 }
 0x37d   : > { %v5156_v20 = vadd.f32 %v7714_v61, %v10265_v59  ;;  %v7717_v17 = vadd.f32 %v7716_v13, %v7715_v60  ;;  %v7817_v37 = vadd.f32 %v7816_v1, %v7815_v26  ;;  %v5862_v60 = vadd.f32 %v5861_v49, %v5835_v15 }
 0x37e   : > { %v5923_v3 = vadd.f32 %v5922_v24, %v5896_v44 }
 0x37f   : > { %v10368_v23 = vadd.f32 %v7814_v46, %v5156_v20  ;;  %v5159_v32 = vadd.f32 %v7717_v17, %v10268_v6  ;;  %v5393_v17 = vadd.s32 104, %v10328_v29 }
 0x381   : > { %v10374_v41 = vadd.f32 %v7817_v37, %v5159_v32  ;;  %v7718_v9 = vpop.f32.mrb[216].mxu1  ;;  %v7818_v59 = vpop.f32.mrb[216].mxu0  ;;  %v5897_v26 = vmul.f32 %v10368_v23, %v10368_v23  ;;  %v5863_v20 = vadd.f32 %v5862_v60, %v10368_v23 }
 0x382   : > { %v7719_v40 = vpop.f32.mrb[217].mxu1  ;;  %v7819_v63 = vpop.f32.mrb[217].mxu0 }
 0x383   : > { %v7720_v38 = vadd.f32 %v7719_v40, %v7718_v9  ;;  %v7820_v6 = vadd.f32 %v7819_v63, %v7818_v59  ;;  %v7721_v27 = vpop.f32.mrb[218].mxu1  ;;  %v7821_v22 = vpop.f32.mrb[218].mxu0  ;;  %v5837_v55 = vsel %vm5753_vm4, %v10374_v41, 0.0  ;;  %v5924_v2 = vadd.f32 %v5923_v3, %v5897_v26 }
 0x384   : > { %v7722_v4 = vpop.f32.mrb[219].mxu1  ;;  %v7822_v52 = vpop.f32.mrb[219].mxu0  ;;  %v5898_v32 = vmul.f32 %v5837_v55, %v5837_v55  ;;  %v5864_v43 = vadd.f32 %v5863_v20, %v5837_v55  ;;  %v5503_v63 = vand.u32 15, %v5393_v17 }
 0x385   : > { %v5164_v7 = vadd.f32 %v7720_v38, %v10271_v21  ;;  %v7723_v61 = vadd.f32 %v7722_v4, %v7721_v27  ;;  %v7823_v46 = vadd.f32 %v7822_v52, %v7821_v22 }
 0x386   : > { %v5925_v22 = vadd.f32 %v5924_v2, %v5898_v32  ;;  %vm5757_vm6 = vcmp.lt.s32.totalorder %v5503_v63, 14 }
 0x387   : > { %v10382_v13 = vadd.f32 %v7820_v6, %v5164_v7  ;;  %v5167_v1 = vadd.f32 %v7723_v61, %v10274_v33  ;;  %v5395_v61 = vadd.s32 120, %v10328_v29 }
 0x389   : > { %v10387_v37 = vadd.f32 %v7823_v46, %v5167_v1  ;;  %v7724_v21 = vpop.f32.mrb[220].mxu1  ;;  %v7824_v47 = vpop.f32.mrb[220].mxu0  ;;  %v5899_v33 = vmul.f32 %v10382_v13, %v10382_v13  ;;  %v5865_v24 = vadd.f32 %v5864_v43, %v10382_v13 }
 0x38a   : > { %v7725_v30 = vpop.f32.mrb[221].mxu1  ;;  %v7825_v8 = vpop.f32.mrb[221].mxu0 }
 0x38b   : > { %v7726_v16 = vadd.f32 %v7725_v30, %v7724_v21  ;;  %v7826_v15 = vadd.f32 %v7825_v8, %v7824_v47  ;;  %v7727_v9 = vpop.f32.mrb[222].mxu1  ;;  %v7827_v59 = vpop.f32.mrb[222].mxu0  ;;  %v5839_v39 = vsel %vm5755_vm5, %v10387_v37, 0.0  ;;  %v5926_v52 = vadd.f32 %v5925_v22, %v5899_v33 }
 0x38c   : > { %v7728_v49 = vpop.f32.mrb[223].mxu1  ;;  %v7828_v40 = vpop.f32.mrb[223].mxu0  ;;  %v5900_v7 = vmul.f32 %v5839_v39, %v5839_v39  ;;  %v5866_v1 = vadd.f32 %v5865_v24, %v5839_v39  ;;  %v5517_v30 = vand.u32 15, %v5395_v61 }
 0x38d   : > { %v5172_v38 = vadd.f32 %v7726_v16, %v10277_v45  ;;  %v7729_v6 = vadd.f32 %v7728_v49, %v7727_v9  ;;  %v7829_v27 = vadd.f32 %v7828_v40, %v7827_v59  ;;  %v5397_v40 = vadd.s32 136, %v10328_v29 }
 0x38e   : > { %v5927_v47 = vadd.f32 %v5926_v52, %v5900_v7  ;;  %vm5759_vm7 = vcmp.lt.s32.totalorder %v5517_v30, 14 }
 0x38f   : > { %v10394_v44 = vadd.f32 %v7826_v15, %v5172_v38  ;;  %v5175_v4 = vadd.f32 %v7729_v6, %v10280_v48 }
 0x391   : > { %v10398_v46 = vadd.f32 %v7829_v27, %v5175_v4  ;;  %v7730_v60 = vpop.f32.mrb[224].mxu1  ;;  %v7830_v26 = vpop.f32.mrb[224].mxu0  ;;  %v5901_v45 = vmul.f32 %v10394_v44, %v10394_v44  ;;  %v5867_v8 = vadd.f32 %v5866_v1, %v10394_v44 }
 0x392   : > { %v7731_v19 = vpop.f32.mrb[225].mxu1  ;;  %v7831_v55 = vpop.f32.mrb[225].mxu0 }
 0x393   : > { %v5841_v3 = vsel %vm5757_vm6, %v10398_v46, 0.0  ;;  %v7732_v20 = vadd.f32 %v7731_v19, %v7730_v60  ;;  %v7832_v17 = vadd.f32 %v7831_v55, %v7830_v26  ;;  %v7733_v48 = vpop.f32.mrb[226].mxu1  ;;  %v7833_v21 = vpop.f32.mrb[226].mxu0  ;;  %v5928_v59 = vadd.f32 %v5927_v47, %v5901_v45 }
 0x394   : > { %v7734_v2 = vpop.f32.mrb[227].mxu1  ;;  %v7834_v32 = vpop.f32.mrb[227].mxu0  ;;  %v5902_v43 = vmul.f32 %v5841_v3, %v5841_v3  ;;  %v5868_v63 = vadd.f32 %v5867_v8, %v5841_v3  ;;  %v5531_v55 = vand.u32 15, %v5397_v40 }
 0x395   : > { %v5180_v16 = vadd.f32 %v7732_v20, %v10283_v5  ;;  %v7735_v15 = vadd.f32 %v7734_v2, %v7733_v48  ;;  %v7835_v9 = vadd.f32 %v7834_v32, %v7833_v21  ;;  %v5399_v2 = vadd.s32 152, %v10328_v29 }
 0x396   : > { %v5929_v5 = vadd.f32 %v5928_v59, %v5902_v43  ;;  %vm5761_vm8 = vcmp.lt.s32.totalorder %v5531_v55, 14 }
 0x397   : > { %v10405_v33 = vadd.f32 %v7832_v17, %v5180_v16  ;;  %v5183_v49 = vadd.f32 %v7735_v15, %v10286_v10 }
 0x399   : > { %v5903_v39 = vmul.f32 %v10405_v33, %v10405_v33  ;;  %v10411_v38 = vadd.f32 %v7835_v9, %v5183_v49  ;;  %v7736_v6 = vpop.f32.mrb[228].mxu1  ;;  %v7836_v27 = vpop.f32.mrb[228].mxu0  ;;  %v5869_v4 = vadd.f32 %v5868_v63, %v10405_v33 }
 0x39a   : > { %v7737_v22 = vpop.f32.mrb[229].mxu1  ;;  %v7837_v24 = vpop.f32.mrb[229].mxu0 }
 0x39b   : > { %v5843_v52 = vsel %vm5759_vm7, %v10411_v38, 0.0  ;;  %v7738_v7 = vadd.f32 %v7737_v22, %v7736_v6  ;;  %v7838_v10 = vadd.f32 %v7837_v24, %v7836_v27  ;;  %v7739_v61 = vpop.f32.mrb[230].mxu1  ;;  %v7839_v60 = vpop.f32.mrb[230].mxu0  ;;  %v5930_v26 = vadd.f32 %v5929_v5, %v5903_v39 }
 0x39c   : > { %v7740_v45 = vpop.f32.mrb[231].mxu1  ;;  %v7840_v19 = vpop.f32.mrb[231].mxu0  ;;  %v5904_v1 = vmul.f32 %v5843_v52, %v5843_v52  ;;  %v5870_v48 = vadd.f32 %v5869_v4, %v5843_v52  ;;  %v5545_v24 = vand.u32 15, %v5399_v2 }
 0x39d   : > { %v5188_v3 = vadd.f32 %v7738_v7, %v10289_v18  ;;  %v7741_v20 = vadd.f32 %v7740_v45, %v7739_v61  ;;  %v7841_v17 = vadd.f32 %v7840_v19, %v7839_v60 }
 0x39e   : > { %v5931_v32 = vadd.f32 %v5930_v26, %v5904_v1  ;;  %vm5763_vm9 = vcmp.lt.s32.totalorder %v5545_v24, 14  ;;  %v5401_v26 = vadd.s32 168, %v10328_v29 }
 0x39f   : > { %v10416_v21 = vadd.f32 %v7838_v10, %v5188_v3  ;;  %v5191_v47 = vadd.f32 %v7741_v20, %v10292_v50 }
 0x3a1   : > { %v5871_v30 = vadd.f32 %v5870_v48, %v10416_v21  ;;  %v5905_v8 = vmul.f32 %v10416_v21, %v10416_v21  ;;  %v10423_v16 = vadd.f32 %v7841_v17, %v5191_v47  ;;  %v7742_v15 = vpop.f32.mrb[232].mxu1  ;;  %v7842_v18 = vpop.f32.mrb[232].mxu0 }
 0x3a2   : > { %v7743_v9 = vpop.f32.mrb[233].mxu1  ;;  %v7843_v59 = vpop.f32.mrb[233].mxu0 }
 0x3a3   : > { %v5932_v43 = vadd.f32 %v5931_v32, %v5905_v8  ;;  %v5845_v49 = vsel %vm5761_vm8, %v10423_v16, 0.0  ;;  %v7744_v40 = vadd.f32 %v7743_v9, %v7742_v15  ;;  %v7844_v50 = vadd.f32 %v7843_v59, %v7842_v18  ;;  %v7745_v63 = vpop.f32.mrb[234].mxu1  ;;  %v7845_v39 = vpop.f32.mrb[234].mxu0 }
 0x3a4   : > { %v5872_v6 = vadd.f32 %v5871_v30, %v5845_v49  ;;  %v5906_v27 = vmul.f32 %v5845_v49, %v5845_v49  ;;  %v7746_v5 = vpop.f32.mrb[235].mxu1  ;;  %v7846_v22 = vpop.f32.mrb[235].mxu0  ;;  %v5559_v9 = vand.u32 15, %v5401_v26 }
 0x3a5   : > { %v5196_v4 = vadd.f32 %v7744_v40, %v10295_v28  ;;  %v7747_v52 = vadd.f32 %v7746_v5, %v7745_v63  ;;  %v7847_v7 = vadd.f32 %v7846_v22, %v7845_v39  ;;  %v5403_v39 = vadd.s32 184, %v10328_v29 }
 0x3a6   : > { %v5933_v10 = vadd.f32 %v5932_v43, %v5906_v27  ;;  %vm5765_vm10 = vcmp.lt.s32.totalorder %v5559_v9, 14 }
 0x3a7   : > { %v10427_v61 = vadd.f32 %v7844_v50, %v5196_v4  ;;  %v5199_v60 = vadd.f32 %v7747_v52, %v10298_v56 }
 0x3a9   : > { %v5873_v45 = vadd.f32 %v5872_v6, %v10427_v61  ;;  %v5907_v19 = vmul.f32 %v10427_v61, %v10427_v61  ;;  %v10434_v55 = vadd.f32 %v7847_v7, %v5199_v60  ;;  %v7748_v1 = vpop.f32.mrb[236].mxu1  ;;  %v7848_v3 = vpop.f32.mrb[236].mxu0 }
 0x3aa   : > { %v7749_v28 = vpop.f32.mrb[237].mxu1  ;;  %v7849_v20 = vpop.f32.mrb[237].mxu0 }
 0x3ab   : > { %v5934_v17 = vadd.f32 %v5933_v10, %v5907_v19  ;;  %v5847_v48 = vsel %vm5763_vm9, %v10434_v55, 0.0  ;;  %v7750_v47 = vadd.f32 %v7749_v28, %v7748_v1  ;;  %v7850_v2 = vadd.f32 %v7849_v20, %v7848_v3  ;;  %v7751_v56 = vpop.f32.mrb[238].mxu1  ;;  %v7851_v32 = vpop.f32.mrb[238].mxu0 }
 0x3ac   : > { %v5874_v30 = vadd.f32 %v5873_v45, %v5847_v48  ;;  %v5908_v8 = vmul.f32 %v5847_v48, %v5847_v48  ;;  %v7752_v15 = vpop.f32.mrb[239].mxu1  ;;  %v7852_v18 = vpop.f32.mrb[239].mxu0  ;;  %v5573_v28 = vand.u32 15, %v5403_v39 }
 0x3ad   : > { %v5204_v59 = vadd.f32 %v7750_v47, %v10301_v25  ;;  %v7753_v43 = vadd.f32 %v7752_v15, %v7751_v56  ;;  %v7853_v49 = vadd.f32 %v7852_v18, %v7851_v32  ;;  %v5405_v32 = vadd.s32 200, %v10328_v29 }
 0x3ae   : > { %v5935_v40 = vadd.f32 %v5934_v17, %v5908_v8  ;;  %vm5767_vm11 = vcmp.lt.s32.totalorder %v5573_v28, 14 }
 0x3af   : > { %v10438_v50 = vadd.f32 %v7850_v2, %v5204_v59  ;;  %v5207_v63 = vadd.f32 %v7753_v43, %v10304_v57 }
 0x3b1   : > { %v5875_v6 = vadd.f32 %v5874_v30, %v10438_v50  ;;  %v5909_v27 = vmul.f32 %v10438_v50, %v10438_v50  ;;  %v10445_v5 = vadd.f32 %v7853_v49, %v5207_v63  ;;  %v7754_v22 = vpop.f32.mrb[240].mxu1  ;;  %v7854_v24 = vpop.f32.mrb[240].mxu0 }
 0x3b2   : > { %v7755_v25 = vpop.f32.mrb[241].mxu1  ;;  %v7855_v4 = vpop.f32.mrb[241].mxu0 }
 0x3b3   : > { %v5936_v52 = vadd.f32 %v5935_v40, %v5909_v27  ;;  %v5849_v7 = vsel %vm5765_vm10, %v10445_v5, 0.0  ;;  %v7756_v10 = vadd.f32 %v7755_v25, %v7754_v22  ;;  %v7856_v60 = vadd.f32 %v7855_v4, %v7854_v24  ;;  %v7757_v57 = vpop.f32.mrb[242].mxu1  ;;  %v7857_v26 = vpop.f32.mrb[242].mxu0 }
 0x3b4   : > { %v5876_v45 = vadd.f32 %v5875_v6, %v5849_v7  ;;  %v5910_v19 = vmul.f32 %v5849_v7, %v5849_v7  ;;  %v7758_v1 = vpop.f32.mrb[243].mxu1  ;;  %v7858_v3 = vpop.f32.mrb[243].mxu0  ;;  %v5587_v25 = vand.u32 15, %v5405_v32 }
 0x3b5   : > { %v5212_v20 = vadd.f32 %v7756_v10, %v10307_v62  ;;  %v7759_v17 = vadd.f32 %v7758_v1, %v7757_v57  ;;  %v7859_v48 = vadd.f32 %v7858_v3, %v7857_v26  ;;  %v5407_v26 = vadd.s32 216, %v10328_v29 }
 0x3b6   : > { %v5937_v47 = vadd.f32 %v5936_v52, %v5910_v19  ;;  %vm5769_vm12 = vcmp.lt.s32.totalorder %v5587_v25, 14 }
 0x3b7   : > { %v10449_v2 = vadd.f32 %v7856_v60, %v5212_v20  ;;  %v5215_v56 = vadd.f32 %v7759_v17, %v10310_v53 }
 0x3b9   : > { %v5877_v30 = vadd.f32 %v5876_v45, %v10449_v2  ;;  %v5911_v8 = vmul.f32 %v10449_v2, %v10449_v2  ;;  %v10456_v15 = vadd.f32 %v7859_v48, %v5215_v56  ;;  %v7760_v18 = vpop.f32.mrb[244].mxu1  ;;  %v7860_v9 = vpop.f32.mrb[244].mxu0 }
 0x3ba   : > { %v7761_v62 = vpop.f32.mrb[245].mxu1  ;;  %v7861_v59 = vpop.f32.mrb[245].mxu0 }
 0x3bb   : > { %v5938_v43 = vadd.f32 %v5937_v47, %v5911_v8  ;;  %v5851_v49 = vsel %vm5767_vm11, %v10456_v15, 0.0  ;;  %v7762_v40 = vadd.f32 %v7761_v62, %v7760_v18  ;;  %v7862_v63 = vadd.f32 %v7861_v59, %v7860_v9  ;;  %v7763_v53 = vpop.f32.mrb[246].mxu1  ;;  %v7863_v39 = vpop.f32.mrb[246].mxu0 }
 0x3bc   : > { %v5878_v6 = vadd.f32 %v5877_v30, %v5851_v49  ;;  %v5912_v27 = vmul.f32 %v5851_v49, %v5851_v49  ;;  %v7764_v22 = vpop.f32.mrb[247].mxu1  ;;  %v7864_v24 = vpop.f32.mrb[247].mxu0  ;;  %v5601_v62 = vand.u32 15, %v5407_v26 }
 0x3bd   : > { %v5220_v4 = vadd.f32 %v7762_v40, %v10313_v11  ;;  %v7765_v52 = vadd.f32 %v7764_v22, %v7763_v53  ;;  %v7865_v7 = vadd.f32 %v7864_v24, %v7863_v39 }
 0x3be   : > { %v5939_v10 = vadd.f32 %v5938_v43, %v5912_v27  ;;  %vm5771_vm13 = vcmp.lt.s32.totalorder %v5601_v62, 14 }
 0x3bf   : > { %v10460_v60 = vadd.f32 %v7862_v63, %v5220_v4  ;;  %v5223_v57 = vadd.f32 %v7765_v52, %v10316_v12 }
 0x3c1   : > { %v5879_v45 = vadd.f32 %v5878_v6, %v10460_v60  ;;  %v5913_v19 = vmul.f32 %v10460_v60, %v10460_v60  ;;  %v10467_v1 = vadd.f32 %v7865_v7, %v5223_v57  ;;  %v7766_v3 = vpop.f32.mrb[248].mxu1  ;;  %v7866_v28 = vpop.f32.mrb[248].mxu0 }
 0x3c2   : > { %v7767_v11 = vpop.f32.mrb[249].mxu1  ;;  %v7867_v20 = vpop.f32.mrb[249].mxu0 }
 0x3c3   : > { %v5940_v17 = vadd.f32 %v5939_v10, %v5913_v19  ;;  %v5853_v48 = vsel %vm5769_vm12, %v10467_v1, 0.0  ;;  %v7768_v47 = vadd.f32 %v7767_v11, %v7766_v3  ;;  %v7868_v56 = vadd.f32 %v7867_v20, %v7866_v28  ;;  %v7769_v12 = vpop.f32.mrb[250].mxu1  ;;  %v7869_v32 = vpop.f32.mrb[250].mxu0 }
 0x3c4   : > { %v5880_v30 = vadd.f32 %v5879_v45, %v5853_v48  ;;  %v5914_v8 = vmul.f32 %v5853_v48, %v5853_v48  ;;  %v7770_v18 = vpop.f32.mrb[251].mxu1  ;;  %v7870_v9 = vpop.f32.mrb[251].mxu0 }
 0x3c5   : > { %v5228_v59 = vadd.f32 %v7768_v47, %v10319_v34  ;;  %v7771_v43 = vadd.f32 %v7770_v18, %v7769_v12  ;;  %v7871_v49 = vadd.f32 %v7870_v9, %v7869_v32  ;;  %v5955_v32 = vld [vmem:[%s1405_s25] sm:$0x1] }
 0x3c6   : > { %v5941_v40 = vadd.f32 %v5940_v17, %v5914_v8  ;;  %v5959_v9 = vld [vmem:[%s1408_s11] sm:$0x1] }
 0x3c7   : > { %v5373_v63 = vadd.f32 %v7868_v56, %v5228_v59  ;;  %v5231_v53 = vadd.f32 %v7771_v43, %v10322_v42 }
 0x3c9   : > { %v5881_v39 = vadd.f32 %v5880_v30, %v5373_v63  ;;  %v5915_v6 = vmul.f32 %v5373_v63, %v5373_v63  ;;  %v5376_v27 = vadd.f32 %v7871_v49, %v5231_v53  ;;  %v5965_v30 = vsub.s32 0, %v10328_v29 }
 0x3cb   : > { %v5942_v22 = vadd.f32 %v5941_v40, %v5915_v6  ;;  %v5855_v24 = vsel %vm5771_vm13, %v5376_v27, 0.0 }
 0x3cc   : > { %v5882_v25 = vadd.f32 %v5881_v39, %v5855_v24  ;;  %v5916_v4 = vmul.f32 %v5855_v24, %v5855_v24 }
 0x3ce   : > { %v5883_v52 = vrot.slane %v5882_v25, 4  ;;  %v5943_v7 = vadd.f32 %v5942_v22, %v5916_v4 }
 0x3d0   : > { %v5884_v10 = vadd.f32 %v5883_v52, %v5882_v25  ;;  %v5944_v57 = vrot.slane %v5943_v7, 4 }
 0x3d2   : > { %v5885_v34 = vrot.slane %v5884_v10, 2  ;;  %v5945_v26 = vadd.f32 %v5944_v57, %v5943_v7 }
 0x3d4   : > { %v5886_v45 = vadd.f32 %v5885_v34, %v5884_v10  ;;  %v5946_v19 = vrot.slane %v5945_v26, 2 }
 0x3d6   : > { %v5887_v3 = vrot.slane %v5886_v45, 1  ;;  %v5947_v42 = vadd.f32 %v5946_v19, %v5945_v26 }
 0x3d8   : > { %v5888_v28 = vadd.f32 %v5887_v3, %v5886_v45  ;;  %v5948_v11 = vrot.slane %v5947_v42, 1 }
 0x3da   : > { %v5949_v20 = vadd.f32 %v5948_v11, %v5947_v42  ;;  %v5951_v17 = vmul.f32 0.0051020407, %v5888_v28 }
 0x3dc   : > { %v5952_v48 = vmul.f32 0.0051020407, %v5949_v20  ;;  %v5953_v47 = vmul.f32 %v5951_v17, %v5951_v17 }
 0x3de   : > { %v5954_v56 = vsub.f32 %v5952_v48, %v5953_v47 }
 0x3e0   : > { %v5956_v12 = vadd.f32 1e-05, %v5954_v56 }
 0x3e2   : > { %8437 = vrsqrt.f32 %v5956_v12 }
 0x3ec   : > { %v8438_v8 = vpop.eup %8437 }
 0x3ed   : > { %v5958_v18 = vmul.f32 %v8438_v8, %v5955_v32 }
 0x3ef   : > { %v5960_v62 = vmul.f32 %v5958_v18, %v5951_v17  ;;  %v5966_v59 = vrot.slane %v5958_v18, %v5965_v30 }
 0x3f1   : > { %v5961_v43 = vsub.f32 %v5959_v9, %v5960_v62  ;;  %v5968_v49 = vmul.f32 %v5966_v59, %v10325_v58  ;;  %v5969_v40 = vmul.f32 %v5966_v59, %v10330_v0  ;;  %v5970_v53 = vmul.f32 %v5966_v59, %v10334_v51 }
 0x3f2   : > { %v5971_v39 = vmul.f32 %v5966_v59, %v10337_v54  ;;  %v5972_v29 = vmul.f32 %v5966_v59, %v10342_v31  ;;  %v5973_v6 = vmul.f32 %v5966_v59, %v10346_v35  ;;  %v5974_v22 = vmul.f32 %v5966_v59, %v10357_v36 }
 0x3f3   : > { %v5975_v24 = vmul.f32 %v5966_v59, %v10360_v14  ;;  %v5976_v25 = vmul.f32 %v5966_v59, %v10368_v23  ;;  %v5977_v4 = vmul.f32 %v5966_v59, %v10374_v41  ;;  %v5984_v58 = vmul.f32 %v5966_v59, %v10416_v21 }
 0x3f4   : > { %v5985_v0 = vmul.f32 %v5966_v59, %v10423_v16  ;;  %v5986_v51 = vmul.f32 %v5966_v59, %v10427_v61  ;;  %v5987_v54 = vmul.f32 %v5966_v59, %v10434_v55  ;;  %v5988_v31 = vmul.f32 %v5966_v59, %v10438_v50 }
 0x3f5   : > { %v5989_v35 = vmul.f32 %v5966_v59, %v10445_v5  ;;  %v5990_v36 = vmul.f32 %v5966_v59, %v10449_v2  ;;  %v5991_v14 = vmul.f32 %v5966_v59, %v10456_v15  ;;  %v5992_v23 = vmul.f32 %v5966_v59, %v10460_v60 }
 0x3f6   : > { %v5993_v41 = vmul.f32 %v5966_v59, %v10467_v1  ;;  %v5994_v52 = vmul.f32 %v5966_v59, %v5373_v63  ;;  %v5978_v21 = vmul.f32 %v5966_v59, %v10382_v13  ;;  %v5979_v16 = vmul.f32 %v5966_v59, %v10387_v37 }
 0x3f7   : > { %v5995_v61 = vmul.f32 %v5966_v59, %v5376_v27  ;;  %v6000_v7 = vrot.slane %v5961_v43, %v5965_v30  ;;  %v5980_v55 = vmul.f32 %v5966_v59, %v10394_v44  ;;  %v5981_v50 = vmul.f32 %v5966_v59, %v10398_v46 }
 0x3f8   : > { %v5982_v5 = vmul.f32 %v5966_v59, %v10405_v33  ;;  %v5983_v2 = vmul.f32 %v5966_v59, %v10411_v38 }
 0x3f9   : > { %v6002_v15 = vadd.f32 %v6000_v7, %v5968_v49  ;;  %v6003_v10 = vadd.f32 %v6000_v7, %v5969_v40  ;;  %v6004_v60 = vadd.f32 %v6000_v7, %v5970_v53  ;;  %v6005_v57 = vadd.f32 %v6000_v7, %v5971_v39 }
 0x3fa   : > { %v6006_v1 = vadd.f32 %v6000_v7, %v5972_v29  ;;  %v6007_v63 = vadd.f32 %v6000_v7, %v5973_v6  ;;  %v6008_v34 = vadd.f32 %v6000_v7, %v5974_v22  ;;  %v6009_v13 = vadd.f32 %v6000_v7, %v5975_v24 }
 0x3fb   : > { %v6010_v26 = vadd.f32 %v6000_v7, %v5976_v25  ;;  %v6011_v37 = vadd.f32 %v6000_v7, %v5977_v4  ;;  %v6012_v27 = vadd.f32 %v6000_v7, %v5978_v21  ;;  %v6013_v45 = vadd.f32 %v6000_v7, %v5979_v16 }
 0x3fc   : > { %v6014_v19 = vadd.f32 %v6000_v7, %v5980_v55  ;;  %v6015_v44 = vadd.f32 %v6000_v7, %v5981_v50  ;;  %v6016_v3 = vadd.f32 %v6000_v7, %v5982_v5  ;;  %v6017_v46 = vadd.f32 %v6000_v7, %v5983_v2 }
 0x3fd   : > { %v6018_v42 = vadd.f32 %v6000_v7, %v5984_v58  ;;  %v6019_v33 = vadd.f32 %v6000_v7, %v5985_v0  ;;  %v6020_v28 = vadd.f32 %v6000_v7, %v5986_v51  ;;  %v6021_v38 = vadd.f32 %v6000_v7, %v5987_v54 }
 0x3fe   : > { %v6022_v11 = vadd.f32 %v6000_v7, %v5988_v31  ;;  %v6023_v20 = vadd.f32 %v6000_v7, %v5989_v35  ;;  %v6024_v17 = vadd.f32 %v6000_v7, %v5990_v36  ;;  %v6025_v48 = vadd.f32 %v6000_v7, %v5991_v14 }
 0x3ff   : > { %v6026_v47 = vadd.f32 %v6000_v7, %v5992_v23  ;;  %v6027_v56 = vadd.f32 %v6000_v7, %v5993_v41  ;;  %v6028_v12 = vadd.f32 %v6000_v7, %v5994_v52  ;;  %v6029_v32 = vadd.f32 %v6000_v7, %v5995_v61 }
 0x400   : > { %v6030_v30 = vmax.f32 %v6002_v15, 0.0  ;;  %v6031_v8 = vmax.f32 %v6003_v10, 0.0  ;;  %v6032_v18 = vmax.f32 %v6004_v60, 0.0  ;;  %v6033_v9 = vmax.f32 %v6005_v57, 0.0 }
 0x401   : > { %v6034_v62 = vmax.f32 %v6006_v1, 0.0  ;;  %v6035_v59 = vmax.f32 %v6007_v63, 0.0  ;;  %v6036_v43 = vmax.f32 %v6008_v34, 0.0  ;;  %v6037_v49 = vmax.f32 %v6009_v13, 0.0 }
 0x402   : > { %v6038_v40 = vmax.f32 %v6010_v26, 0.0  ;;  %v6039_v53 = vmax.f32 %v6011_v37, 0.0  ;;  %v6040_v39 = vmax.f32 %v6012_v27, 0.0  ;;  %v6041_v29 = vmax.f32 %v6013_v45, 0.0 }
 0x403   : > { %v6042_v6 = vmax.f32 %v6014_v19, 0.0  ;;  %v6043_v22 = vmax.f32 %v6015_v44, 0.0  ;;  %v6044_v24 = vmax.f32 %v6016_v3, 0.0  ;;  %v6045_v25 = vmax.f32 %v6017_v46, 0.0 }
 0x404   : > { %v6046_v4 = vmax.f32 %v6018_v42, 0.0  ;;  %v6047_v58 = vmax.f32 %v6019_v33, 0.0  ;;  %v6048_v0 = vmax.f32 %v6020_v28, 0.0  ;;  %v6049_v51 = vmax.f32 %v6021_v38, 0.0 }
 0x405   : > { %v6050_v54 = vmax.f32 %v6022_v11, 0.0  ;;  %v6051_v31 = vmax.f32 %v6023_v20, 0.0  ;;  %v6052_v35 = vmax.f32 %v6024_v17, 0.0  ;;  %v6053_v36 = vmax.f32 %v6025_v48, 0.0 }
 0x406   : > { %v6054_v14 = vmax.f32 %v6026_v47, 0.0  ;;  %v6055_v23 = vmax.f32 %v6027_v56, 0.0  ;;  %v6056_v41 = vmax.f32 %v6028_v12, 0.0  ;;  %v6057_v52 = vmax.f32 %v6029_v32, 0.0 }
 0x407   : > { %v6892_v21 = vpack.c.bf16 %v6031_v8, %v6030_v30  ;;  %v6897_v16 = vpack.c.bf16 %v6033_v9, %v6032_v18  ;;  %v6902_v61 = vpack.c.bf16 %v6035_v59, %v6034_v62  ;;  %v6907_v7 = vpack.c.bf16 %v6037_v49, %v6036_v43 }
 0x408   : > { %v6912_v55 = vpack.c.bf16 %v6039_v53, %v6038_v40  ;;  %v6917_v50 = vpack.c.bf16 %v6041_v29, %v6040_v39  ;;  %v6922_v5 = vpack.c.bf16 %v6043_v22, %v6042_v6  ;;  %v6927_v2 = vpack.c.bf16 %v6045_v25, %v6044_v24 }
 0x409   : > { %6893 = vst [vmem:[%s10509_s15] sm:$0xff] %v6892_v21   ;;  %6959 = vst [vmem:[%s10509_s15 + $0x8] sm:$0xff] %v6897_v16   ;;  %v6932_v15 = vpack.c.bf16 %v6047_v58, %v6046_v4  ;;  %v6937_v10 = vpack.c.bf16 %v6049_v51, %v6048_v0  ;;  %v6942_v60 = vpack.c.bf16 %v6051_v31, %v6050_v54  ;;  %6204 = sbr.rel (!%p8519_p5) target bundleno = 1059 (0x423), region = 81 }
 0x40a   : > { %6960 = vst [vmem:[%s10509_s15 + $0x10] sm:$0xff] %v6902_v61   ;;  %6961 = vst [vmem:[%s10509_s15 + $0x18] sm:$0xff] %v6907_v7   ;;  %v6947_v57 = vpack.c.bf16 %v6053_v36, %v6052_v35  ;;  %v6952_v1 = vpack.c.bf16 %v6055_v23, %v6054_v14  ;;  %v6957_v63 = vpack.c.bf16 %v6057_v52, %v6056_v41 }
 0x40b   : > { %6962 = vst [vmem:[%s10509_s15 + $0x20] sm:$0xff] %v6912_v55   ;;  %6963 = vst [vmem:[%s10509_s15 + $0x28] sm:$0xff] %v6917_v50  }
 0x40c   : > { %6964 = vst [vmem:[%s10509_s15 + $0x30] sm:$0xff] %v6922_v5   ;;  %6965 = vst [vmem:[%s10509_s15 + $0x38] sm:$0xff] %v6927_v2  }
 0x40d   : > { %6966 = vst [vmem:[%s10509_s15 + $0x40] sm:$0xff] %v6932_v15   ;;  %6967 = vst [vmem:[%s10509_s15 + $0x48] sm:$0xff] %v6937_v10  }
 0x40e   : > { %6968 = vst [vmem:[%s10509_s15 + $0x50] sm:$0xff] %v6942_v60   ;;  %6969 = vst [vmem:[%s10509_s15 + $0x58] sm:$0xff] %v6947_v57  }
 0x40f   : > { %6970 = vst [vmem:[%s10509_s15 + $0x60] sm:$0xff] %v6952_v1   ;;  %6971 = vst [vmem:[%s10509_s15 + $0x68] sm:$0xff] %v6957_v63  }
 0x410   : > { %v6222_v34 = vld [vmem:[%s10509_s15] sm:$0xf]  ;;  %v6224_v13 = vld [vmem:[%s10509_s15 + $0x4] sm:$0xf]  ;;  %v6226_v26 = vld [vmem:[%s10509_s15 + $0x8] sm:$0xf] }
 0x411   : > { %v6228_v37 = vld [vmem:[%s10509_s15 + $0xc] sm:$0xf]  ;;  %v6230_v27 = vld [vmem:[%s10509_s15 + $0x10] sm:$0xf]  ;;  %6223 = vst [vmem:[%s10533_s6] sm:$0xf] %v6222_v34 }
 0x412   : > { %6225 = vst [vmem:[%s10533_s6 + $0x8] sm:$0xf] %v6224_v13  ;;  %6227 = vst [vmem:[%s10533_s6 + $0x10] sm:$0xf] %v6226_v26  ;;  %v6232_v45 = vld [vmem:[%s10509_s15 + $0x14] sm:$0xf] }
 0x413   : > { %6229 = vst [vmem:[%s10533_s6 + $0x18] sm:$0xf] %v6228_v37  ;;  %6231 = vst [vmem:[%s10533_s6 + $0x20] sm:$0xf] %v6230_v27  ;;  %v6234_v19 = vld [vmem:[%s10509_s15 + $0x18] sm:$0xf] }
 0x414   : > { %v6236_v44 = vld [vmem:[%s10509_s15 + $0x1c] sm:$0xf]  ;;  %6233 = vst [vmem:[%s10533_s6 + $0x28] sm:$0xf] %v6232_v45  ;;  %6235 = vst [vmem:[%s10533_s6 + $0x30] sm:$0xf] %v6234_v19 }
 0x415   : > { %6237 = vst [vmem:[%s10533_s6 + $0x38] sm:$0xf] %v6236_v44  ;;  %v6238_v3 = vld [vmem:[%s10509_s15 + $0x20] sm:$0xf]  ;;  %v6240_v46 = vld [vmem:[%s10509_s15 + $0x24] sm:$0xf] }
 0x416   : > { %v6242_v42 = vld [vmem:[%s10509_s15 + $0x28] sm:$0xf]  ;;  %6239 = vst [vmem:[%s10533_s6 + $0x40] sm:$0xf] %v6238_v3  ;;  %6241 = vst [vmem:[%s10533_s6 + $0x48] sm:$0xf] %v6240_v46 }
 0x417   : > { %6243 = vst [vmem:[%s10533_s6 + $0x50] sm:$0xf] %v6242_v42  ;;  %v6244_v33 = vld [vmem:[%s10509_s15 + $0x2c] sm:$0xf]  ;;  %v6246_v28 = vld [vmem:[%s10509_s15 + $0x30] sm:$0xf] }
 0x418   : > { %v6248_v38 = vld [vmem:[%s10509_s15 + $0x34] sm:$0xf]  ;;  %6245 = vst [vmem:[%s10533_s6 + $0x58] sm:$0xf] %v6244_v33  ;;  %6247 = vst [vmem:[%s10533_s6 + $0x60] sm:$0xf] %v6246_v28 }
 0x419   : > { %6249 = vst [vmem:[%s10533_s6 + $0x68] sm:$0xf] %v6248_v38  ;;  %v6250_v11 = vld [vmem:[%s10509_s15 + $0x38] sm:$0xf]  ;;  %v6252_v20 = vld [vmem:[%s10509_s15 + $0x3c] sm:$0xf] }
 0x41a   : > { %v6254_v17 = vld [vmem:[%s10509_s15 + $0x40] sm:$0xf]  ;;  %6251 = vst [vmem:[%s10533_s6 + $0x70] sm:$0xf] %v6250_v11  ;;  %6253 = vst [vmem:[%s10533_s6 + $0x78] sm:$0xf] %v6252_v20 }
 0x41b   : > { %6255 = vst [vmem:[%s10533_s6 + $0x80] sm:$0xf] %v6254_v17  ;;  %v6256_v48 = vld [vmem:[%s10509_s15 + $0x44] sm:$0xf]  ;;  %v6258_v47 = vld [vmem:[%s10509_s15 + $0x48] sm:$0xf] }
 0x41c   : > { %v6260_v56 = vld [vmem:[%s10509_s15 + $0x4c] sm:$0xf]  ;;  %6257 = vst [vmem:[%s10533_s6 + $0x88] sm:$0xf] %v6256_v48  ;;  %6259 = vst [vmem:[%s10533_s6 + $0x90] sm:$0xf] %v6258_v47 }
 0x41d   : > { %6261 = vst [vmem:[%s10533_s6 + $0x98] sm:$0xf] %v6260_v56  ;;  %v6262_v12 = vld [vmem:[%s10509_s15 + $0x50] sm:$0xf]  ;;  %v6264_v32 = vld [vmem:[%s10509_s15 + $0x54] sm:$0xf] }
 0x41e   : > { %v6266_v30 = vld [vmem:[%s10509_s15 + $0x58] sm:$0xf]  ;;  %6263 = vst [vmem:[%s10533_s6 + $0xa0] sm:$0xf] %v6262_v12  ;;  %6265 = vst [vmem:[%s10533_s6 + $0xa8] sm:$0xf] %v6264_v32 }
 0x41f   : > { %6267 = vst [vmem:[%s10533_s6 + $0xb0] sm:$0xf] %v6266_v30  ;;  %v6268_v8 = vld [vmem:[%s10509_s15 + $0x5c] sm:$0xf]  ;;  %v6270_v18 = vld [vmem:[%s10509_s15 + $0x60] sm:$0xf] }
 0x420   : > { %v6272_v9 = vld [vmem:[%s10509_s15 + $0x64] sm:$0xf]  ;;  %6269 = vst [vmem:[%s10533_s6 + $0xb8] sm:$0xf] %v6268_v8  ;;  %6271 = vst [vmem:[%s10533_s6 + $0xc0] sm:$0xf] %v6270_v18 }
 0x421   : > { %6273 = vst [vmem:[%s10533_s6 + $0xc8] sm:$0xf] %v6272_v9  ;;  %v6274_v62 = vld [vmem:[%s10509_s15 + $0x68] sm:$0xf]  ;;  %v6276_v59 = vld [vmem:[%s10509_s15 + $0x6c] sm:$0xf] }
 0x422   : > { %6275 = vst [vmem:[%s10533_s6 + $0xd0] sm:$0xf] %v6274_v62  ;;  %6277 = vst [vmem:[%s10533_s6 + $0xd8] sm:$0xf] %v6276_v59 }
 0x423 PF: > { %p11_p11 = scmp.ge.s32.totalorder %s8507_s19, 4   ;;  %s10605_s15 = smov %s8457_s16 }
 0x424   : > { %s10606_s16 = smov %s8517_s22  ;;  %s10607_s17 = smov %s8507_s19 }
 0x425   :  { %13 = sbr.rel (!%p11_p11) target bundleno = 2 (0x2), region = 159 }

</bundles_post_ra>
